<compile_context>
chip_gen: v7x
topology: tpu7x:2x2x1
jax: 0.10.0
libtpu: 0.0.40
codegen_flags: <defaults>
</compile_context>

<pallas_src>
import functools
import math

import jax
import jax.numpy as jnp
from jax import lax
from jax.experimental import pallas as pl
from jax.experimental.pallas import tpu as pltpu

# ----------------------------- hyper-params ---------------------------------
N_VOCAB = 128
H_DIM = 32
Z_DIM = 16
EMB_DIM = H_DIM          # pretrained_embeddings is None -> emb_dim == h_dim
H_GEN = H_DIM + Z_DIM    # generator LSTM hidden size (48)
PAD_IDX = 1
SEQ_LEN = 8
MBSIZE = 4
MB_PAD = 8               # batch rows padded to a full 8-sublane tile
LANE = 128               # per-gate lane padding (vreg lane width)

GATE_PERM = (0, 1, 3, 2)  # PyTorch gate order (i, f, g, o) -> kernel (i, f, o, g)


def _vmem():
    return pl.BlockSpec(memory_space=pltpu.MemorySpace.VMEM)


# --------------------------- fused Pallas kernel -----------------------------
def fused_vae_kernel(ids_ref, tgt_ref, mask_ref, z_ref, emb_tbl_ref,
                     enc_wih_ref, enc_whh_ref, enc_b_ref,
                     enc_fc_w_ref, enc_fc_b_ref,
                     gen_wih_x_ref, gen_wih_hz_ref,
                     gen_whh_ref, gen_b_ref,
                     gen_fc_w_ref, gen_fc_b_ref,
                     loss_ref,
                     enc_gx_ref, gen_gx_ref, hs_ref,
                     *, seq_len, mbsize, mb_pad, lane, n_vocab):
    """Embedding + encoder LSTM + encoder_fc + generator LSTM + fc + mean xent."""
    n_tok = seq_len * mb_pad

    # ---- fused embedding lookup: one-hot(ids) @ emb_table (single MXU op) ----
    ids = ids_ref[...]                                      # (n_tok, 1) int32
    vcol = lax.broadcasted_iota(jnp.int32, (n_tok, n_vocab), 1)
    onehot = (vcol == ids).astype(jnp.bfloat16)             # (n_tok, V)
    emb = jnp.dot(onehot, emb_tbl_ref[...],
                  preferred_element_type=jnp.float32)       # (n_tok, emb)
    emb_bf = emb.astype(jnp.bfloat16)

    # ---- hoisted encoder input-to-hidden projection (+ bias) -> 3-D scratch --
    enc_gx = (jnp.dot(emb_bf, enc_wih_ref[...],
                      preferred_element_type=jnp.float32)
              + enc_b_ref[...])                             # (n_tok, 4*lane)
    enc_gx_ref[...] = enc_gx.reshape(seq_len, mb_pad, 4 * lane)

    def lstm_cell(gates, c_prev):
        # Gate layout [i | f | o | g]; each gate owns a 128-lane block so all
        # slices are lane-aligned.  One sigmoid slab + one tanh (2 EUP pushes).
        sig = jax.nn.sigmoid(gates[:, :3 * lane])           # i, f, o slab
        g = jnp.tanh(gates[:, 3 * lane:4 * lane])
        i = sig[:, 0 * lane:1 * lane]
        f = sig[:, 1 * lane:2 * lane]
        o = sig[:, 2 * lane:3 * lane]
        c_new = f * c_prev + i * g                          # padded lanes stay 0
        h_new = o * jnp.tanh(c_new)
        return h_new, c_new

    # ---------------- encoder LSTM (fully unrolled; seq_len static) ----------
    h = jnp.zeros((mb_pad, lane), jnp.float32)
    c = jnp.zeros((mb_pad, lane), jnp.float32)
    for t in range(seq_len):
        gates = enc_gx_ref[t] + jnp.dot(h.astype(jnp.bfloat16), enc_whh_ref[...],
                                        preferred_element_type=jnp.float32)
        h, c = lstm_cell(gates, c)

    # ---------------- encoder_fc (padded rows/cols are zero -> exact) --------
    h_fc = (jnp.dot(h.astype(jnp.bfloat16), enc_fc_w_ref[...],
                    preferred_element_type=jnp.float32)
            + enc_fc_b_ref[...])                            # (mb_pad, 128): lanes [0,H) real

    # init_h = concat(h_fc, z): z is pre-placed in lanes [H_DIM, H_DIM+Z_DIM),
    # so the loop-invariant generator gate term is ONE matmul (+ bias).
    hz = (h_fc + z_ref[...]).astype(jnp.bfloat16)           # (mb_pad, 128)
    const = (jnp.dot(hz, gen_wih_hz_ref[...],
                     preferred_element_type=jnp.float32)
             + gen_b_ref[...])                              # (mb_pad, 4*lane)

    # ---- hoisted generator input projection, const folded in (off serial path)
    gen_gx = jnp.dot(emb_bf, gen_wih_x_ref[...],
                     preferred_element_type=jnp.float32)    # (n_tok, 4*lane)
    gen_gx_ref[...] = gen_gx.reshape(seq_len, mb_pad, 4 * lane) + const[None]

    # ---------------- generator LSTM (fully unrolled) ------------------------
    h = jnp.zeros((mb_pad, lane), jnp.float32)
    c = jnp.zeros((mb_pad, lane), jnp.float32)
    for t in range(seq_len):
        gates = gen_gx_ref[t] + jnp.dot(h.astype(jnp.bfloat16), gen_whh_ref[...],
                                        preferred_element_type=jnp.float32)
        h, c = lstm_cell(gates, c)
        hs_ref[t] = h                                       # aligned full-tile store

    # ---------------- generator_fc + masked mean cross-entropy ---------------
    hs_all = hs_ref[...].reshape(n_tok, lane)
    logits = (jnp.dot(hs_all.astype(jnp.bfloat16), gen_fc_w_ref[...],
                      preferred_element_type=jnp.float32)
              + gen_fc_b_ref[...])                          # (n_tok, V)
    m = jnp.max(logits, axis=-1, keepdims=True)
    lse = m + jnp.log(jnp.sum(jnp.exp(logits - m), axis=-1, keepdims=True))
    tgt = tgt_ref[...]                                      # (n_tok, 1) int32
    tgt_logit = jnp.sum(jnp.where(vcol == tgt, logits, 0.0),
                        axis=-1, keepdims=True)             # (n_tok, 1)
    per_tok = (lse - tgt_logit) * mask_ref[...]             # zero padded batch rows
    loss_ref[...] = (jnp.sum(per_tok, axis=(0, 1), keepdims=True)
                     / float(seq_len * mbsize))


# ------------------------------ parameters -----------------------------------
def init_params(key):
    """Deterministic synthetic parameters (PyTorch-style uniform init)."""
    ks = jax.random.split(key, 16)

    def u(k, shape, scale):
        return jax.random.uniform(k, shape, jnp.float32, -scale, scale)

    emb = u(ks[0], (N_VOCAB, EMB_DIM), 0.1)
    emb = emb.at[PAD_IDX].set(0.0)            # padding_idx row is zero

    s_enc = 1.0 / math.sqrt(H_DIM)
    s_gen = 1.0 / math.sqrt(H_GEN)
    params = dict(
        word_emb=emb,
        # encoder LSTM (input EMB_DIM, hidden H_DIM), weights transposed (in, out)
        enc_wih_t=u(ks[1], (EMB_DIM, 4 * H_DIM), s_enc),
        enc_whh_t=u(ks[2], (H_DIM, 4 * H_DIM), s_enc),
        enc_b=u(ks[3], (1, 4 * H_DIM), s_enc) + u(ks[4], (1, 4 * H_DIM), s_enc),
        # encoder_fc: Linear(H_DIM, H_DIM)
        enc_fc_w_t=u(ks[5], (H_DIM, H_DIM), s_enc),
        enc_fc_b=u(ks[6], (1, H_DIM), s_enc),
        # generator LSTM (input EMB_DIM + H_DIM + Z_DIM, hidden H_GEN)
        gen_wih_t=u(ks[7], (EMB_DIM + H_DIM + Z_DIM, 4 * H_GEN), s_gen),
        gen_whh_t=u(ks[8], (H_GEN, 4 * H_GEN), s_gen),
        gen_b=u(ks[9], (1, 4 * H_GEN), s_gen) + u(ks[10], (1, 4 * H_GEN), s_gen),
        # generator_fc: Linear(H_GEN, N_VOCAB)
        gen_fc_w_t=u(ks[11], (H_GEN, N_VOCAB), s_gen),
        gen_fc_b=u(ks[12], (1, N_VOCAB), s_gen),
    )
    return params


def _pad_gate_cols(w_t, hdim):
    """(in, 4*hdim) PyTorch gate order -> (in, 4*LANE) kernel order [i,f,o,g],
    each gate zero-padded to its own 128-lane block."""
    in_dim = w_t.shape[0]
    w4 = w_t.reshape(in_dim, 4, hdim)[:, GATE_PERM, :]
    out = jnp.zeros((in_dim, 4, LANE), w_t.dtype).at[:, :, :hdim].set(w4)
    return out.reshape(in_dim, 4 * LANE)


def _pad_rows(w, n_rows):
    out = jnp.zeros((n_rows,) + w.shape[1:], w.dtype)
    return out.at[: w.shape[0]].set(w)


def _pad_cols(w, n_cols):
    out = jnp.zeros(w.shape[:-1] + (n_cols,), w.dtype)
    return out.at[..., : w.shape[-1]].set(w)


def prepare_kernel_params(params):
    """Reorder/pad gate blocks, split generator Wih, cast matmul weights to bf16."""
    bf = jnp.bfloat16
    gwih = params["gen_wih_t"]                       # rows: [emb | h_fc | z]
    return dict(
        emb_tbl=params["word_emb"].astype(bf),                                       # (128, 32)
        enc_wih=_pad_gate_cols(params["enc_wih_t"], H_DIM).astype(bf),               # (32, 512)
        enc_whh=_pad_rows(_pad_gate_cols(params["enc_whh_t"], H_DIM), LANE).astype(bf),   # (128, 512)
        enc_b=_pad_gate_cols(params["enc_b"], H_DIM),                                # (1, 512) f32
        enc_fc_w=_pad_rows(_pad_cols(params["enc_fc_w_t"], LANE), LANE).astype(bf),  # (128, 128)
        enc_fc_b=_pad_cols(params["enc_fc_b"], LANE),                                # (1, 128) f32
        gen_wih_x=_pad_gate_cols(gwih[:EMB_DIM], H_GEN).astype(bf),                  # (32, 512)
        gen_wih_hz=_pad_rows(_pad_gate_cols(gwih[EMB_DIM:], H_GEN), LANE).astype(bf),  # (128, 512)
        gen_whh=_pad_rows(_pad_gate_cols(params["gen_whh_t"], H_GEN), LANE).astype(bf),   # (128, 512)
        gen_b=_pad_gate_cols(params["gen_b"], H_GEN),                                # (1, 512) f32
        gen_fc_w=_pad_rows(params["gen_fc_w_t"], LANE).astype(bf),                   # (128, 128)
        gen_fc_b=params["gen_fc_b"],                                                 # (1, 128) f32
    )


# ------------------------------ wrapper --------------------------------------
def model_forward(sentence, params, noise_key):
    """sentence: (seq_len, mbsize) int32 word ids.  Returns scalar recon loss."""
    seq_len, mbsize = sentence.shape
    kp = prepare_kernel_params(params)

    # Pad batch columns to MB_PAD (padded rows carry PAD ids and are masked out).
    pad_cols = jnp.full((seq_len, MB_PAD - mbsize), PAD_IDX, dtype=sentence.dtype)
    ids_pad = jnp.concatenate([sentence, pad_cols], axis=1)              # (S, MB_PAD)

    # Shifted targets with PAD appended, then batch-padded.
    pad_row = jnp.full((1, mbsize), PAD_IDX, dtype=sentence.dtype)
    dec_targets = jnp.concatenate([sentence[1:], pad_row], axis=0)       # (S, mb)
    tgt_pad = jnp.concatenate([dec_targets, pad_cols], axis=1)           # (S, MB_PAD)

    ids_flat = ids_pad.reshape(-1, 1).astype(jnp.int32)                  # (S*MB_PAD, 1)
    tgt_flat = tgt_pad.reshape(-1, 1).astype(jnp.int32)                  # (S*MB_PAD, 1)

    # Validity mask over padded batch rows; pure function of static shapes
    # (constant-folded under jit, so it adds no runtime XLA ops).
    mask = (jnp.arange(MB_PAD) < mbsize).astype(jnp.float32)
    mask = jnp.tile(mask, (seq_len,)).reshape(-1, 1)                     # (S*MB_PAD, 1)

    # z ~ N(0, I), pre-placed in lanes [H_DIM, H_DIM+Z_DIM) of a full-lane row.
    z = jax.random.normal(noise_key, (mbsize, Z_DIM), dtype=jnp.float32)
    z_pad = jnp.zeros((MB_PAD, LANE), jnp.float32)
    z_pad = z_pad.at[:mbsize, H_DIM:H_DIM + Z_DIM].set(z)

    loss = pl.pallas_call(
        functools.partial(fused_vae_kernel, seq_len=seq_len, mbsize=mbsize,
                          mb_pad=MB_PAD, lane=LANE, n_vocab=N_VOCAB),
        out_shape=jax.ShapeDtypeStruct((1, 1), jnp.float32),
        in_specs=[_vmem()] * 16,
        out_specs=_vmem(),
        scratch_shapes=[pltpu.VMEM((seq_len, MB_PAD, 4 * LANE), jnp.float32),  # enc gx
                        pltpu.VMEM((seq_len, MB_PAD, 4 * LANE), jnp.float32),  # gen gx
                        pltpu.VMEM((seq_len, MB_PAD, LANE), jnp.float32)],     # gen hs
    )(ids_flat, tgt_flat, mask, z_pad, kp["emb_tbl"],
      kp["enc_wih"], kp["enc_whh"], kp["enc_b"],
      kp["enc_fc_w"], kp["enc_fc_b"],
      kp["gen_wih_x"], kp["gen_wih_hz"],
      kp["gen_whh"], kp["gen_b"], kp["gen_fc_w"], kp["gen_fc_b"])

    return loss[0, 0]


# ------------------------------- main ----------------------------------------
if __name__ == "__main__":
    root = jax.random.PRNGKey(0)
    k_param, k_sent, k_noise = jax.random.split(root, 3)

    params = init_params(k_param)
    sentence = jax.random.randint(k_sent, (SEQ_LEN, MBSIZE), 0, N_VOCAB,
                                  dtype=jnp.int32)

    fwd = jax.jit(model_forward)
    recon_loss = fwd(sentence, params, k_noise)
    recon_loss = jax.block_until_ready(recon_loss)

    assert recon_loss.shape == ()
    assert bool(jnp.isfinite(recon_loss))
    print("KERNEL_OK")
</pallas_src>

<mosaic_0001>
module attributes {stable_mosaic.version = 11 : i64} {
  func.func @fused_vae_kernel(%arg0: memref<64x1xi32, #tpu.memory_space<vmem>>, %arg1: memref<64x1xi32, #tpu.memory_space<vmem>>, %arg2: memref<64x1xf32, #tpu.memory_space<vmem>>, %arg3: memref<8x128xf32, #tpu.memory_space<vmem>>, %arg4: memref<128x32xbf16, #tpu.memory_space<vmem>>, %arg5: memref<32x512xbf16, #tpu.memory_space<vmem>>, %arg6: memref<128x512xbf16, #tpu.memory_space<vmem>>, %arg7: memref<1x512xf32, #tpu.memory_space<vmem>>, %arg8: memref<128x128xbf16, #tpu.memory_space<vmem>>, %arg9: memref<1x128xf32, #tpu.memory_space<vmem>>, %arg10: memref<32x512xbf16, #tpu.memory_space<vmem>>, %arg11: memref<128x512xbf16, #tpu.memory_space<vmem>>, %arg12: memref<128x512xbf16, #tpu.memory_space<vmem>>, %arg13: memref<1x512xf32, #tpu.memory_space<vmem>>, %arg14: memref<128x128xbf16, #tpu.memory_space<vmem>>, %arg15: memref<1x128xf32, #tpu.memory_space<vmem>>, %arg16: memref<1x1xf32, #tpu.memory_space<vmem>>, %arg17: memref<8x8x512xf32, #tpu.memory_space<vmem>>, %arg18: memref<8x8x512xf32, #tpu.memory_space<vmem>>, %arg19: memref<8x8x128xf32, #tpu.memory_space<vmem>>) attributes {dimension_semantics = [], scalar_prefetch = 0 : i64, scratch_operands = 3 : i64, tpu.core_type = #tpu.core_type<tc>} {
    %c0 = arith.constant 0 : index
    %c0_0 = arith.constant 0 : index
    %0 = vector.load %arg0[%c0, %c0_0] : memref<64x1xi32, #tpu.memory_space<vmem>>, vector<64x1xi32>
    %1 = tpu.iota {dimensions = array<i32: 1>} : vector<64x128xi32>
    %2 = vector.broadcast %0 : vector<64x1xi32> to vector<64x128xi32>
    %3 = arith.cmpi eq, %1, %2 : vector<64x128xi32>
    %4 = arith.extui %3 : vector<64x128xi1> to vector<64x128xi32>
    %5 = arith.sitofp %4 : vector<64x128xi32> to vector<64x128xf32>
    %6 = arith.truncf %5 : vector<64x128xf32> to vector<64x128xbf16>
    %c0_1 = arith.constant 0 : index
    %c0_2 = arith.constant 0 : index
    %7 = vector.load %arg4[%c0_1, %c0_2] : memref<128x32xbf16, #tpu.memory_space<vmem>>, vector<128x32xbf16>
    %cst = arith.constant dense<0.000000e+00> : vector<64x32xf32>
    %8 = tpu.matmul %6, %7, %cst {dimension_numbers = #tpu.dot_dimension_numbers<[1], [0], [0], [1], [0, 0, 1, 1], [], []>} : vector<64x128xbf16>, vector<128x32xbf16>, vector<64x32xf32> -> vector<64x32xf32>
    %9 = arith.truncf %8 : vector<64x32xf32> to vector<64x32xbf16>
    %c0_3 = arith.constant 0 : index
    %c0_4 = arith.constant 0 : index
    %10 = vector.load %arg5[%c0_3, %c0_4] : memref<32x512xbf16, #tpu.memory_space<vmem>>, vector<32x512xbf16>
    %cst_5 = arith.constant dense<0.000000e+00> : vector<64x512xf32>
    %11 = tpu.matmul %9, %10, %cst_5 {dimension_numbers = #tpu.dot_dimension_numbers<[1], [0], [0], [1], [0, 0, 1, 1], [], []>} : vector<64x32xbf16>, vector<32x512xbf16>, vector<64x512xf32> -> vector<64x512xf32>
    %c0_6 = arith.constant 0 : index
    %c0_7 = arith.constant 0 : index
    %12 = vector.load %arg7[%c0_6, %c0_7] : memref<1x512xf32, #tpu.memory_space<vmem>>, vector<1x512xf32>
    %13 = vector.broadcast %12 : vector<1x512xf32> to vector<64x512xf32>
    %14 = arith.addf %11, %13 : vector<64x512xf32>
    %15 = vector.shape_cast %14 : vector<64x512xf32> to vector<8x8x512xf32>
    %c0_8 = arith.constant 0 : index
    %c0_9 = arith.constant 0 : index
    %c0_10 = arith.constant 0 : index
    %16 = vector.load %arg17[%c0_8, %c0_9, %c0_10] : memref<8x8x512xf32, #tpu.memory_space<vmem>>, vector<8x8x512xf32>
    tpu.vector_store %arg17[%c0_8, %c0_9, %c0_10], %15 {strides = array<i32>} : memref<8x8x512xf32, #tpu.memory_space<vmem>>, vector<8x8x512xf32>,
    %cst_11 = arith.constant 0.000000e+00 : f32
    %17 = vector.broadcast %cst_11 : f32 to vector<8x128xf32>
    %cst_12 = arith.constant 0.000000e+00 : f32
    %18 = vector.broadcast %cst_12 : f32 to vector<8x128xf32>
    %c0_13 = arith.constant 0 : index
    %c0_14 = arith.constant 0 : index
    %c0_15 = arith.constant 0 : index
    %19 = vector.load %arg17[%c0_13, %c0_14, %c0_15] : memref<8x8x512xf32, #tpu.memory_space<vmem>>, vector<1x8x512xf32>
    %20 = vector.shape_cast %19 : vector<1x8x512xf32> to vector<8x512xf32>
    %21 = arith.truncf %17 : vector<8x128xf32> to vector<8x128xbf16>
    %c0_16 = arith.constant 0 : index
    %c0_17 = arith.constant 0 : index
    %22 = vector.load %arg6[%c0_16, %c0_17] : memref<128x512xbf16, #tpu.memory_space<vmem>>, vector<128x512xbf16>
    %cst_18 = arith.constant dense<0.000000e+00> : vector<8x512xf32>
    %23 = tpu.matmul %21, %22, %cst_18 {dimension_numbers = #tpu.dot_dimension_numbers<[1], [0], [0], [1], [0, 0, 1, 1], [], []>} : vector<8x128xbf16>, vector<128x512xbf16>, vector<8x512xf32> -> vector<8x512xf32>
    %24 = arith.addf %20, %23 : vector<8x512xf32>
    %25 = vector.extract_strided_slice %24 {offsets = [0, 0], sizes = [8, 384], strides = [1, 1]} : vector<8x512xf32> to vector<8x384xf32>
    %26 = arith.negf %25 : vector<8x384xf32>
    %27 = math.exp %26 : vector<8x384xf32>
    %cst_19 = arith.constant 1.000000e+00 : f32
    %28 = vector.broadcast %cst_19 : f32 to vector<8x384xf32>
    %29 = arith.addf %28, %27 : vector<8x384xf32>
    %30 = arith.divf %28, %29 : vector<8x384xf32>
    %31 = vector.extract_strided_slice %24 {offsets = [0, 384], sizes = [8, 128], strides = [1, 1]} : vector<8x512xf32> to vector<8x128xf32>
    %32 = math.tanh %31 : vector<8x128xf32>
    %33 = vector.extract_strided_slice %30 {offsets = [0, 0], sizes = [8, 128], strides = [1, 1]} : vector<8x384xf32> to vector<8x128xf32>
    %34 = vector.extract_strided_slice %30 {offsets = [0, 128], sizes = [8, 128], strides = [1, 1]} : vector<8x384xf32> to vector<8x128xf32>
    %35 = vector.extract_strided_slice %30 {offsets = [0, 256], sizes = [8, 128], strides = [1, 1]} : vector<8x384xf32> to vector<8x128xf32>
    %36 = arith.mulf %34, %18 : vector<8x128xf32>
    %37 = arith.mulf %33, %32 : vector<8x128xf32>
    %38 = arith.addf %36, %37 : vector<8x128xf32>
    %39 = math.tanh %38 : vector<8x128xf32>
    %40 = arith.mulf %35, %39 : vector<8x128xf32>
    %c1 = arith.constant 1 : index
    %c0_20 = arith.constant 0 : index
    %c0_21 = arith.constant 0 : index
    %41 = vector.load %arg17[%c1, %c0_20, %c0_21] : memref<8x8x512xf32, #tpu.memory_space<vmem>>, vector<1x8x512xf32>
    %42 = vector.shape_cast %41 : vector<1x8x512xf32> to vector<8x512xf32>
    %43 = arith.truncf %40 : vector<8x128xf32> to vector<8x128xbf16>
    %c0_22 = arith.constant 0 : index
    %c0_23 = arith.constant 0 : index
    %44 = vector.load %arg6[%c0_22, %c0_23] : memref<128x512xbf16, #tpu.memory_space<vmem>>, vector<128x512xbf16>
    %cst_24 = arith.constant dense<0.000000e+00> : vector<8x512xf32>
    %45 = tpu.matmul %43, %44, %cst_24 {dimension_numbers = #tpu.dot_dimension_numbers<[1], [0], [0], [1], [0, 0, 1, 1], [], []>} : vector<8x128xbf16>, vector<128x512xbf16>, vector<8x512xf32> -> vector<8x512xf32>
    %46 = arith.addf %42, %45 : vector<8x512xf32>
    %47 = vector.extract_strided_slice %46 {offsets = [0, 0], sizes = [8, 384], strides = [1, 1]} : vector<8x512xf32> to vector<8x384xf32>
    %48 = arith.negf %47 : vector<8x384xf32>
    %49 = math.exp %48 : vector<8x384xf32>
    %cst_25 = arith.constant 1.000000e+00 : f32
    %50 = vector.broadcast %cst_25 : f32 to vector<8x384xf32>
    %51 = arith.addf %50, %49 : vector<8x384xf32>
    %52 = arith.divf %50, %51 : vector<8x384xf32>
    %53 = vector.extract_strided_slice %46 {offsets = [0, 384], sizes = [8, 128], strides = [1, 1]} : vector<8x512xf32> to vector<8x128xf32>
    %54 = math.tanh %53 : vector<8x128xf32>
    %55 = vector.extract_strided_slice %52 {offsets = [0, 0], sizes = [8, 128], strides = [1, 1]} : vector<8x384xf32> to vector<8x128xf32>
    %56 = vector.extract_strided_slice %52 {offsets = [0, 128], sizes = [8, 128], strides = [1, 1]} : vector<8x384xf32> to vector<8x128xf32>
    %57 = vector.extract_strided_slice %52 {offsets = [0, 256], sizes = [8, 128], strides = [1, 1]} : vector<8x384xf32> to vector<8x128xf32>
    %58 = arith.mulf %56, %38 : vector<8x128xf32>
    %59 = arith.mulf %55, %54 : vector<8x128xf32>
    %60 = arith.addf %58, %59 : vector<8x128xf32>
    %61 = math.tanh %60 : vector<8x128xf32>
    %62 = arith.mulf %57, %61 : vector<8x128xf32>
    %c2 = arith.constant 2 : index
    %c0_26 = arith.constant 0 : index
    %c0_27 = arith.constant 0 : index
    %63 = vector.load %arg17[%c2, %c0_26, %c0_27] : memref<8x8x512xf32, #tpu.memory_space<vmem>>, vector<1x8x512xf32>
    %64 = vector.shape_cast %63 : vector<1x8x512xf32> to vector<8x512xf32>
    %65 = arith.truncf %62 : vector<8x128xf32> to vector<8x128xbf16>
    %c0_28 = arith.constant 0 : index
    %c0_29 = arith.constant 0 : index
    %66 = vector.load %arg6[%c0_28, %c0_29] : memref<128x512xbf16, #tpu.memory_space<vmem>>, vector<128x512xbf16>
    %cst_30 = arith.constant dense<0.000000e+00> : vector<8x512xf32>
    %67 = tpu.matmul %65, %66, %cst_30 {dimension_numbers = #tpu.dot_dimension_numbers<[1], [0], [0], [1], [0, 0, 1, 1], [], []>} : vector<8x128xbf16>, vector<128x512xbf16>, vector<8x512xf32> -> vector<8x512xf32>
    %68 = arith.addf %64, %67 : vector<8x512xf32>
    %69 = vector.extract_strided_slice %68 {offsets = [0, 0], sizes = [8, 384], strides = [1, 1]} : vector<8x512xf32> to vector<8x384xf32>
    %70 = arith.negf %69 : vector<8x384xf32>
    %71 = math.exp %70 : vector<8x384xf32>
    %cst_31 = arith.constant 1.000000e+00 : f32
    %72 = vector.broadcast %cst_31 : f32 to vector<8x384xf32>
    %73 = arith.addf %72, %71 : vector<8x384xf32>
    %74 = arith.divf %72, %73 : vector<8x384xf32>
    %75 = vector.extract_strided_slice %68 {offsets = [0, 384], sizes = [8, 128], strides = [1, 1]} : vector<8x512xf32> to vector<8x128xf32>
    %76 = math.tanh %75 : vector<8x128xf32>
    %77 = vector.extract_strided_slice %74 {offsets = [0, 0], sizes = [8, 128], strides = [1, 1]} : vector<8x384xf32> to vector<8x128xf32>
    %78 = vector.extract_strided_slice %74 {offsets = [0, 128], sizes = [8, 128], strides = [1, 1]} : vector<8x384xf32> to vector<8x128xf32>
    %79 = vector.extract_strided_slice %74 {offsets = [0, 256], sizes = [8, 128], strides = [1, 1]} : vector<8x384xf32> to vector<8x128xf32>
    %80 = arith.mulf %78, %60 : vector<8x128xf32>
    %81 = arith.mulf %77, %76 : vector<8x128xf32>
    %82 = arith.addf %80, %81 : vector<8x128xf32>
    %83 = math.tanh %82 : vector<8x128xf32>
    %84 = arith.mulf %79, %83 : vector<8x128xf32>
    %c3 = arith.constant 3 : index
    %c0_32 = arith.constant 0 : index
    %c0_33 = arith.constant 0 : index
    %85 = vector.load %arg17[%c3, %c0_32, %c0_33] : memref<8x8x512xf32, #tpu.memory_space<vmem>>, vector<1x8x512xf32>
    %86 = vector.shape_cast %85 : vector<1x8x512xf32> to vector<8x512xf32>
    %87 = arith.truncf %84 : vector<8x128xf32> to vector<8x128xbf16>
    %c0_34 = arith.constant 0 : index
    %c0_35 = arith.constant 0 : index
    %88 = vector.load %arg6[%c0_34, %c0_35] : memref<128x512xbf16, #tpu.memory_space<vmem>>, vector<128x512xbf16>
    %cst_36 = arith.constant dense<0.000000e+00> : vector<8x512xf32>
    %89 = tpu.matmul %87, %88, %cst_36 {dimension_numbers = #tpu.dot_dimension_numbers<[1], [0], [0], [1], [0, 0, 1, 1], [], []>} : vector<8x128xbf16>, vector<128x512xbf16>, vector<8x512xf32> -> vector<8x512xf32>
    %90 = arith.addf %86, %89 : vector<8x512xf32>
    %91 = vector.extract_strided_slice %90 {offsets = [0, 0], sizes = [8, 384], strides = [1, 1]} : vector<8x512xf32> to vector<8x384xf32>
    %92 = arith.negf %91 : vector<8x384xf32>
    %93 = math.exp %92 : vector<8x384xf32>
    %cst_37 = arith.constant 1.000000e+00 : f32
    %94 = vector.broadcast %cst_37 : f32 to vector<8x384xf32>
    %95 = arith.addf %94, %93 : vector<8x384xf32>
    %96 = arith.divf %94, %95 : vector<8x384xf32>
    %97 = vector.extract_strided_slice %90 {offsets = [0, 384], sizes = [8, 128], strides = [1, 1]} : vector<8x512xf32> to vector<8x128xf32>
    %98 = math.tanh %97 : vector<8x128xf32>
    %99 = vector.extract_strided_slice %96 {offsets = [0, 0], sizes = [8, 128], strides = [1, 1]} : vector<8x384xf32> to vector<8x128xf32>
    %100 = vector.extract_strided_slice %96 {offsets = [0, 128], sizes = [8, 128], strides = [1, 1]} : vector<8x384xf32> to vector<8x128xf32>
    %101 = vector.extract_strided_slice %96 {offsets = [0, 256], sizes = [8, 128], strides = [1, 1]} : vector<8x384xf32> to vector<8x128xf32>
    %102 = arith.mulf %100, %82 : vector<8x128xf32>
    %103 = arith.mulf %99, %98 : vector<8x128xf32>
    %104 = arith.addf %102, %103 : vector<8x128xf32>
    %105 = math.tanh %104 : vector<8x128xf32>
    %106 = arith.mulf %101, %105 : vector<8x128xf32>
    %c4 = arith.constant 4 : index
    %c0_38 = arith.constant 0 : index
    %c0_39 = arith.constant 0 : index
    %107 = vector.load %arg17[%c4, %c0_38, %c0_39] : memref<8x8x512xf32, #tpu.memory_space<vmem>>, vector<1x8x512xf32>
    %108 = vector.shape_cast %107 : vector<1x8x512xf32> to vector<8x512xf32>
    %109 = arith.truncf %106 : vector<8x128xf32> to vector<8x128xbf16>
    %c0_40 = arith.constant 0 : index
    %c0_41 = arith.constant 0 : index
    %110 = vector.load %arg6[%c0_40, %c0_41] : memref<128x512xbf16, #tpu.memory_space<vmem>>, vector<128x512xbf16>
    %cst_42 = arith.constant dense<0.000000e+00> : vector<8x512xf32>
    %111 = tpu.matmul %109, %110, %cst_42 {dimension_numbers = #tpu.dot_dimension_numbers<[1], [0], [0], [1], [0, 0, 1, 1], [], []>} : vector<8x128xbf16>, vector<128x512xbf16>, vector<8x512xf32> -> vector<8x512xf32>
    %112 = arith.addf %108, %111 : vector<8x512xf32>
    %113 = vector.extract_strided_slice %112 {offsets = [0, 0], sizes = [8, 384], strides = [1, 1]} : vector<8x512xf32> to vector<8x384xf32>
    %114 = arith.negf %113 : vector<8x384xf32>
    %115 = math.exp %114 : vector<8x384xf32>
    %cst_43 = arith.constant 1.000000e+00 : f32
    %116 = vector.broadcast %cst_43 : f32 to vector<8x384xf32>
    %117 = arith.addf %116, %115 : vector<8x384xf32>
    %118 = arith.divf %116, %117 : vector<8x384xf32>
    %119 = vector.extract_strided_slice %112 {offsets = [0, 384], sizes = [8, 128], strides = [1, 1]} : vector<8x512xf32> to vector<8x128xf32>
    %120 = math.tanh %119 : vector<8x128xf32>
    %121 = vector.extract_strided_slice %118 {offsets = [0, 0], sizes = [8, 128], strides = [1, 1]} : vector<8x384xf32> to vector<8x128xf32>
    %122 = vector.extract_strided_slice %118 {offsets = [0, 128], sizes = [8, 128], strides = [1, 1]} : vector<8x384xf32> to vector<8x128xf32>
    %123 = vector.extract_strided_slice %118 {offsets = [0, 256], sizes = [8, 128], strides = [1, 1]} : vector<8x384xf32> to vector<8x128xf32>
    %124 = arith.mulf %122, %104 : vector<8x128xf32>
    %125 = arith.mulf %121, %120 : vector<8x128xf32>
    %126 = arith.addf %124, %125 : vector<8x128xf32>
    %127 = math.tanh %126 : vector<8x128xf32>
    %128 = arith.mulf %123, %127 : vector<8x128xf32>
    %c5 = arith.constant 5 : index
    %c0_44 = arith.constant 0 : index
    %c0_45 = arith.constant 0 : index
    %129 = vector.load %arg17[%c5, %c0_44, %c0_45] : memref<8x8x512xf32, #tpu.memory_space<vmem>>, vector<1x8x512xf32>
    %130 = vector.shape_cast %129 : vector<1x8x512xf32> to vector<8x512xf32>
    %131 = arith.truncf %128 : vector<8x128xf32> to vector<8x128xbf16>
    %c0_46 = arith.constant 0 : index
    %c0_47 = arith.constant 0 : index
    %132 = vector.load %arg6[%c0_46, %c0_47] : memref<128x512xbf16, #tpu.memory_space<vmem>>, vector<128x512xbf16>
    %cst_48 = arith.constant dense<0.000000e+00> : vector<8x512xf32>
    %133 = tpu.matmul %131, %132, %cst_48 {dimension_numbers = #tpu.dot_dimension_numbers<[1], [0], [0], [1], [0, 0, 1, 1], [], []>} : vector<8x128xbf16>, vector<128x512xbf16>, vector<8x512xf32> -> vector<8x512xf32>
    %134 = arith.addf %130, %133 : vector<8x512xf32>
    %135 = vector.extract_strided_slice %134 {offsets = [0, 0], sizes = [8, 384], strides = [1, 1]} : vector<8x512xf32> to vector<8x384xf32>
    %136 = arith.negf %135 : vector<8x384xf32>
    %137 = math.exp %136 : vector<8x384xf32>
    %cst_49 = arith.constant 1.000000e+00 : f32
    %138 = vector.broadcast %cst_49 : f32 to vector<8x384xf32>
    %139 = arith.addf %138, %137 : vector<8x384xf32>
    %140 = arith.divf %138, %139 : vector<8x384xf32>
    %141 = vector.extract_strided_slice %134 {offsets = [0, 384], sizes = [8, 128], strides = [1, 1]} : vector<8x512xf32> to vector<8x128xf32>
    %142 = math.tanh %141 : vector<8x128xf32>
    %143 = vector.extract_strided_slice %140 {offsets = [0, 0], sizes = [8, 128], strides = [1, 1]} : vector<8x384xf32> to vector<8x128xf32>
    %144 = vector.extract_strided_slice %140 {offsets = [0, 128], sizes = [8, 128], strides = [1, 1]} : vector<8x384xf32> to vector<8x128xf32>
    %145 = vector.extract_strided_slice %140 {offsets = [0, 256], sizes = [8, 128], strides = [1, 1]} : vector<8x384xf32> to vector<8x128xf32>
    %146 = arith.mulf %144, %126 : vector<8x128xf32>
    %147 = arith.mulf %143, %142 : vector<8x128xf32>
    %148 = arith.addf %146, %147 : vector<8x128xf32>
    %149 = math.tanh %148 : vector<8x128xf32>
    %150 = arith.mulf %145, %149 : vector<8x128xf32>
    %c6 = arith.constant 6 : index
    %c0_50 = arith.constant 0 : index
    %c0_51 = arith.constant 0 : index
    %151 = vector.load %arg17[%c6, %c0_50, %c0_51] : memref<8x8x512xf32, #tpu.memory_space<vmem>>, vector<1x8x512xf32>
    %152 = vector.shape_cast %151 : vector<1x8x512xf32> to vector<8x512xf32>
    %153 = arith.truncf %150 : vector<8x128xf32> to vector<8x128xbf16>
    %c0_52 = arith.constant 0 : index
    %c0_53 = arith.constant 0 : index
    %154 = vector.load %arg6[%c0_52, %c0_53] : memref<128x512xbf16, #tpu.memory_space<vmem>>, vector<128x512xbf16>
    %cst_54 = arith.constant dense<0.000000e+00> : vector<8x512xf32>
    %155 = tpu.matmul %153, %154, %cst_54 {dimension_numbers = #tpu.dot_dimension_numbers<[1], [0], [0], [1], [0, 0, 1, 1], [], []>} : vector<8x128xbf16>, vector<128x512xbf16>, vector<8x512xf32> -> vector<8x512xf32>
    %156 = arith.addf %152, %155 : vector<8x512xf32>
    %157 = vector.extract_strided_slice %156 {offsets = [0, 0], sizes = [8, 384], strides = [1, 1]} : vector<8x512xf32> to vector<8x384xf32>
    %158 = arith.negf %157 : vector<8x384xf32>
    %159 = math.exp %158 : vector<8x384xf32>
    %cst_55 = arith.constant 1.000000e+00 : f32
    %160 = vector.broadcast %cst_55 : f32 to vector<8x384xf32>
    %161 = arith.addf %160, %159 : vector<8x384xf32>
    %162 = arith.divf %160, %161 : vector<8x384xf32>
    %163 = vector.extract_strided_slice %156 {offsets = [0, 384], sizes = [8, 128], strides = [1, 1]} : vector<8x512xf32> to vector<8x128xf32>
    %164 = math.tanh %163 : vector<8x128xf32>
    %165 = vector.extract_strided_slice %162 {offsets = [0, 0], sizes = [8, 128], strides = [1, 1]} : vector<8x384xf32> to vector<8x128xf32>
    %166 = vector.extract_strided_slice %162 {offsets = [0, 128], sizes = [8, 128], strides = [1, 1]} : vector<8x384xf32> to vector<8x128xf32>
    %167 = vector.extract_strided_slice %162 {offsets = [0, 256], sizes = [8, 128], strides = [1, 1]} : vector<8x384xf32> to vector<8x128xf32>
    %168 = arith.mulf %166, %148 : vector<8x128xf32>
    %169 = arith.mulf %165, %164 : vector<8x128xf32>
    %170 = arith.addf %168, %169 : vector<8x128xf32>
    %171 = math.tanh %170 : vector<8x128xf32>
    %172 = arith.mulf %167, %171 : vector<8x128xf32>
    %c7 = arith.constant 7 : index
    %c0_56 = arith.constant 0 : index
    %c0_57 = arith.constant 0 : index
    %173 = vector.load %arg17[%c7, %c0_56, %c0_57] : memref<8x8x512xf32, #tpu.memory_space<vmem>>, vector<1x8x512xf32>
    %174 = vector.shape_cast %173 : vector<1x8x512xf32> to vector<8x512xf32>
    %175 = arith.truncf %172 : vector<8x128xf32> to vector<8x128xbf16>
    %c0_58 = arith.constant 0 : index
    %c0_59 = arith.constant 0 : index
    %176 = vector.load %arg6[%c0_58, %c0_59] : memref<128x512xbf16, #tpu.memory_space<vmem>>, vector<128x512xbf16>
    %cst_60 = arith.constant dense<0.000000e+00> : vector<8x512xf32>
    %177 = tpu.matmul %175, %176, %cst_60 {dimension_numbers = #tpu.dot_dimension_numbers<[1], [0], [0], [1], [0, 0, 1, 1], [], []>} : vector<8x128xbf16>, vector<128x512xbf16>, vector<8x512xf32> -> vector<8x512xf32>
    %178 = arith.addf %174, %177 : vector<8x512xf32>
    %179 = vector.extract_strided_slice %178 {offsets = [0, 0], sizes = [8, 384], strides = [1, 1]} : vector<8x512xf32> to vector<8x384xf32>
    %180 = arith.negf %179 : vector<8x384xf32>
    %181 = math.exp %180 : vector<8x384xf32>
    %cst_61 = arith.constant 1.000000e+00 : f32
    %182 = vector.broadcast %cst_61 : f32 to vector<8x384xf32>
    %183 = arith.addf %182, %181 : vector<8x384xf32>
    %184 = arith.divf %182, %183 : vector<8x384xf32>
    %185 = vector.extract_strided_slice %178 {offsets = [0, 384], sizes = [8, 128], strides = [1, 1]} : vector<8x512xf32> to vector<8x128xf32>
    %186 = math.tanh %185 : vector<8x128xf32>
    %187 = vector.extract_strided_slice %184 {offsets = [0, 0], sizes = [8, 128], strides = [1, 1]} : vector<8x384xf32> to vector<8x128xf32>
    %188 = vector.extract_strided_slice %184 {offsets = [0, 128], sizes = [8, 128], strides = [1, 1]} : vector<8x384xf32> to vector<8x128xf32>
    %189 = vector.extract_strided_slice %184 {offsets = [0, 256], sizes = [8, 128], strides = [1, 1]} : vector<8x384xf32> to vector<8x128xf32>
    %190 = arith.mulf %188, %170 : vector<8x128xf32>
    %191 = arith.mulf %187, %186 : vector<8x128xf32>
    %192 = arith.addf %190, %191 : vector<8x128xf32>
    %193 = math.tanh %192 : vector<8x128xf32>
    %194 = arith.mulf %189, %193 : vector<8x128xf32>
    %195 = arith.truncf %194 : vector<8x128xf32> to vector<8x128xbf16>
    %c0_62 = arith.constant 0 : index
    %c0_63 = arith.constant 0 : index
    %196 = vector.load %arg8[%c0_62, %c0_63] : memref<128x128xbf16, #tpu.memory_space<vmem>>, vector<128x128xbf16>
    %cst_64 = arith.constant dense<0.000000e+00> : vector<8x128xf32>
    %197 = tpu.matmul %195, %196, %cst_64 {dimension_numbers = #tpu.dot_dimension_numbers<[1], [0], [0], [1], [0, 0, 1, 1], [], []>} : vector<8x128xbf16>, vector<128x128xbf16>, vector<8x128xf32> -> vector<8x128xf32>
    %c0_65 = arith.constant 0 : index
    %c0_66 = arith.constant 0 : index
    %198 = vector.load %arg9[%c0_65, %c0_66] : memref<1x128xf32, #tpu.memory_space<vmem>>, vector<1x128xf32>
    %199 = vector.broadcast %198 : vector<1x128xf32> to vector<8x128xf32>
    %200 = arith.addf %197, %199 : vector<8x128xf32>
    %c0_67 = arith.constant 0 : index
    %c0_68 = arith.constant 0 : index
    %201 = vector.load %arg3[%c0_67, %c0_68] : memref<8x128xf32, #tpu.memory_space<vmem>>, vector<8x128xf32>
    %202 = arith.addf %200, %201 : vector<8x128xf32>
    %203 = arith.truncf %202 : vector<8x128xf32> to vector<8x128xbf16>
    %c0_69 = arith.constant 0 : index
    %c0_70 = arith.constant 0 : index
    %204 = vector.load %arg11[%c0_69, %c0_70] : memref<128x512xbf16, #tpu.memory_space<vmem>>, vector<128x512xbf16>
    %cst_71 = arith.constant dense<0.000000e+00> : vector<8x512xf32>
    %205 = tpu.matmul %203, %204, %cst_71 {dimension_numbers = #tpu.dot_dimension_numbers<[1], [0], [0], [1], [0, 0, 1, 1], [], []>} : vector<8x128xbf16>, vector<128x512xbf16>, vector<8x512xf32> -> vector<8x512xf32>
    %c0_72 = arith.constant 0 : index
    %c0_73 = arith.constant 0 : index
    %206 = vector.load %arg13[%c0_72, %c0_73] : memref<1x512xf32, #tpu.memory_space<vmem>>, vector<1x512xf32>
    %207 = vector.broadcast %206 : vector<1x512xf32> to vector<8x512xf32>
    %208 = arith.addf %205, %207 : vector<8x512xf32>
    %c0_74 = arith.constant 0 : index
    %c0_75 = arith.constant 0 : index
    %209 = vector.load %arg10[%c0_74, %c0_75] : memref<32x512xbf16, #tpu.memory_space<vmem>>, vector<32x512xbf16>
    %cst_76 = arith.constant dense<0.000000e+00> : vector<64x512xf32>
    %210 = tpu.matmul %9, %209, %cst_76 {dimension_numbers = #tpu.dot_dimension_numbers<[1], [0], [0], [1], [0, 0, 1, 1], [], []>} : vector<64x32xbf16>, vector<32x512xbf16>, vector<64x512xf32> -> vector<64x512xf32>
    %211 = vector.shape_cast %210 : vector<64x512xf32> to vector<8x8x512xf32>
    %212 = vector.shape_cast %208 : vector<8x512xf32> to vector<1x8x512xf32>
    %213 = vector.broadcast %212 : vector<1x8x512xf32> to vector<8x8x512xf32>
    %214 = arith.addf %211, %213 : vector<8x8x512xf32>
    %c0_77 = arith.constant 0 : index
    %c0_78 = arith.constant 0 : index
    %c0_79 = arith.constant 0 : index
    %215 = vector.load %arg18[%c0_77, %c0_78, %c0_79] : memref<8x8x512xf32, #tpu.memory_space<vmem>>, vector<8x8x512xf32>
    tpu.vector_store %arg18[%c0_77, %c0_78, %c0_79], %214 {strides = array<i32>} : memref<8x8x512xf32, #tpu.memory_space<vmem>>, vector<8x8x512xf32>,
    %cst_80 = arith.constant 0.000000e+00 : f32
    %216 = vector.broadcast %cst_80 : f32 to vector<8x128xf32>
    %cst_81 = arith.constant 0.000000e+00 : f32
    %217 = vector.broadcast %cst_81 : f32 to vector<8x128xf32>
    %c0_82 = arith.constant 0 : index
    %c0_83 = arith.constant 0 : index
    %c0_84 = arith.constant 0 : index
    %218 = vector.load %arg18[%c0_82, %c0_83, %c0_84] : memref<8x8x512xf32, #tpu.memory_space<vmem>>, vector<1x8x512xf32>
    %219 = vector.shape_cast %218 : vector<1x8x512xf32> to vector<8x512xf32>
    %220 = arith.truncf %216 : vector<8x128xf32> to vector<8x128xbf16>
    %c0_85 = arith.constant 0 : index
    %c0_86 = arith.constant 0 : index
    %221 = vector.load %arg12[%c0_85, %c0_86] : memref<128x512xbf16, #tpu.memory_space<vmem>>, vector<128x512xbf16>
    %cst_87 = arith.constant dense<0.000000e+00> : vector<8x512xf32>
    %222 = tpu.matmul %220, %221, %cst_87 {dimension_numbers = #tpu.dot_dimension_numbers<[1], [0], [0], [1], [0, 0, 1, 1], [], []>} : vector<8x128xbf16>, vector<128x512xbf16>, vector<8x512xf32> -> vector<8x512xf32>
    %223 = arith.addf %219, %222 : vector<8x512xf32>
    %224 = vector.extract_strided_slice %223 {offsets = [0, 0], sizes = [8, 384], strides = [1, 1]} : vector<8x512xf32> to vector<8x384xf32>
    %225 = arith.negf %224 : vector<8x384xf32>
    %226 = math.exp %225 : vector<8x384xf32>
    %cst_88 = arith.constant 1.000000e+00 : f32
    %227 = vector.broadcast %cst_88 : f32 to vector<8x384xf32>
    %228 = arith.addf %227, %226 : vector<8x384xf32>
    %229 = arith.divf %227, %228 : vector<8x384xf32>
    %230 = vector.extract_strided_slice %223 {offsets = [0, 384], sizes = [8, 128], strides = [1, 1]} : vector<8x512xf32> to vector<8x128xf32>
    %231 = math.tanh %230 : vector<8x128xf32>
    %232 = vector.extract_strided_slice %229 {offsets = [0, 0], sizes = [8, 128], strides = [1, 1]} : vector<8x384xf32> to vector<8x128xf32>
    %233 = vector.extract_strided_slice %229 {offsets = [0, 128], sizes = [8, 128], strides = [1, 1]} : vector<8x384xf32> to vector<8x128xf32>
    %234 = vector.extract_strided_slice %229 {offsets = [0, 256], sizes = [8, 128], strides = [1, 1]} : vector<8x384xf32> to vector<8x128xf32>
    %235 = arith.mulf %233, %217 : vector<8x128xf32>
    %236 = arith.mulf %232, %231 : vector<8x128xf32>
    %237 = arith.addf %235, %236 : vector<8x128xf32>
    %238 = math.tanh %237 : vector<8x128xf32>
    %239 = arith.mulf %234, %238 : vector<8x128xf32>
    %c0_89 = arith.constant 0 : index
    %c0_90 = arith.constant 0 : index
    %c0_91 = arith.constant 0 : index
    %240 = vector.load %arg19[%c0_89, %c0_90, %c0_91] : memref<8x8x128xf32, #tpu.memory_space<vmem>>, vector<1x8x128xf32>
    %241 = vector.shape_cast %240 : vector<1x8x128xf32> to vector<8x128xf32>
    %242 = vector.shape_cast %239 : vector<8x128xf32> to vector<1x8x128xf32>
    tpu.vector_store %arg19[%c0_89, %c0_90, %c0_91], %242 {strides = array<i32>} : memref<8x8x128xf32, #tpu.memory_space<vmem>>, vector<1x8x128xf32>,
    %c1_92 = arith.constant 1 : index
    %c0_93 = arith.constant 0 : index
    %c0_94 = arith.constant 0 : index
    %243 = vector.load %arg18[%c1_92, %c0_93, %c0_94] : memref<8x8x512xf32, #tpu.memory_space<vmem>>, vector<1x8x512xf32>
    %244 = vector.shape_cast %243 : vector<1x8x512xf32> to vector<8x512xf32>
    %245 = arith.truncf %239 : vector<8x128xf32> to vector<8x128xbf16>
    %c0_95 = arith.constant 0 : index
    %c0_96 = arith.constant 0 : index
    %246 = vector.load %arg12[%c0_95, %c0_96] : memref<128x512xbf16, #tpu.memory_space<vmem>>, vector<128x512xbf16>
    %cst_97 = arith.constant dense<0.000000e+00> : vector<8x512xf32>
    %247 = tpu.matmul %245, %246, %cst_97 {dimension_numbers = #tpu.dot_dimension_numbers<[1], [0], [0], [1], [0, 0, 1, 1], [], []>} : vector<8x128xbf16>, vector<128x512xbf16>, vector<8x512xf32> -> vector<8x512xf32>
    %248 = arith.addf %244, %247 : vector<8x512xf32>
    %249 = vector.extract_strided_slice %248 {offsets = [0, 0], sizes = [8, 384], strides = [1, 1]} : vector<8x512xf32> to vector<8x384xf32>
    %250 = arith.negf %249 : vector<8x384xf32>
    %251 = math.exp %250 : vector<8x384xf32>
    %cst_98 = arith.constant 1.000000e+00 : f32
    %252 = vector.broadcast %cst_98 : f32 to vector<8x384xf32>
    %253 = arith.addf %252, %251 : vector<8x384xf32>
    %254 = arith.divf %252, %253 : vector<8x384xf32>
    %255 = vector.extract_strided_slice %248 {offsets = [0, 384], sizes = [8, 128], strides = [1, 1]} : vector<8x512xf32> to vector<8x128xf32>
    %256 = math.tanh %255 : vector<8x128xf32>
    %257 = vector.extract_strided_slice %254 {offsets = [0, 0], sizes = [8, 128], strides = [1, 1]} : vector<8x384xf32> to vector<8x128xf32>
    %258 = vector.extract_strided_slice %254 {offsets = [0, 128], sizes = [8, 128], strides = [1, 1]} : vector<8x384xf32> to vector<8x128xf32>
    %259 = vector.extract_strided_slice %254 {offsets = [0, 256], sizes = [8, 128], strides = [1, 1]} : vector<8x384xf32> to vector<8x128xf32>
    %260 = arith.mulf %258, %237 : vector<8x128xf32>
    %261 = arith.mulf %257, %256 : vector<8x128xf32>
    %262 = arith.addf %260, %261 : vector<8x128xf32>
    %263 = math.tanh %262 : vector<8x128xf32>
    %264 = arith.mulf %259, %263 : vector<8x128xf32>
    %c1_99 = arith.constant 1 : index
    %c0_100 = arith.constant 0 : index
    %c0_101 = arith.constant 0 : index
    %265 = vector.load %arg19[%c1_99, %c0_100, %c0_101] : memref<8x8x128xf32, #tpu.memory_space<vmem>>, vector<1x8x128xf32>
    %266 = vector.shape_cast %265 : vector<1x8x128xf32> to vector<8x128xf32>
    %267 = vector.shape_cast %264 : vector<8x128xf32> to vector<1x8x128xf32>
    tpu.vector_store %arg19[%c1_99, %c0_100, %c0_101], %267 {strides = array<i32>} : memref<8x8x128xf32, #tpu.memory_space<vmem>>, vector<1x8x128xf32>,
    %c2_102 = arith.constant 2 : index
    %c0_103 = arith.constant 0 : index
    %c0_104 = arith.constant 0 : index
    %268 = vector.load %arg18[%c2_102, %c0_103, %c0_104] : memref<8x8x512xf32, #tpu.memory_space<vmem>>, vector<1x8x512xf32>
    %269 = vector.shape_cast %268 : vector<1x8x512xf32> to vector<8x512xf32>
    %270 = arith.truncf %264 : vector<8x128xf32> to vector<8x128xbf16>
    %c0_105 = arith.constant 0 : index
    %c0_106 = arith.constant 0 : index
    %271 = vector.load %arg12[%c0_105, %c0_106] : memref<128x512xbf16, #tpu.memory_space<vmem>>, vector<128x512xbf16>
    %cst_107 = arith.constant dense<0.000000e+00> : vector<8x512xf32>
    %272 = tpu.matmul %270, %271, %cst_107 {dimension_numbers = #tpu.dot_dimension_numbers<[1], [0], [0], [1], [0, 0, 1, 1], [], []>} : vector<8x128xbf16>, vector<128x512xbf16>, vector<8x512xf32> -> vector<8x512xf32>
    %273 = arith.addf %269, %272 : vector<8x512xf32>
    %274 = vector.extract_strided_slice %273 {offsets = [0, 0], sizes = [8, 384], strides = [1, 1]} : vector<8x512xf32> to vector<8x384xf32>
    %275 = arith.negf %274 : vector<8x384xf32>
    %276 = math.exp %275 : vector<8x384xf32>
    %cst_108 = arith.constant 1.000000e+00 : f32
    %277 = vector.broadcast %cst_108 : f32 to vector<8x384xf32>
    %278 = arith.addf %277, %276 : vector<8x384xf32>
    %279 = arith.divf %277, %278 : vector<8x384xf32>
    %280 = vector.extract_strided_slice %273 {offsets = [0, 384], sizes = [8, 128], strides = [1, 1]} : vector<8x512xf32> to vector<8x128xf32>
    %281 = math.tanh %280 : vector<8x128xf32>
    %282 = vector.extract_strided_slice %279 {offsets = [0, 0], sizes = [8, 128], strides = [1, 1]} : vector<8x384xf32> to vector<8x128xf32>
    %283 = vector.extract_strided_slice %279 {offsets = [0, 128], sizes = [8, 128], strides = [1, 1]} : vector<8x384xf32> to vector<8x128xf32>
    %284 = vector.extract_strided_slice %279 {offsets = [0, 256], sizes = [8, 128], strides = [1, 1]} : vector<8x384xf32> to vector<8x128xf32>
    %285 = arith.mulf %283, %262 : vector<8x128xf32>
    %286 = arith.mulf %282, %281 : vector<8x128xf32>
    %287 = arith.addf %285, %286 : vector<8x128xf32>
    %288 = math.tanh %287 : vector<8x128xf32>
    %289 = arith.mulf %284, %288 : vector<8x128xf32>
    %c2_109 = arith.constant 2 : index
    %c0_110 = arith.constant 0 : index
    %c0_111 = arith.constant 0 : index
    %290 = vector.load %arg19[%c2_109, %c0_110, %c0_111] : memref<8x8x128xf32, #tpu.memory_space<vmem>>, vector<1x8x128xf32>
    %291 = vector.shape_cast %290 : vector<1x8x128xf32> to vector<8x128xf32>
    %292 = vector.shape_cast %289 : vector<8x128xf32> to vector<1x8x128xf32>
    tpu.vector_store %arg19[%c2_109, %c0_110, %c0_111], %292 {strides = array<i32>} : memref<8x8x128xf32, #tpu.memory_space<vmem>>, vector<1x8x128xf32>,
    %c3_112 = arith.constant 3 : index
    %c0_113 = arith.constant 0 : index
    %c0_114 = arith.constant 0 : index
    %293 = vector.load %arg18[%c3_112, %c0_113, %c0_114] : memref<8x8x512xf32, #tpu.memory_space<vmem>>, vector<1x8x512xf32>
    %294 = vector.shape_cast %293 : vector<1x8x512xf32> to vector<8x512xf32>
    %295 = arith.truncf %289 : vector<8x128xf32> to vector<8x128xbf16>
    %c0_115 = arith.constant 0 : index
    %c0_116 = arith.constant 0 : index
    %296 = vector.load %arg12[%c0_115, %c0_116] : memref<128x512xbf16, #tpu.memory_space<vmem>>, vector<128x512xbf16>
    %cst_117 = arith.constant dense<0.000000e+00> : vector<8x512xf32>
    %297 = tpu.matmul %295, %296, %cst_117 {dimension_numbers = #tpu.dot_dimension_numbers<[1], [0], [0], [1], [0, 0, 1, 1], [], []>} : vector<8x128xbf16>, vector<128x512xbf16>, vector<8x512xf32> -> vector<8x512xf32>
    %298 = arith.addf %294, %297 : vector<8x512xf32>
    %299 = vector.extract_strided_slice %298 {offsets = [0, 0], sizes = [8, 384], strides = [1, 1]} : vector<8x512xf32> to vector<8x384xf32>
    %300 = arith.negf %299 : vector<8x384xf32>
    %301 = math.exp %300 : vector<8x384xf32>
    %cst_118 = arith.constant 1.000000e+00 : f32
    %302 = vector.broadcast %cst_118 : f32 to vector<8x384xf32>
    %303 = arith.addf %302, %301 : vector<8x384xf32>
    %304 = arith.divf %302, %303 : vector<8x384xf32>
    %305 = vector.extract_strided_slice %298 {offsets = [0, 384], sizes = [8, 128], strides = [1, 1]} : vector<8x512xf32> to vector<8x128xf32>
    %306 = math.tanh %305 : vector<8x128xf32>
    %307 = vector.extract_strided_slice %304 {offsets = [0, 0], sizes = [8, 128], strides = [1, 1]} : vector<8x384xf32> to vector<8x128xf32>
    %308 = vector.extract_strided_slice %304 {offsets = [0, 128], sizes = [8, 128], strides = [1, 1]} : vector<8x384xf32> to vector<8x128xf32>
    %309 = vector.extract_strided_slice %304 {offsets = [0, 256], sizes = [8, 128], strides = [1, 1]} : vector<8x384xf32> to vector<8x128xf32>
    %310 = arith.mulf %308, %287 : vector<8x128xf32>
    %311 = arith.mulf %307, %306 : vector<8x128xf32>
    %312 = arith.addf %310, %311 : vector<8x128xf32>
    %313 = math.tanh %312 : vector<8x128xf32>
    %314 = arith.mulf %309, %313 : vector<8x128xf32>
    %c3_119 = arith.constant 3 : index
    %c0_120 = arith.constant 0 : index
    %c0_121 = arith.constant 0 : index
    %315 = vector.load %arg19[%c3_119, %c0_120, %c0_121] : memref<8x8x128xf32, #tpu.memory_space<vmem>>, vector<1x8x128xf32>
    %316 = vector.shape_cast %315 : vector<1x8x128xf32> to vector<8x128xf32>
    %317 = vector.shape_cast %314 : vector<8x128xf32> to vector<1x8x128xf32>
    tpu.vector_store %arg19[%c3_119, %c0_120, %c0_121], %317 {strides = array<i32>} : memref<8x8x128xf32, #tpu.memory_space<vmem>>, vector<1x8x128xf32>,
    %c4_122 = arith.constant 4 : index
    %c0_123 = arith.constant 0 : index
    %c0_124 = arith.constant 0 : index
    %318 = vector.load %arg18[%c4_122, %c0_123, %c0_124] : memref<8x8x512xf32, #tpu.memory_space<vmem>>, vector<1x8x512xf32>
    %319 = vector.shape_cast %318 : vector<1x8x512xf32> to vector<8x512xf32>
    %320 = arith.truncf %314 : vector<8x128xf32> to vector<8x128xbf16>
    %c0_125 = arith.constant 0 : index
    %c0_126 = arith.constant 0 : index
    %321 = vector.load %arg12[%c0_125, %c0_126] : memref<128x512xbf16, #tpu.memory_space<vmem>>, vector<128x512xbf16>
    %cst_127 = arith.constant dense<0.000000e+00> : vector<8x512xf32>
    %322 = tpu.matmul %320, %321, %cst_127 {dimension_numbers = #tpu.dot_dimension_numbers<[1], [0], [0], [1], [0, 0, 1, 1], [], []>} : vector<8x128xbf16>, vector<128x512xbf16>, vector<8x512xf32> -> vector<8x512xf32>
    %323 = arith.addf %319, %322 : vector<8x512xf32>
    %324 = vector.extract_strided_slice %323 {offsets = [0, 0], sizes = [8, 384], strides = [1, 1]} : vector<8x512xf32> to vector<8x384xf32>
    %325 = arith.negf %324 : vector<8x384xf32>
    %326 = math.exp %325 : vector<8x384xf32>
    %cst_128 = arith.constant 1.000000e+00 : f32
    %327 = vector.broadcast %cst_128 : f32 to vector<8x384xf32>
    %328 = arith.addf %327, %326 : vector<8x384xf32>
    %329 = arith.divf %327, %328 : vector<8x384xf32>
    %330 = vector.extract_strided_slice %323 {offsets = [0, 384], sizes = [8, 128], strides = [1, 1]} : vector<8x512xf32> to vector<8x128xf32>
    %331 = math.tanh %330 : vector<8x128xf32>
    %332 = vector.extract_strided_slice %329 {offsets = [0, 0], sizes = [8, 128], strides = [1, 1]} : vector<8x384xf32> to vector<8x128xf32>
    %333 = vector.extract_strided_slice %329 {offsets = [0, 128], sizes = [8, 128], strides = [1, 1]} : vector<8x384xf32> to vector<8x128xf32>
    %334 = vector.extract_strided_slice %329 {offsets = [0, 256], sizes = [8, 128], strides = [1, 1]} : vector<8x384xf32> to vector<8x128xf32>
    %335 = arith.mulf %333, %312 : vector<8x128xf32>
    %336 = arith.mulf %332, %331 : vector<8x128xf32>
    %337 = arith.addf %335, %336 : vector<8x128xf32>
    %338 = math.tanh %337 : vector<8x128xf32>
    %339 = arith.mulf %334, %338 : vector<8x128xf32>
    %c4_129 = arith.constant 4 : index
    %c0_130 = arith.constant 0 : index
    %c0_131 = arith.constant 0 : index
    %340 = vector.load %arg19[%c4_129, %c0_130, %c0_131] : memref<8x8x128xf32, #tpu.memory_space<vmem>>, vector<1x8x128xf32>
    %341 = vector.shape_cast %340 : vector<1x8x128xf32> to vector<8x128xf32>
    %342 = vector.shape_cast %339 : vector<8x128xf32> to vector<1x8x128xf32>
    tpu.vector_store %arg19[%c4_129, %c0_130, %c0_131], %342 {strides = array<i32>} : memref<8x8x128xf32, #tpu.memory_space<vmem>>, vector<1x8x128xf32>,
    %c5_132 = arith.constant 5 : index
    %c0_133 = arith.constant 0 : index
    %c0_134 = arith.constant 0 : index
    %343 = vector.load %arg18[%c5_132, %c0_133, %c0_134] : memref<8x8x512xf32, #tpu.memory_space<vmem>>, vector<1x8x512xf32>
    %344 = vector.shape_cast %343 : vector<1x8x512xf32> to vector<8x512xf32>
    %345 = arith.truncf %339 : vector<8x128xf32> to vector<8x128xbf16>
    %c0_135 = arith.constant 0 : index
    %c0_136 = arith.constant 0 : index
    %346 = vector.load %arg12[%c0_135, %c0_136] : memref<128x512xbf16, #tpu.memory_space<vmem>>, vector<128x512xbf16>
    %cst_137 = arith.constant dense<0.000000e+00> : vector<8x512xf32>
    %347 = tpu.matmul %345, %346, %cst_137 {dimension_numbers = #tpu.dot_dimension_numbers<[1], [0], [0], [1], [0, 0, 1, 1], [], []>} : vector<8x128xbf16>, vector<128x512xbf16>, vector<8x512xf32> -> vector<8x512xf32>
    %348 = arith.addf %344, %347 : vector<8x512xf32>
    %349 = vector.extract_strided_slice %348 {offsets = [0, 0], sizes = [8, 384], strides = [1, 1]} : vector<8x512xf32> to vector<8x384xf32>
    %350 = arith.negf %349 : vector<8x384xf32>
    %351 = math.exp %350 : vector<8x384xf32>
    %cst_138 = arith.constant 1.000000e+00 : f32
    %352 = vector.broadcast %cst_138 : f32 to vector<8x384xf32>
    %353 = arith.addf %352, %351 : vector<8x384xf32>
    %354 = arith.divf %352, %353 : vector<8x384xf32>
    %355 = vector.extract_strided_slice %348 {offsets = [0, 384], sizes = [8, 128], strides = [1, 1]} : vector<8x512xf32> to vector<8x128xf32>
    %356 = math.tanh %355 : vector<8x128xf32>
    %357 = vector.extract_strided_slice %354 {offsets = [0, 0], sizes = [8, 128], strides = [1, 1]} : vector<8x384xf32> to vector<8x128xf32>
    %358 = vector.extract_strided_slice %354 {offsets = [0, 128], sizes = [8, 128], strides = [1, 1]} : vector<8x384xf32> to vector<8x128xf32>
    %359 = vector.extract_strided_slice %354 {offsets = [0, 256], sizes = [8, 128], strides = [1, 1]} : vector<8x384xf32> to vector<8x128xf32>
    %360 = arith.mulf %358, %337 : vector<8x128xf32>
    %361 = arith.mulf %357, %356 : vector<8x128xf32>
    %362 = arith.addf %360, %361 : vector<8x128xf32>
    %363 = math.tanh %362 : vector<8x128xf32>
    %364 = arith.mulf %359, %363 : vector<8x128xf32>
    %c5_139 = arith.constant 5 : index
    %c0_140 = arith.constant 0 : index
    %c0_141 = arith.constant 0 : index
    %365 = vector.load %arg19[%c5_139, %c0_140, %c0_141] : memref<8x8x128xf32, #tpu.memory_space<vmem>>, vector<1x8x128xf32>
    %366 = vector.shape_cast %365 : vector<1x8x128xf32> to vector<8x128xf32>
    %367 = vector.shape_cast %364 : vector<8x128xf32> to vector<1x8x128xf32>
    tpu.vector_store %arg19[%c5_139, %c0_140, %c0_141], %367 {strides = array<i32>} : memref<8x8x128xf32, #tpu.memory_space<vmem>>, vector<1x8x128xf32>,
    %c6_142 = arith.constant 6 : index
    %c0_143 = arith.constant 0 : index
    %c0_144 = arith.constant 0 : index
    %368 = vector.load %arg18[%c6_142, %c0_143, %c0_144] : memref<8x8x512xf32, #tpu.memory_space<vmem>>, vector<1x8x512xf32>
    %369 = vector.shape_cast %368 : vector<1x8x512xf32> to vector<8x512xf32>
    %370 = arith.truncf %364 : vector<8x128xf32> to vector<8x128xbf16>
    %c0_145 = arith.constant 0 : index
    %c0_146 = arith.constant 0 : index
    %371 = vector.load %arg12[%c0_145, %c0_146] : memref<128x512xbf16, #tpu.memory_space<vmem>>, vector<128x512xbf16>
    %cst_147 = arith.constant dense<0.000000e+00> : vector<8x512xf32>
    %372 = tpu.matmul %370, %371, %cst_147 {dimension_numbers = #tpu.dot_dimension_numbers<[1], [0], [0], [1], [0, 0, 1, 1], [], []>} : vector<8x128xbf16>, vector<128x512xbf16>, vector<8x512xf32> -> vector<8x512xf32>
    %373 = arith.addf %369, %372 : vector<8x512xf32>
    %374 = vector.extract_strided_slice %373 {offsets = [0, 0], sizes = [8, 384], strides = [1, 1]} : vector<8x512xf32> to vector<8x384xf32>
    %375 = arith.negf %374 : vector<8x384xf32>
    %376 = math.exp %375 : vector<8x384xf32>
    %cst_148 = arith.constant 1.000000e+00 : f32
    %377 = vector.broadcast %cst_148 : f32 to vector<8x384xf32>
    %378 = arith.addf %377, %376 : vector<8x384xf32>
    %379 = arith.divf %377, %378 : vector<8x384xf32>
    %380 = vector.extract_strided_slice %373 {offsets = [0, 384], sizes = [8, 128], strides = [1, 1]} : vector<8x512xf32> to vector<8x128xf32>
    %381 = math.tanh %380 : vector<8x128xf32>
    %382 = vector.extract_strided_slice %379 {offsets = [0, 0], sizes = [8, 128], strides = [1, 1]} : vector<8x384xf32> to vector<8x128xf32>
    %383 = vector.extract_strided_slice %379 {offsets = [0, 128], sizes = [8, 128], strides = [1, 1]} : vector<8x384xf32> to vector<8x128xf32>
    %384 = vector.extract_strided_slice %379 {offsets = [0, 256], sizes = [8, 128], strides = [1, 1]} : vector<8x384xf32> to vector<8x128xf32>
    %385 = arith.mulf %383, %362 : vector<8x128xf32>
    %386 = arith.mulf %382, %381 : vector<8x128xf32>
    %387 = arith.addf %385, %386 : vector<8x128xf32>
    %388 = math.tanh %387 : vector<8x128xf32>
    %389 = arith.mulf %384, %388 : vector<8x128xf32>
    %c6_149 = arith.constant 6 : index
    %c0_150 = arith.constant 0 : index
    %c0_151 = arith.constant 0 : index
    %390 = vector.load %arg19[%c6_149, %c0_150, %c0_151] : memref<8x8x128xf32, #tpu.memory_space<vmem>>, vector<1x8x128xf32>
    %391 = vector.shape_cast %390 : vector<1x8x128xf32> to vector<8x128xf32>
    %392 = vector.shape_cast %389 : vector<8x128xf32> to vector<1x8x128xf32>
    tpu.vector_store %arg19[%c6_149, %c0_150, %c0_151], %392 {strides = array<i32>} : memref<8x8x128xf32, #tpu.memory_space<vmem>>, vector<1x8x128xf32>,
    %c7_152 = arith.constant 7 : index
    %c0_153 = arith.constant 0 : index
    %c0_154 = arith.constant 0 : index
    %393 = vector.load %arg18[%c7_152, %c0_153, %c0_154] : memref<8x8x512xf32, #tpu.memory_space<vmem>>, vector<1x8x512xf32>
    %394 = vector.shape_cast %393 : vector<1x8x512xf32> to vector<8x512xf32>
    %395 = arith.truncf %389 : vector<8x128xf32> to vector<8x128xbf16>
    %c0_155 = arith.constant 0 : index
    %c0_156 = arith.constant 0 : index
    %396 = vector.load %arg12[%c0_155, %c0_156] : memref<128x512xbf16, #tpu.memory_space<vmem>>, vector<128x512xbf16>
    %cst_157 = arith.constant dense<0.000000e+00> : vector<8x512xf32>
    %397 = tpu.matmul %395, %396, %cst_157 {dimension_numbers = #tpu.dot_dimension_numbers<[1], [0], [0], [1], [0, 0, 1, 1], [], []>} : vector<8x128xbf16>, vector<128x512xbf16>, vector<8x512xf32> -> vector<8x512xf32>
    %398 = arith.addf %394, %397 : vector<8x512xf32>
    %399 = vector.extract_strided_slice %398 {offsets = [0, 0], sizes = [8, 384], strides = [1, 1]} : vector<8x512xf32> to vector<8x384xf32>
    %400 = arith.negf %399 : vector<8x384xf32>
    %401 = math.exp %400 : vector<8x384xf32>
    %cst_158 = arith.constant 1.000000e+00 : f32
    %402 = vector.broadcast %cst_158 : f32 to vector<8x384xf32>
    %403 = arith.addf %402, %401 : vector<8x384xf32>
    %404 = arith.divf %402, %403 : vector<8x384xf32>
    %405 = vector.extract_strided_slice %398 {offsets = [0, 384], sizes = [8, 128], strides = [1, 1]} : vector<8x512xf32> to vector<8x128xf32>
    %406 = math.tanh %405 : vector<8x128xf32>
    %407 = vector.extract_strided_slice %404 {offsets = [0, 0], sizes = [8, 128], strides = [1, 1]} : vector<8x384xf32> to vector<8x128xf32>
    %408 = vector.extract_strided_slice %404 {offsets = [0, 128], sizes = [8, 128], strides = [1, 1]} : vector<8x384xf32> to vector<8x128xf32>
    %409 = vector.extract_strided_slice %404 {offsets = [0, 256], sizes = [8, 128], strides = [1, 1]} : vector<8x384xf32> to vector<8x128xf32>
    %410 = arith.mulf %408, %387 : vector<8x128xf32>
    %411 = arith.mulf %407, %406 : vector<8x128xf32>
    %412 = arith.addf %410, %411 : vector<8x128xf32>
    %413 = math.tanh %412 : vector<8x128xf32>
    %414 = arith.mulf %409, %413 : vector<8x128xf32>
    %c7_159 = arith.constant 7 : index
    %c0_160 = arith.constant 0 : index
    %c0_161 = arith.constant 0 : index
    %415 = vector.load %arg19[%c7_159, %c0_160, %c0_161] : memref<8x8x128xf32, #tpu.memory_space<vmem>>, vector<1x8x128xf32>
    %416 = vector.shape_cast %415 : vector<1x8x128xf32> to vector<8x128xf32>
    %417 = vector.shape_cast %414 : vector<8x128xf32> to vector<1x8x128xf32>
    tpu.vector_store %arg19[%c7_159, %c0_160, %c0_161], %417 {strides = array<i32>} : memref<8x8x128xf32, #tpu.memory_space<vmem>>, vector<1x8x128xf32>,
    %c0_162 = arith.constant 0 : index
    %c0_163 = arith.constant 0 : index
    %c0_164 = arith.constant 0 : index
    %418 = vector.load %arg19[%c0_162, %c0_163, %c0_164] : memref<8x8x128xf32, #tpu.memory_space<vmem>>, vector<8x8x128xf32>
    %419 = vector.shape_cast %418 : vector<8x8x128xf32> to vector<64x128xf32>
    %420 = arith.truncf %419 : vector<64x128xf32> to vector<64x128xbf16>
    %c0_165 = arith.constant 0 : index
    %c0_166 = arith.constant 0 : index
    %421 = vector.load %arg14[%c0_165, %c0_166] : memref<128x128xbf16, #tpu.memory_space<vmem>>, vector<128x128xbf16>
    %cst_167 = arith.constant dense<0.000000e+00> : vector<64x128xf32>
    %422 = tpu.matmul %420, %421, %cst_167 {dimension_numbers = #tpu.dot_dimension_numbers<[1], [0], [0], [1], [0, 0, 1, 1], [], []>} : vector<64x128xbf16>, vector<128x128xbf16>, vector<64x128xf32> -> vector<64x128xf32>
    %c0_168 = arith.constant 0 : index
    %c0_169 = arith.constant 0 : index
    %423 = vector.load %arg15[%c0_168, %c0_169] : memref<1x128xf32, #tpu.memory_space<vmem>>, vector<1x128xf32>
    %424 = vector.broadcast %423 : vector<1x128xf32> to vector<64x128xf32>
    %425 = arith.addf %422, %424 : vector<64x128xf32>
    %cst_170 = arith.constant dense<0xFF800000> : vector<64xf32>
    %426 = vector.multi_reduction <maximumf>, %425, %cst_170 [1] : vector<64x128xf32> to vector<64xf32>
    %427 = vector.shape_cast %426 : vector<64xf32> to vector<64x1xf32>
    %428 = vector.broadcast %427 : vector<64x1xf32> to vector<64x128xf32>
    %429 = arith.subf %425, %428 : vector<64x128xf32>
    %430 = math.exp %429 : vector<64x128xf32>
    %cst_171 = arith.constant dense<0.000000e+00> : vector<64xf32>
    %431 = vector.multi_reduction <add>, %430, %cst_171 [1] : vector<64x128xf32> to vector<64xf32>
    %432 = vector.shape_cast %431 : vector<64xf32> to vector<64x1xf32>
    %433 = math.log %432 : vector<64x1xf32>
    %434 = arith.addf %427, %433 : vector<64x1xf32>
    %c0_172 = arith.constant 0 : index
    %c0_173 = arith.constant 0 : index
    %435 = vector.load %arg1[%c0_172, %c0_173] : memref<64x1xi32, #tpu.memory_space<vmem>>, vector<64x1xi32>
    %436 = vector.broadcast %435 : vector<64x1xi32> to vector<64x128xi32>
    %437 = arith.cmpi eq, %1, %436 : vector<64x128xi32>
    %cst_174 = arith.constant 0.000000e+00 : f32
    %438 = vector.broadcast %cst_174 : f32 to vector<64x128xf32>
    %439 = arith.select %437, %425, %438 : vector<64x128xi1>, vector<64x128xf32>
    %cst_175 = arith.constant dense<0.000000e+00> : vector<64xf32>
    %440 = vector.multi_reduction <add>, %439, %cst_175 [1] : vector<64x128xf32> to vector<64xf32>
    %441 = vector.shape_cast %440 : vector<64xf32> to vector<64x1xf32>
    %442 = arith.subf %434, %441 : vector<64x1xf32>
    %c0_176 = arith.constant 0 : index
    %c0_177 = arith.constant 0 : index
    %443 = vector.load %arg2[%c0_176, %c0_177] : memref<64x1xf32, #tpu.memory_space<vmem>>, vector<64x1xf32>
    %444 = arith.mulf %442, %443 : vector<64x1xf32>
    %445 = vector.shape_cast %444 : vector<64x1xf32> to vector<1x64x1xf32>
    %cst_178 = arith.constant dense<0.000000e+00> : vector<1xf32>
    %446 = vector.multi_reduction <add>, %445, %cst_178 [1, 2] : vector<1x64x1xf32> to vector<1xf32>
    %447 = vector.shape_cast %446 : vector<1xf32> to vector<1x1x1xf32>
    %448 = vector.extract %447[0, 0, 0] : f32 from vector<1x1x1xf32>
    %449 = vector.broadcast %448 : f32 to vector<1x1xf32>
    %cst_179 = arith.constant 3.200000e+01 : f32
    %450 = vector.broadcast %cst_179 : f32 to vector<1x1xf32>
    %451 = arith.divf %449, %450 : vector<1x1xf32>
    %c0_180 = arith.constant 0 : index
    %c0_181 = arith.constant 0 : index
    %452 = vector.load %arg16[%c0_180, %c0_181] : memref<1x1xf32, #tpu.memory_space<vmem>>, vector<1x1xf32>
    tpu.vector_store %arg16[%c0_180, %c0_181], %451 {strides = array<i32>} : memref<1x1xf32, #tpu.memory_space<vmem>>, vector<1x1xf32>,
    return
  }
}

</mosaic_0001>

<bundles_post_ra>
// kernel: tile.8
= control target key start
LH: loop header
LB: loop body
LE: loop exit
PB: predicated region body
PF: predicated region fallthrough
CT: control target
= control target key end

     0   :  { %s22_s0 = inlined_call_operand.vmem [shape: f32[8], index: 0, kind: input, shape index: {}]   ;;  %s23_s1 = inlined_call_operand.vmem [shape: f32[8,8], index: 1, kind: output, shape index: {}]  }
   0x1   :  { %v4_v0 = vld [vmem:[%s22_s0] ss:$0 sm:$0xff] }
   0x2   :  { %5 = vst [vmem:[%s23_s1] sm:$0xff] %v4_v0 }

// kernel: tile.0
= control target key start
LH: loop header
LB: loop body
LE: loop exit
PB: predicated region body
PF: predicated region fallthrough
CT: control target
= control target key end

     0   :  { %vm3_vm0 = vcmask 7168   ;;  %s84_s8 = smov 125   ;;  %s85_s13 = smov 126   ;;  %s167_s0 = inlined_call_operand.vmem [shape: f32[8,8], index: 0, kind: input, shape index: {}]   ;;  %s168_s1 = inlined_call_operand.vmem [shape: f32[64,1], index: 1, kind: output, shape index: {}]  }
   0x1   :  { %v6_v0 = vld [vmem:[%s167_s0] sm:$0xff]   ;;  %s83_s0 = smov 127   ;;  %s86_s14 = smov 124  }
   0x2   :  { %7 = vrot.lane.b32.xlu0 %v6_v0, %s83_s0  ;;  %23 = vrot.lane.b32.xlu1 %v6_v0, %s84_s8  ;;  %4 = vst.msk [vmem:[%s168_s1] ss:$8 sm:$0xf] %vm3_vm0, %v6_v0   ;;  %5 = vst.msk [vmem:[%s168_s1] ss:$8 sm:$0xf0] %vm3_vm0, %v6_v0  }
   0x3   :  { %s87_s15 = smov 123   ;;  %s88_s16 = smov 122  }
   0x4   :  { %s89_s17 = smov 121  }
   0x6   :  { %15 = vrot.lane.b32.xlu0 %v6_v0, %s85_s13  ;;  %31 = vrot.lane.b32.xlu1 %v6_v0, %s86_s14 }
   0xa   :  { %39 = vrot.lane.b32.xlu0 %v6_v0, %s87_s15  ;;  %47 = vrot.lane.b32.xlu1 %v6_v0, %s88_s16 }
   0xe   :  { %55 = vrot.lane.b32.xlu0 %v6_v0, %s89_s17 }
  0x74   :  { %v8_v1 = vpop.permute.xlu0 %7   ;;  %v24_v2 = vpop.permute.xlu1 %23  }
  0x75   :  { %62 = vst.msk [vmem:[%s168_s1 + $0x1] ss:$8 sm:$0xf] %vm3_vm0, %v8_v1   ;;  %63 = vst.msk [vmem:[%s168_s1 + $0x1] ss:$8 sm:$0xf0] %vm3_vm0, %v8_v1  }
  0x76   :  { %66 = vst.msk [vmem:[%s168_s1 + $0x3] ss:$8 sm:$0xf] %vm3_vm0, %v24_v2   ;;  %67 = vst.msk [vmem:[%s168_s1 + $0x3] ss:$8 sm:$0xf0] %vm3_vm0, %v24_v2  }
  0x78   :  { %v16_v3 = vpop.permute.xlu0 %15   ;;  %v32_v4 = vpop.permute.xlu1 %31  }
  0x79   :  { %64 = vst.msk [vmem:[%s168_s1 + $0x2] ss:$8 sm:$0xf] %vm3_vm0, %v16_v3   ;;  %65 = vst.msk [vmem:[%s168_s1 + $0x2] ss:$8 sm:$0xf0] %vm3_vm0, %v16_v3  }
  0x7a   :  { %68 = vst.msk [vmem:[%s168_s1 + $0x4] ss:$8 sm:$0xf] %vm3_vm0, %v32_v4   ;;  %69 = vst.msk [vmem:[%s168_s1 + $0x4] ss:$8 sm:$0xf0] %vm3_vm0, %v32_v4  }
  0x7c   :  { %v40_v5 = vpop.permute.xlu0 %39   ;;  %v48_v6 = vpop.permute.xlu1 %47  }
  0x7d   :  { %70 = vst.msk [vmem:[%s168_s1 + $0x5] ss:$8 sm:$0xf] %vm3_vm0, %v40_v5   ;;  %71 = vst.msk [vmem:[%s168_s1 + $0x5] ss:$8 sm:$0xf0] %vm3_vm0, %v40_v5  }
  0x7e   :  { %72 = vst.msk [vmem:[%s168_s1 + $0x6] ss:$8 sm:$0xf] %vm3_vm0, %v48_v6   ;;  %73 = vst.msk [vmem:[%s168_s1 + $0x6] ss:$8 sm:$0xf0] %vm3_vm0, %v48_v6  }
  0x80   :  { %v56_v7 = vpop.permute.xlu0 %55  }
  0x81   :  { %74 = vst.msk [vmem:[%s168_s1 + $0x7] ss:$8 sm:$0xf] %vm3_vm0, %v56_v7   ;;  %75 = vst.msk [vmem:[%s168_s1 + $0x7] ss:$8 sm:$0xf0] %vm3_vm0, %v56_v7  }

// kernel: model_forward.1
= control target key start
LH: loop header
LB: loop body
LE: loop exit
PB: predicated region body
PF: predicated region fallthrough
CT: control target
= control target key end

     0   :  { %s8289_s0 = inlined_call_operand.vmem [shape: s32[64,1], index: 0, kind: input, shape index: {}]   ;;  %s8290_s1 = inlined_call_operand.vmem [shape: s32[64,1], index: 1, kind: input, shape index: {}]   ;;  %s8291_s2 = inlined_call_operand.vmem [shape: f32[64,1], index: 2, kind: input, shape index: {}]   ;;  %s8292_s3 = inlined_call_operand.vmem [shape: f32[8,128], index: 3, kind: input, shape index: {}]   ;;  %s8293_s4 = inlined_call_operand.vmem [shape: bf16[128,32], index: 4, kind: input, shape index: {}]   ;;  %s8294_s5 = inlined_call_operand.vmem [shape: bf16[32,512], index: 5, kind: input, shape index: {}]   ;;  %s8295_s6 = inlined_call_operand.vmem [shape: bf16[128,512], index: 6, kind: input, shape index: {}]   ;;  %s8296_s7 = inlined_call_operand.vmem [shape: f32[1,512], index: 7, kind: input, shape index: {}]   ;;  %s8297_s8 = inlined_call_operand.vmem [shape: bf16[128,128], index: 8, kind: input, shape index: {}]   ;;  %s8298_s9 = inlined_call_operand.vmem [shape: f32[1,128], index: 9, kind: input, shape index: {}]   ;;  %s8299_s10 = inlined_call_operand.vmem [shape: bf16[32,512], index: 10, kind: input, shape index: {}]   ;;  %s8300_s11 = inlined_call_operand.vmem [shape: bf16[128,512], index: 11, kind: input, shape index: {}]   ;;  %s8301_s12 = inlined_call_operand.vmem [shape: bf16[128,512], index: 12, kind: input, shape index: {}]   ;;  %s8302_s13 = inlined_call_operand.vmem [shape: f32[1,512], index: 13, kind: input, shape index: {}]   ;;  %s8303_s14 = inlined_call_operand.vmem [shape: bf16[128,128], index: 14, kind: input, shape index: {}]   ;;  %s8304_s15 = inlined_call_operand.vmem [shape: f32[1,128], index: 15, kind: input, shape index: {}]   ;;  %s8305_s16 = inlined_call_operand.hbm [shape: f32[1,1], index: 16, kind: output, shape index: {}]  }
   0x1   :  { %8325 = sst [smem:[#allocation32_spill]] %s8289_s0 }
   0x2   :  { %s8326_s23 = sld [smem:[#allocation32_spill]]  ;;  %v8309_v2 = vmov 0   ;;  %v5687_v5 = vld [vmem:[%s8293_s4] sm:$0xff]   ;;  %v5688_v6 = vld [vmem:[%s8293_s4 + $0x8] sm:$0xff]   ;;  %v5689_v10 = vld [vmem:[%s8293_s4 + $0x10] sm:$0xff]  }
   0x3   :  { %5686 = vset.pattern.permute.xlu1 %v8309_v2  ;;  %5685 = vset.pattern.permute.xlu0 %v8309_v2  ;;  %v5690_v12 = vld [vmem:[%s8293_s4 + $0x18] sm:$0xff]   ;;  %v5003_v13 = vld [vmem:[%s8290_s1] sm:$0xff]  ;;  %v5004_v14 = vld [vmem:[%s8290_s1 + $0x8] sm:$0xff] }
   0x4   :  { %365 = vmatprep.mubr.bf16.mxu1 %v8309_v2  ;;  %5610 = vmatprep.subr.bf16.mxu0 %v5687_v5  ;;  %v5691_v15 = vld [vmem:[%s8293_s4 + $0x20] sm:$0xff]   ;;  %v5005_v16 = vld [vmem:[%s8290_s1 + $0x10] sm:$0xff]  ;;  %v5692_v17 = vld [vmem:[%s8293_s4 + $0x28] sm:$0xff]  }
   0x5   :  { %5611 = vmatpush3.bf16.msra.mxu0 %v5687_v5  ;;  %v5693_v18 = vld [vmem:[%s8293_s4 + $0x30] sm:$0xff]   ;;  %v5694_v19 = vld [vmem:[%s8293_s4 + $0x38] sm:$0xff]  }
   0x6   :  { %5612 = vmatprep.subr.bf16.mxu0 %v5688_v6  ;;  %v5712_v20 = vld [vmem:[%s8294_s5 + $0x4] ss:$16 sps:$4 sm:$0xff]   ;;  %v5715_v22 = vld [vmem:[%s8294_s5] ss:$16 sps:$4 sm:$0xff]  }
   0x7   :  { %333 = vmatprep.subr.bf16.mxu1 %v5712_v20  ;;  %v6427_v21 = vld [vmem:[%s8295_s6 + $0x4] ss:$16 sps:$4 sm:$0xff]  }
   0x8   :  { %v57_v0 = vld [vmem:[%s8326_s23 + $0x10] sm:$0xff]  ;;  %v55_v1 = vld [vmem:[%s8326_s23] sm:$0xff]  ;;  %v58_v3 = vld [vmem:[%s8326_s23 + $0x18] sm:$0xff]  ;;  %334 = vmatpush1.bf16.msra.mxu1 %v5715_v22 }
   0x9   :  { %72 = vperm.xlu1 %5686, %v57_v0   ;;  %66 = vperm.xlu0 %5685, %v55_v1   ;;  %v56_v4 = vld [vmem:[%s8326_s23 + $0x8] sm:$0xff]  ;;  %v59_v8 = vld [vmem:[%s8326_s23 + $0x20] sm:$0xff]  ;;  %v62_v9 = vld [vmem:[%s8326_s23 + $0x38] sm:$0xff] }
   0xa   :  { %v60_v7 = vld [vmem:[%s8326_s23 + $0x28] sm:$0xff]  ;;  %v61_v11 = vld [vmem:[%s8326_s23 + $0x30] sm:$0xff]  ;;  %5613 = vmatpush3.bf16.msra.mxu0 %v5688_v6 }
   0xb   :  { %5614 = vmatprep.subr.bf16.mxu0 %v5689_v10 }
   0xd   :  { %75 = vperm.xlu1 %5686, %v58_v3   ;;  %69 = vperm.xlu0 %5685, %v56_v4  }
   0xe   :  { %5615 = vmatpush3.bf16.msra.mxu0 %v5689_v10 }
   0xf   :  { %5616 = vmatprep.subr.bf16.mxu0 %v5690_v12 }
  0x11   :  { %81 = vperm.xlu1 %5686, %v60_v7   ;;  %78 = vperm.xlu0 %5685, %v59_v8  }
  0x12   :  { %5617 = vmatpush3.bf16.msra.mxu0 %v5690_v12 }
  0x13   :  { %5618 = vmatprep.subr.bf16.mxu0 %v5691_v15 }
  0x15   :  { %87 = vperm.xlu1 %5686, %v62_v9   ;;  %84 = vperm.xlu0 %5685, %v61_v11  }
  0x16   :  { %5619 = vmatpush3.bf16.msra.mxu0 %v5691_v15 }
  0x17   :  { %5620 = vmatprep.subr.bf16.mxu0 %v5692_v17 }
  0x19   :  { %5012 = vperm.xlu1 %5686, %v5003_v13   ;;  %5015 = vperm.xlu0 %5685, %v5004_v14  }
  0x1a   :  { %5621 = vmatpush3.bf16.msra.mxu0 %v5692_v17 }
  0x1b   :  { %5622 = vmatprep.subr.bf16.mxu0 %v5693_v18 }
  0x1d   :  { %5018 = vperm.xlu1 %5686, %v5005_v16  }
  0x1e   :  { %5623 = vmatpush3.bf16.msra.mxu0 %v5693_v18 }
  0x1f   :  { %5624 = vmatprep.subr.bf16.mxu0 %v5694_v19 }
  0x22   :  { %5625 = vmatpush3.bf16.msra.mxu0 %v5694_v19 }
  0x23   :  { %707 = vmatprep.subr.bf16.mxu0 %v6427_v21 }
  0x24   :  { %21 = vsyncpa [#allocation6], 0  ;;  %v63_v23 = vlaneseq  ;;  %v6443_v29 = vld [vmem:[%s8295_s6] ss:$16 sps:$4 sm:$0xff]   ;;  %v6448_v30 = vld [vmem:[%s8295_s6 + $0x24] ss:$16 sps:$4 sm:$0xff]  }
  0x25   :  { %v6272_v31 = vmov 1.0|1.0   ;;  %v6456_v34 = vld [vmem:[%s8295_s6 + $0x20] ss:$16 sps:$4 sm:$0xff]   ;;  %v6462_v35 = vld [vmem:[%s8295_s6 + $0x44] ss:$16 sps:$4 sm:$0xff]  }
  0x26   :  { %v6434_v26 = vand.u32 127, %v63_v23  ;;  %v6470_v38 = vld [vmem:[%s8295_s6 + $0x40] ss:$16 sps:$4 sm:$0xff]   ;;  %v6476_v39 = vld [vmem:[%s8295_s6 + $0x64] ss:$16 sps:$4 sm:$0xff]   ;;  %vm320_vm12 = vcmask 261120  }
  0x27   :  { %v6482_v40 = vld [vmem:[%s8295_s6 + $0x60] ss:$16 sps:$4 sm:$0xff]   ;;  %v6489_v41 = vld [vmem:[%s8295_s6 + $0x84] ss:$16 sps:$4 sm:$0xff]   ;;  %v5726_v51 = vld [vmem:[%s8294_s5 + $0xc] ss:$16 sps:$4 sm:$0xff]  }
  0x28   :  { %8327 = vst [vmem:[#allocation8_spill] sm:$0xff] %v6434_v26  ;;  %v6495_v42 = vld [vmem:[%s8295_s6 + $0x80] ss:$16 sps:$4 sm:$0xff]   ;;  %v6501_v43 = vld [vmem:[%s8295_s6 + $0xa4] ss:$16 sps:$4 sm:$0xff]   ;;  %vm6274_vm13 = vmmov 0  }
  0x29   :  { %v6507_v44 = vld [vmem:[%s8295_s6 + $0xa0] ss:$16 sps:$4 sm:$0xff]   ;;  %v6514_v45 = vld [vmem:[%s8295_s6 + $0xc4] ss:$16 sps:$4 sm:$0xff]   ;;  %v5724_v57 = vld [vmem:[%s8294_s5 + $0x8] ss:$16 sps:$4 sm:$0xff]  }
  0x2a   :  { %v6519_v46 = vld [vmem:[%s8295_s6 + $0xc0] ss:$16 sps:$4 sm:$0xff]   ;;  %v5718_v47 = vld [vmem:[%s8294_s5 + $0x24] ss:$16 sps:$4 sm:$0xff]   ;;  %v5730_v59 = vld [vmem:[%s8294_s5 + $0x2c] ss:$16 sps:$4 sm:$0xff]  }
  0x2b   :  { %v5721_v48 = vld [vmem:[%s8294_s5 + $0x20] ss:$16 sps:$4 sm:$0xff]   ;;  %335 = vmatprep.subr.bf16.mxu1 %v5718_v47  ;;  %v6532_v49 = vld [vmem:[%s8295_s6 + $0xe4] ss:$16 sps:$4 sm:$0xff]   ;;  %v5728_v60 = vld [vmem:[%s8294_s5 + $0x28] ss:$16 sps:$4 sm:$0xff]  }
  0x2c   :  { %336 = vmatpush1.bf16.msra.mxu1 %v5721_v48  ;;  %v6537_v50 = vld [vmem:[%s8295_s6 + $0xe0] ss:$16 sps:$4 sm:$0xff]   ;;  %v6582_v62 = vld [vmem:[%s8295_s6 + $0xc] ss:$16 sps:$4 sm:$0xff]   ;;  %v6601_v5 = vld [vmem:[%s8295_s6 + $0x8] ss:$16 sps:$4 sm:$0xff]  }
  0x2d   :  { %406 = vmatprep.subr.bf16.mxu1 %v5726_v51  ;;  %v6606_v6 = vld [vmem:[%s8295_s6 + $0x2c] ss:$16 sps:$4 sm:$0xff]   ;;  %v6614_v7 = vld [vmem:[%s8295_s6 + $0x28] ss:$16 sps:$4 sm:$0xff]  }
  0x2e   :  { %v6621_v8 = vld [vmem:[%s8295_s6 + $0x4c] ss:$16 sps:$4 sm:$0xff]   ;;  %v6627_v9 = vld [vmem:[%s8295_s6 + $0x48] ss:$16 sps:$4 sm:$0xff]  }
  0x2f   :  { %v6633_v10 = vld [vmem:[%s8295_s6 + $0x6c] ss:$16 sps:$4 sm:$0xff]   ;;  %v6641_v11 = vld [vmem:[%s8295_s6 + $0x68] ss:$16 sps:$4 sm:$0xff]  }
  0x30   :  { %v6648_v12 = vld [vmem:[%s8295_s6 + $0x8c] ss:$16 sps:$4 sm:$0xff]   ;;  %v6654_v13 = vld [vmem:[%s8295_s6 + $0x88] ss:$16 sps:$4 sm:$0xff]  }
  0x31   :  { %v6660_v14 = vld [vmem:[%s8295_s6 + $0xac] ss:$16 sps:$4 sm:$0xff]   ;;  %v6668_v15 = vld [vmem:[%s8295_s6 + $0xa8] ss:$16 sps:$4 sm:$0xff]  }
  0x32   :  { %v6675_v16 = vld [vmem:[%s8295_s6 + $0xcc] ss:$16 sps:$4 sm:$0xff]   ;;  %v6681_v17 = vld [vmem:[%s8295_s6 + $0xc8] ss:$16 sps:$4 sm:$0xff]  }
  0x33   :  { %v6687_v18 = vld [vmem:[%s8295_s6 + $0xec] ss:$16 sps:$4 sm:$0xff]   ;;  %v6695_v19 = vld [vmem:[%s8295_s6 + $0xe8] ss:$16 sps:$4 sm:$0xff]  }
  0x88   :  { %v73_v24 = vpop.permute.xlu1 %72  ;;  %v67_v25 = vpop.permute.xlu0 %66 }
  0x89   :  { %vm91_vm0 = vcmp.eq.s32.totalorder %v6434_v26, %v73_v24  ;;  %vm89_vm3 = vcmp.eq.s32.totalorder %v6434_v26, %v67_v25 }
  0x8c   :  { %v76_v27 = vpop.permute.xlu1 %75  ;;  %v70_v28 = vpop.permute.xlu0 %69 }
  0x8d   :  { %vm92_vm1 = vcmp.eq.s32.totalorder %v6434_v26, %v76_v27  ;;  %vm90_vm2 = vcmp.eq.s32.totalorder %v6434_v26, %v70_v28  ;;  %v6720_v27 = vshrl.u32 %v63_v23, 7 }
  0x8e   :  { %vm5153_vm4 = vmpackc.low %vm92_vm1, %vm91_vm0 }
  0x8f   :  { %vm5151_vm5 = vmpackc.low %vm90_vm2, %vm89_vm3  ;;  %8332 = vst [vmem:[#allocation13_spill] sm:$0xff] %v6720_v27  ;;  %v8308_v28 = vsub.s32 0, %v6720_v27 }
  0x90   :  { %5626 = vmatprep.mubr.msk.bf16.mxu0 %vm5151_vm5, %v6272_v31  ;;  %v82_v32 = vpop.permute.xlu1 %81  ;;  %v79_v33 = vpop.permute.xlu0 %78 }
  0x91   :  { %vm94_vm6 = vcmp.eq.s32.totalorder %v6434_v26, %v82_v32  ;;  %5627 = vmatmul.mubr.msk.bf16.vlgmr.msra.gmra.mrb[0].mxu0 %vm5153_vm4, %v6272_v31  ;;  %vm93_vm7 = vcmp.eq.s32.totalorder %v6434_v26, %v79_v33  ;;  %v8307_v32 = vsub.s32 1, %v6720_v27 }
  0x92   :  { %vm5155_vm8 = vmpackc.low %vm94_vm6, %vm93_vm7  ;;  %708 = vmatpush1.bf16.msra.mxu0 %v6443_v29  ;;  %vm5091_vm6 = vcmask 7168   ;;  %vm5119_vm7 = vcmask 0  }
  0x93   :  { %5630 = vmatprep.mubr.msk.bf16.mxu0 %vm5155_vm8, %v6272_v31  ;;  %709 = vmatprep.subr.bf16.mxu0 %v6448_v30 }
  0x94   :  { %v88_v36 = vpop.permute.xlu1 %87  ;;  %v85_v37 = vpop.permute.xlu0 %84 }
  0x95   :  { %vm96_vm9 = vcmp.eq.s32.totalorder %v6434_v26, %v88_v36  ;;  %vm95_vm10 = vcmp.eq.s32.totalorder %v6434_v26, %v85_v37 }
  0x96   :  { %vm5157_vm11 = vmpackc.low %vm96_vm9, %vm95_vm10  ;;  %710 = vmatpush1.bf16.msra.mxu0 %v6456_v34 }
  0x97   :  { %711 = vmatprep.subr.bf16.mxu0 %v6462_v35 }
  0x99   :  { %5631 = vmatmul.mubr.msk.bf16.gmra.mrb[4].mxu0 %vm5157_vm11, %v6272_v31  ;;  %v258_v31 = vld [vmem:[%s8296_s7] sm:$0xf] }
  0x9a   :  { %712 = vmatpush1.bf16.msra.mxu0 %v6470_v38  ;;  %739 = vmatprep.mubr.bf16.mxu0 %v8309_v2  ;;  %v263_v33 = vrot.slane %v258_v31, %v8308_v28  ;;  %v267_v36 = vrot.slane %v258_v31, %v8307_v32 }
  0x9b   :  { %713 = vmatprep.subr.bf16.mxu0 %v6476_v39 }
  0x9e   :  { %714 = vmatpush1.bf16.msra.mxu0 %v6482_v40 }
  0x9f   :  { %715 = vmatprep.subr.bf16.mxu0 %v6489_v41 }
  0xa2   :  { %716 = vmatpush1.bf16.msra.mxu0 %v6495_v42 }
  0xa3   :  { %717 = vmatprep.subr.bf16.mxu0 %v6501_v43 }
  0xa6   :  { %718 = vmatpush1.bf16.msra.mxu0 %v6507_v44 }
  0xa7   :  { %719 = vmatprep.subr.bf16.mxu0 %v6514_v45 }
  0xaa   :  { %720 = vmatpush1.bf16.msra.mxu0 %v6519_v46 }
  0xab   :  { %721 = vmatprep.subr.bf16.mxu0 %v6532_v49 }
  0xae   :  { %722 = vmatpush1.bf16.msra.mxu0 %v6537_v50 }
  0xaf   :  { %823 = vmatprep.subr.bf16.mxu0 %v6427_v21 }
  0xb1   :  { %740 = vmatmul.mubr.bf16.vlgmr.msra.gmra.mrb[8].mxu0 %v8309_v2 }
  0xb2   :  { %824 = vmatpush1.bf16.msra.mxu0 %v6443_v29  ;;  %855 = vmatprep.mubr.bf16.mxu0 %v8309_v2 }
  0xb3   :  { %825 = vmatprep.subr.bf16.mxu0 %v6448_v30 }
  0xb6   :  { %826 = vmatpush1.bf16.msra.mxu0 %v6456_v34 }
  0xb7   :  { %827 = vmatprep.subr.bf16.mxu0 %v6462_v35 }
  0xba   :  { %828 = vmatpush1.bf16.msra.mxu0 %v6470_v38 }
  0xbb   :  { %829 = vmatprep.subr.bf16.mxu0 %v6476_v39 }
  0xbe   :  { %830 = vmatpush1.bf16.msra.mxu0 %v6482_v40 }
  0xbf   :  { %831 = vmatprep.subr.bf16.mxu0 %v6489_v41 }
  0xc2   :  { %832 = vmatpush1.bf16.msra.mxu0 %v6495_v42 }
  0xc3   :  { %833 = vmatprep.subr.bf16.mxu0 %v6501_v43 }
  0xc6   :  { %834 = vmatpush1.bf16.msra.mxu0 %v6507_v44 }
  0xc7   :  { %835 = vmatprep.subr.bf16.mxu0 %v6514_v45 }
  0xca   :  { %836 = vmatpush1.bf16.msra.mxu0 %v6519_v46 }
  0xcb   :  { %837 = vmatprep.subr.bf16.mxu0 %v6532_v49 }
  0xce   :  { %838 = vmatpush1.bf16.msra.mxu0 %v6537_v50 }
  0xcf   :  { %939 = vmatprep.subr.bf16.mxu0 %v6427_v21 }
 0x164   :  { %v5628_v52 = vpop.f32.mrb[0].mxu0 }
 0x165   :  { %v215_v53 = vpop.f32.mrb[1].mxu0 }
 0x166   :  { %v5629_v54 = vpop.f32.mrb[2].mxu0 }
 0x167   :  { %v6563_v55 = vpack.c.bf16 %v5629_v54, %v5628_v52  ;;  %v218_v56 = vpop.f32.mrb[3].mxu0 }
 0x168   :  { %v6568_v58 = vpack.c.bf16 %v218_v56, %v215_v53 }
 0x169   :  { %8328 = vst [vmem:[#allocation9_spill] sm:$0xff] %v6563_v55 }
 0x16a   :  { %8329 = vst [vmem:[#allocation10_spill] sm:$0xff] %v6568_v58  ;;  %5167 = vmatmul.mubr.msk.bf16.vlgmr.msra.gmra.mrb[0].mxu1 %vm320_vm12, %v6568_v58 }
 0x16b   :  { %407 = vmatpush1.bf16.msra.mxu1 %v5724_v57  ;;  %375 = vmatprep.mubr.bf16.mxu1 %v8309_v2 }
 0x16c   :  { %v5632_v61 = vpop.f32.mrb[4].mxu0  ;;  %408 = vmatprep.subr.bf16.mxu1 %v5730_v59 }
 0x16d   :  { %v231_v63 = vpop.f32.mrb[5].mxu0 }
 0x16e   :  { %v5633_v0 = vpop.f32.mrb[6].mxu0 }
 0x16f   :  { %v6584_v1 = vpack.c.bf16 %v5633_v0, %v5632_v61  ;;  %v234_v3 = vpop.f32.mrb[7].mxu0  ;;  %409 = vmatpush1.bf16.msra.mxu1 %v5728_v60 }
 0x170   :  { %v6586_v4 = vpack.c.bf16 %v234_v3, %v231_v63  ;;  %748 = vmatprep.subr.bf16.mxu1 %v6582_v62 }
 0x171   :  { %8330 = vst [vmem:[#allocation11_spill] sm:$0xff] %v6584_v1 }
 0x172   :  { %8331 = vst [vmem:[#allocation12_spill] sm:$0xff] %v6586_v4  ;;  %5168 = vmatmul.mubr.msk.bf16.gmra.mrb[4].mxu1 %vm320_vm12, %v6563_v55 }
 0x173   :  { %385 = vmatprep.mubr.bf16.mxu1 %v8309_v2 }
 0x17a   :  { %5169 = vmatmul.mubr.msk.bf16.gmra.mrb[8].mxu1 %vm320_vm12, %v6586_v4 }
 0x17b   :  { %395 = vmatprep.mubr.bf16.mxu1 %v8309_v2 }
 0x182   :  { %5170 = vmatmul.mubr.msk.bf16.gmra.mrb[12].mxu1 %vm320_vm12, %v6584_v1 }
 0x183   :  { %438 = vmatprep.mubr.bf16.mxu1 %v8309_v2 }
 0x184   :  { %v741_v20 = vpop.f32.mrb[8].mxu0 }
 0x185   :  { %v743_v22 = vpop.f32.mrb[9].mxu0 }
 0x186   :  { %v745_v24 = vpop.f32.mrb[10].mxu0 }
 0x187   :  { %v746_v25 = vpop.f32.mrb[11].mxu0 }
 0x18a   :  { %5171 = vmatmul.mubr.msk.bf16.vlgmr.msra.gmra.mrb[16].mxu1 %vm320_vm12, %v6568_v58 }
 0x18b   :  { %749 = vmatpush1.bf16.msra.mxu1 %v6601_v5  ;;  %448 = vmatprep.mubr.bf16.mxu1 %v8309_v2 }
 0x18c   :  { %750 = vmatprep.subr.bf16.mxu1 %v6606_v6 }
 0x18f   :  { %751 = vmatpush1.bf16.msra.mxu1 %v6614_v7 }
 0x190   :  { %752 = vmatprep.subr.bf16.mxu1 %v6621_v8 }
 0x192   :  { %5172 = vmatmul.mubr.msk.bf16.gmra.mrb[20].mxu1 %vm320_vm12, %v6563_v55 }
 0x193   :  { %753 = vmatpush1.bf16.msra.mxu1 %v6627_v9  ;;  %458 = vmatprep.mubr.bf16.mxu1 %v8309_v2 }
 0x194   :  { %754 = vmatprep.subr.bf16.mxu1 %v6633_v10 }
 0x197   :  { %755 = vmatpush1.bf16.msra.mxu1 %v6641_v11 }
 0x198   :  { %756 = vmatprep.subr.bf16.mxu1 %v6648_v12 }
 0x19a   :  { %5173 = vmatmul.mubr.msk.bf16.gmra.mrb[24].mxu1 %vm320_vm12, %v6586_v4 }
 0x19b   :  { %757 = vmatpush1.bf16.msra.mxu1 %v6654_v13  ;;  %468 = vmatprep.mubr.bf16.mxu1 %v8309_v2 }
 0x19c   :  { %758 = vmatprep.subr.bf16.mxu1 %v6660_v14 }
 0x19f   :  { %759 = vmatpush1.bf16.msra.mxu1 %v6668_v15 }
 0x1a0   :  { %760 = vmatprep.subr.bf16.mxu1 %v6675_v16 }
 0x1a2   :  { %5174 = vmatmul.mubr.msk.bf16.gmra.mrb[28].mxu1 %vm320_vm12, %v6584_v1 }
 0x1a3   :  { %761 = vmatpush1.bf16.msra.mxu1 %v6681_v17  ;;  %780 = vmatprep.mubr.bf16.mxu1 %v8309_v2 }
 0x1a4   :  { %762 = vmatprep.subr.bf16.mxu1 %v6687_v18 }
 0x1a7   :  { %763 = vmatpush1.bf16.msra.mxu1 %v6695_v19 }
 0x1a8   :  { %864 = vmatprep.subr.bf16.mxu1 %v6582_v62 }
 0x1aa   :  { %781 = vmatmul.mubr.bf16.vlgmr.msra.gmra.mrb[32].mxu1 %v8309_v2 }
 0x1ab   :  { %865 = vmatpush1.bf16.msra.mxu1 %v6601_v5  ;;  %896 = vmatprep.mubr.bf16.mxu1 %v8309_v2 }
 0x1ac   :  { %866 = vmatprep.subr.bf16.mxu1 %v6606_v6 }
 0x1af   :  { %867 = vmatpush1.bf16.msra.mxu1 %v6614_v7 }
 0x1b0   :  { %868 = vmatprep.subr.bf16.mxu1 %v6621_v8 }
 0x1b3   :  { %869 = vmatpush1.bf16.msra.mxu1 %v6627_v9 }
 0x1b4   :  { %870 = vmatprep.subr.bf16.mxu1 %v6633_v10 }
 0x1b7   :  { %871 = vmatpush1.bf16.msra.mxu1 %v6641_v11 }
 0x1b8   :  { %872 = vmatprep.subr.bf16.mxu1 %v6648_v12 }
 0x1bb   :  { %873 = vmatpush1.bf16.msra.mxu1 %v6654_v13 }
 0x1bc   :  { %874 = vmatprep.subr.bf16.mxu1 %v6660_v14 }
 0x1bf   :  { %875 = vmatpush1.bf16.msra.mxu1 %v6668_v15 }
 0x1c0   :  { %876 = vmatprep.subr.bf16.mxu1 %v6675_v16 }
 0x1c3   :  { %877 = vmatpush1.bf16.msra.mxu1 %v6681_v17 }
 0x1c4   :  { %878 = vmatprep.subr.bf16.mxu1 %v6687_v18 }
 0x1c7   :  { %879 = vmatpush1.bf16.msra.mxu1 %v6695_v19 }
 0x1c8   :  { %980 = vmatprep.subr.bf16.mxu1 %v6582_v62 }
 0x23d   :  { %v367_v37 = vpop.f32.mrb[0].mxu1 }
 0x23e   :  { %v368_v47 = vadd.f32 %v367_v37, %v263_v33  ;;  %v369_v48 = vpop.f32.mrb[1].mxu1 }
 0x23f   :  { %v370_v51 = vadd.f32 %v369_v48, %v267_v36  ;;  %v371_v23 = vpop.f32.mrb[2].mxu1 }
 0x240   :  { %v6731_v52 = vadd.f32 %v371_v23, %v263_v33  ;;  %v789_v53 = vadd.f32 %v741_v20, %v368_v47  ;;  %v373_v54 = vpop.f32.mrb[3].mxu1 }
 0x241   :  { %v6733_v56 = vadd.f32 %v373_v54, %v267_v36  ;;  %v790_v57 = vadd.f32 %v743_v22, %v370_v51 }
 0x245   :  { %v377_v59 = vpop.f32.mrb[4].mxu1 }
 0x246   :  { %v6735_v60 = vadd.f32 %v377_v59, %v263_v33  ;;  %v379_v61 = vpop.f32.mrb[5].mxu1 }
 0x247   :  { %v6737_v63 = vadd.f32 %v379_v61, %v267_v36  ;;  %v381_v0 = vpop.f32.mrb[6].mxu1 }
 0x248   :  { %v6739_v3 = vadd.f32 %v381_v0, %v263_v33  ;;  %v383_v24 = vpop.f32.mrb[7].mxu1 }
 0x249   :  { %v6741_v25 = vadd.f32 %v383_v24, %v267_v36 }
 0x24b   :  { %8333 = vst [vmem:[#allocation14_spill] sm:$0xff] %v6741_v25 }
 0x24d   :  { %v387_v37 = vpop.f32.mrb[8].mxu1 }
 0x24e   :  { %v6743_v48 = vadd.f32 %v387_v37, %v263_v33  ;;  %v389_v20 = vpop.f32.mrb[9].mxu1 }
 0x24f   :  { %v6745_v47 = vadd.f32 %v389_v20, %v267_v36  ;;  %v391_v23 = vpop.f32.mrb[10].mxu1  ;;  %v8321_v20 = vsub.s32 2, %v6720_v27 }
 0x250   :  { %8334 = vst [vmem:[#allocation15_spill] sm:$0xff] %v6743_v48  ;;  %v6747_v22 = vadd.f32 %v391_v23, %v263_v33  ;;  %v393_v51 = vpop.f32.mrb[11].mxu1  ;;  %v8324_v23 = vsub.s32 3, %v6720_v27  ;;  %v5208_v27 = vmul.f32 -1.442695, %v790_v57 }
 0x251   :  { %8335 = vst [vmem:[#allocation16_spill] sm:$0xff] %v6745_v47  ;;  %v6749_v54 = vadd.f32 %v393_v51, %v267_v36  ;;  %v271_v51 = vrot.slane %v258_v31, %v8321_v20 }
 0x252   :  { %8336 = vst [vmem:[#allocation17_spill] sm:$0xff] %v6747_v22  ;;  %5927 = vpow2.f32 %v5208_v27 }
 0x253   :  { %8337 = vst [vmem:[#allocation18_spill] sm:$0xff] %v6749_v54 }
 0x255   :  { %v397_v59 = vpop.f32.mrb[12].mxu1 }
 0x256   :  { %v6751_v61 = vadd.f32 %v397_v59, %v263_v33  ;;  %v399_v0 = vpop.f32.mrb[13].mxu1  ;;  %v275_v59 = vrot.slane %v258_v31, %v8324_v23  ;;  %v5207_v31 = vmul.f32 -1.442695, %v789_v53 }
 0x257   :  { %v6753_v32 = vadd.f32 %v399_v0, %v267_v36  ;;  %v401_v24 = vpop.f32.mrb[14].mxu1 }
 0x258   :  { %8338 = vst [vmem:[#allocation19_spill] sm:$0xff] %v6751_v61  ;;  %v6755_v28 = vadd.f32 %v401_v24, %v263_v33  ;;  %v403_v37 = vpop.f32.mrb[15].mxu1  ;;  %5929 = vpow2.f32 %v5207_v31 }
 0x259   :  { %8339 = vst [vmem:[#allocation20_spill] sm:$0xff] %v6753_v32  ;;  %v6757_v2 = vadd.f32 %v403_v37, %v267_v36 }
 0x25a   :  { %8340 = vst [vmem:[#allocation21_spill] sm:$0xff] %v6755_v28 }
 0x25b   :  { %8341 = vst [vmem:[#allocation22_spill] sm:$0xff] %v6757_v2 }
 0x25c   :  { %v5928_v27 = vpop.eup %5927 }
 0x25d   :  { %v440_v26 = vpop.f32.mrb[16].mxu1 }
 0x25e   :  { %v442_v1 = vpop.f32.mrb[17].mxu1 }
 0x25f   :  { %v444_v0 = vpop.f32.mrb[18].mxu1  ;;  %v443_v48 = vadd.f32 %v442_v1, %v275_v59 }
 0x260   :  { %v6765_v4 = vadd.f32 %v444_v0, %v271_v51  ;;  %v446_v33 = vpop.f32.mrb[19].mxu1 }
 0x261   :  { %v6767_v24 = vadd.f32 %v446_v33, %v275_v59 }
 0x262   :  { %v5930_v31 = vpop.eup %5929 }
 0x265   :  { %v450_v36 = vpop.f32.mrb[20].mxu1 }
 0x266   :  { %v6769_v37 = vadd.f32 %v450_v36, %v271_v51  ;;  %v452_v55 = vpop.f32.mrb[21].mxu1 }
 0x267   :  { %v6771_v58 = vadd.f32 %v452_v55, %v275_v59  ;;  %v454_v2 = vpop.f32.mrb[22].mxu1 }
 0x268   :  { %v6773_v28 = vadd.f32 %v454_v2, %v271_v51  ;;  %v456_v20 = vpop.f32.mrb[23].mxu1 }
 0x269   :  { %v6775_v32 = vadd.f32 %v456_v20, %v275_v59 }
 0x26b   :  { %8342 = vst [vmem:[#allocation23_spill] sm:$0xff] %v6775_v32 }
 0x26d   :  { %v460_v23 = vpop.f32.mrb[24].mxu1 }
 0x26e   :  { %v6777_v0 = vadd.f32 %v460_v23, %v271_v51  ;;  %v462_v33 = vpop.f32.mrb[25].mxu1 }
 0x26f   :  { %v6779_v61 = vadd.f32 %v462_v33, %v275_v59  ;;  %v464_v36 = vpop.f32.mrb[26].mxu1 }
 0x270   :  { %8343 = vst [vmem:[#allocation24_spill] sm:$0xff] %v6777_v0  ;;  %v6781_v54 = vadd.f32 %v464_v36, %v271_v51  ;;  %v466_v55 = vpop.f32.mrb[27].mxu1  ;;  %v802_v36 = vadd.f32 1.0, %v5930_v31 }
 0x271   :  { %8344 = vst [vmem:[#allocation25_spill] sm:$0xff] %v6779_v61  ;;  %v6783_v22 = vadd.f32 %v466_v55, %v275_v59  ;;  %v803_v61 = vadd.f32 1.0, %v5928_v27 }
 0x272   :  { %8345 = vst [vmem:[#allocation26_spill] sm:$0xff] %v6781_v54  ;;  %v441_v54 = vadd.f32 %v440_v26, %v271_v51 }
 0x273   :  { %8346 = vst [vmem:[#allocation27_spill] sm:$0xff] %v6783_v22  ;;  %5931 = vrcp.f32 %v803_v61 }
 0x274   :  { %5933 = vrcp.f32 %v802_v36 }
 0x275   :  { %v470_v2 = vpop.f32.mrb[28].mxu1 }
 0x276   :  { %v6785_v47 = vadd.f32 %v470_v2, %v271_v51  ;;  %v472_v20 = vpop.f32.mrb[29].mxu1 }
 0x277   :  { %v6787_v57 = vadd.f32 %v472_v20, %v275_v59  ;;  %v474_v53 = vpop.f32.mrb[30].mxu1 }
 0x278   :  { %8347 = vst [vmem:[#allocation28_spill] sm:$0xff] %v6785_v47  ;;  %v6789_v23 = vadd.f32 %v474_v53, %v271_v51  ;;  %v476_v0 = vpop.f32.mrb[31].mxu1 }
 0x279   :  { %8348 = vst [vmem:[#allocation29_spill] sm:$0xff] %v6787_v57  ;;  %v6791_v33 = vadd.f32 %v476_v0, %v275_v59 }
 0x27a   :  { %8349 = vst [vmem:[#allocation30_spill] sm:$0xff] %v6789_v23 }
 0x27b   :  { %8350 = vst [vmem:[#allocation31_spill] sm:$0xff] %v6791_v33 }
 0x27d   :  { %v782_v55 = vpop.f32.mrb[32].mxu1  ;;  %v5932_v53 = vpop.eup %5931 }
 0x27e   :  { %v791_v22 = vadd.f32 %v782_v55, %v441_v54  ;;  %v784_v32 = vpop.f32.mrb[33].mxu1  ;;  %v5934_v23 = vpop.eup %5933  ;;  %v812_v33 = vmul.f32 0.0, %v5932_v53 }
 0x27f   :  { %v792_v2 = vadd.f32 %v784_v32, %v443_v48  ;;  %v786_v47 = vpop.f32.mrb[34].mxu1 }
 0x280   :  { %v5209_v20 = vmul.f32 -1.442695, %v791_v22  ;;  %v787_v57 = vpop.f32.mrb[35].mxu1 }
 0x281   :  { %5935 = vtanh.f32 %v792_v2 }
 0x282   :  { %5937 = vpow2.f32 %v5209_v20 }
 0x28b   :  { %v5936_v25 = vpop.eup %5935 }
 0x28c   :  { %v5938_v0 = vpop.eup %5937  ;;  %v813_v27 = vmul.f32 %v5936_v25, %v5934_v23  ;;  %v8351_v25 = vmov 0  }
 0x28d   :  { %v804_v31 = vadd.f32 1.0, %v5938_v0 }
 0x28e   :  { %v6793_v26 = vadd.f32 %v813_v27, %v812_v33 }
 0x28f   :  { %5939 = vrcp.f32 %v804_v31 }
 0x290   :  { %5941 = vtanh.f32 %v6793_v26 }
 0x299   :  { %v5940_v1 = vpop.eup %5939 }
 0x29a   :  { %v5942_v32 = vpop.eup %5941 }
 0x29b   :  { %v816_v48 = vmul.f32 %v5942_v32, %v5940_v1 }
 0x29d   :  { %v822_v47 = vpack.c.bf16 %v816_v48, %v816_v48 }
 0x29f   :  { %856 = vmatmul.mubr.bf16.vlgmr.msra.gmra.mrb[12].mxu0 %v822_v47  ;;  %897 = vmatmul.mubr.bf16.vlgmr.msra.gmra.mrb[36].mxu1 %v822_v47 }
 0x2a0   :  { %940 = vmatpush1.bf16.msra.mxu0 %v6443_v29  ;;  %981 = vmatpush1.bf16.msra.mxu1 %v6601_v5 }
 0x2a1   :  { %941 = vmatprep.subr.bf16.mxu0 %v6448_v30  ;;  %982 = vmatprep.subr.bf16.mxu1 %v6606_v6 }
 0x2a2   :  { %971 = vmatprep.mubr.bf16.mxu0 %v8351_v25  ;;  %1012 = vmatprep.mubr.bf16.mxu1 %v8351_v25 }
 0x2a4   :  { %942 = vmatpush1.bf16.msra.mxu0 %v6456_v34  ;;  %983 = vmatpush1.bf16.msra.mxu1 %v6614_v7 }
 0x2a5   :  { %943 = vmatprep.subr.bf16.mxu0 %v6462_v35  ;;  %984 = vmatprep.subr.bf16.mxu1 %v6621_v8 }
 0x2a8   :  { %944 = vmatpush1.bf16.msra.mxu0 %v6470_v38  ;;  %985 = vmatpush1.bf16.msra.mxu1 %v6627_v9 }
 0x2a9   :  { %945 = vmatprep.subr.bf16.mxu0 %v6476_v39  ;;  %986 = vmatprep.subr.bf16.mxu1 %v6633_v10 }
 0x2ac   :  { %946 = vmatpush1.bf16.msra.mxu0 %v6482_v40  ;;  %987 = vmatpush1.bf16.msra.mxu1 %v6641_v11 }
 0x2ad   :  { %947 = vmatprep.subr.bf16.mxu0 %v6489_v41  ;;  %988 = vmatprep.subr.bf16.mxu1 %v6648_v12 }
 0x2b0   :  { %948 = vmatpush1.bf16.msra.mxu0 %v6495_v42  ;;  %989 = vmatpush1.bf16.msra.mxu1 %v6654_v13 }
 0x2b1   :  { %949 = vmatprep.subr.bf16.mxu0 %v6501_v43  ;;  %990 = vmatprep.subr.bf16.mxu1 %v6660_v14 }
 0x2b4   :  { %950 = vmatpush1.bf16.msra.mxu0 %v6507_v44  ;;  %991 = vmatpush1.bf16.msra.mxu1 %v6668_v15 }
 0x2b5   :  { %951 = vmatprep.subr.bf16.mxu0 %v6514_v45  ;;  %992 = vmatprep.subr.bf16.mxu1 %v6675_v16 }
 0x2b8   :  { %952 = vmatpush1.bf16.msra.mxu0 %v6519_v46  ;;  %993 = vmatpush1.bf16.msra.mxu1 %v6681_v17 }
 0x2b9   :  { %953 = vmatprep.subr.bf16.mxu0 %v6532_v49  ;;  %994 = vmatprep.subr.bf16.mxu1 %v6687_v18 }
 0x2bc   :  { %954 = vmatpush1.bf16.msra.mxu0 %v6537_v50  ;;  %995 = vmatpush1.bf16.msra.mxu1 %v6695_v19 }
 0x2bd   :  { %1055 = vmatprep.subr.bf16.mxu0 %v6427_v21  ;;  %1096 = vmatprep.subr.bf16.mxu1 %v6582_v62 }
 0x372   :  { %v857_v22 = vpop.f32.mrb[12].mxu0  ;;  %v898_v54 = vpop.f32.mrb[36].mxu1 }
 0x373   :  { %v905_v61 = vadd.f32 %v857_v22, %v6731_v52  ;;  %v907_v51 = vadd.f32 %v898_v54, %v6765_v4  ;;  %v859_v59 = vpop.f32.mrb[13].mxu0  ;;  %v900_v57 = vpop.f32.mrb[37].mxu1 }
 0x374   :  { %v906_v23 = vadd.f32 %v859_v59, %v6733_v56  ;;  %v908_v33 = vadd.f32 %v900_v57, %v6767_v24  ;;  %v861_v36 = vpop.f32.mrb[14].mxu0  ;;  %v902_v55 = vpop.f32.mrb[38].mxu1 }
 0x375   :  { %v5210_v2 = vmul.f32 -1.442695, %v905_v61  ;;  %v862_v20 = vpop.f32.mrb[15].mxu0  ;;  %v903_v53 = vpop.f32.mrb[39].mxu1  ;;  %v5212_v0 = vmul.f32 -1.442695, %v907_v51 }
 0x376   :  { %v5211_v21 = vmul.f32 -1.442695, %v906_v23 }
 0x377   :  { %5943 = vpow2.f32 %v5210_v2 }
 0x378   :  { %5945 = vpow2.f32 %v5211_v21 }
 0x379   :  { %5947 = vtanh.f32 %v908_v33 }
 0x37a   :  { %5949 = vpow2.f32 %v5212_v0 }
 0x381   :  { %v5944_v27 = vpop.eup %5943 }
 0x382   :  { %v918_v31 = vadd.f32 1.0, %v5944_v27  ;;  %v5946_v52 = vpop.eup %5945 }
 0x383   :  { %v919_v4 = vadd.f32 1.0, %v5946_v52  ;;  %v5948_v56 = vpop.eup %5947 }
 0x384   :  { %5951 = vrcp.f32 %v918_v31  ;;  %v5950_v1 = vpop.eup %5949 }
 0x385   :  { %5953 = vrcp.f32 %v919_v4  ;;  %v920_v47 = vadd.f32 1.0, %v5950_v1 }
 0x387   :  { %5955 = vrcp.f32 %v920_v47 }
 0x38e   :  { %v5952_v24 = vpop.eup %5951 }
 0x38f   :  { %v929_v32 = vmul.f32 %v5952_v24, %v5948_v56  ;;  %v5954_v48 = vpop.eup %5953 }
 0x390   :  { %v928_v22 = vmul.f32 %v5954_v48, %v6793_v26  ;;  %v6873_v26 = vld [vmem:[%s8295_s6 + $0x4] ss:$16 sps:$4 sm:$0xff]  }
 0x391   :  { %v5956_v61 = vpop.eup %5955 }
 0x392   :  { %v6835_v54 = vadd.f32 %v929_v32, %v928_v22 }
 0x394   :  { %5957 = vtanh.f32 %v6835_v54 }
 0x39e   :  { %v5958_v51 = vpop.eup %5957 }
 0x39f   :  { %v932_v59 = vmul.f32 %v5958_v51, %v5956_v61 }
 0x3a1   :  { %v938_v57 = vpack.c.bf16 %v932_v59, %v932_v59 }
 0x3a3   :  { %972 = vmatmul.mubr.bf16.vlgmr.msra.gmra.mrb[16].mxu0 %v938_v57  ;;  %1013 = vmatmul.mubr.bf16.vlgmr.msra.gmra.mrb[40].mxu1 %v938_v57 }
 0x3a4   :  { %1056 = vmatpush1.bf16.msra.mxu0 %v6443_v29  ;;  %1097 = vmatpush1.bf16.msra.mxu1 %v6601_v5 }
 0x3a5   :  { %1057 = vmatprep.subr.bf16.mxu0 %v6448_v30  ;;  %1098 = vmatprep.subr.bf16.mxu1 %v6606_v6 }
 0x3a6   :  { %1087 = vmatprep.mubr.bf16.mxu0 %v8351_v25  ;;  %1128 = vmatprep.mubr.bf16.mxu1 %v8351_v25 }
 0x3a8   :  { %1058 = vmatpush1.bf16.msra.mxu0 %v6456_v34  ;;  %1099 = vmatpush1.bf16.msra.mxu1 %v6614_v7 }
 0x3a9   :  { %1059 = vmatprep.subr.bf16.mxu0 %v6462_v35  ;;  %1100 = vmatprep.subr.bf16.mxu1 %v6621_v8 }
 0x3ac   :  { %1060 = vmatpush1.bf16.msra.mxu0 %v6470_v38  ;;  %1101 = vmatpush1.bf16.msra.mxu1 %v6627_v9 }
 0x3ad   :  { %1061 = vmatprep.subr.bf16.mxu0 %v6476_v39  ;;  %1102 = vmatprep.subr.bf16.mxu1 %v6633_v10 }
 0x3b0   :  { %1062 = vmatpush1.bf16.msra.mxu0 %v6482_v40  ;;  %1103 = vmatpush1.bf16.msra.mxu1 %v6641_v11 }
 0x3b1   :  { %1063 = vmatprep.subr.bf16.mxu0 %v6489_v41  ;;  %1104 = vmatprep.subr.bf16.mxu1 %v6648_v12 }
 0x3b4   :  { %1064 = vmatpush1.bf16.msra.mxu0 %v6495_v42  ;;  %1105 = vmatpush1.bf16.msra.mxu1 %v6654_v13 }
 0x3b5   :  { %1065 = vmatprep.subr.bf16.mxu0 %v6501_v43  ;;  %1106 = vmatprep.subr.bf16.mxu1 %v6660_v14 }
 0x3b8   :  { %1066 = vmatpush1.bf16.msra.mxu0 %v6507_v44  ;;  %1107 = vmatpush1.bf16.msra.mxu1 %v6668_v15 }
 0x3b9   :  { %1067 = vmatprep.subr.bf16.mxu0 %v6514_v45  ;;  %1108 = vmatprep.subr.bf16.mxu1 %v6675_v16 }
 0x3bc   :  { %1068 = vmatpush1.bf16.msra.mxu0 %v6519_v46  ;;  %1109 = vmatpush1.bf16.msra.mxu1 %v6681_v17 }
 0x3bd   :  { %1069 = vmatprep.subr.bf16.mxu0 %v6532_v49  ;;  %1110 = vmatprep.subr.bf16.mxu1 %v6687_v18 }
 0x3c0   :  { %1070 = vmatpush1.bf16.msra.mxu0 %v6537_v50  ;;  %1111 = vmatpush1.bf16.msra.mxu1 %v6695_v19 }
 0x3c1   :  { %1171 = vmatprep.subr.bf16.mxu0 %v6873_v26  ;;  %1212 = vmatprep.subr.bf16.mxu1 %v6582_v62 }
 0x476   :  { %v973_v23 = vpop.f32.mrb[16].mxu0  ;;  %v1014_v33 = vpop.f32.mrb[40].mxu1 }
 0x477   :  { %v1021_v36 = vadd.f32 %v973_v23, %v6735_v60  ;;  %v1023_v55 = vadd.f32 %v1014_v33, %v6769_v37  ;;  %v975_v2 = vpop.f32.mrb[17].mxu0  ;;  %v1016_v20 = vpop.f32.mrb[41].mxu1 }
 0x478   :  { %v1022_v53 = vadd.f32 %v975_v2, %v6737_v63  ;;  %v1024_v21 = vadd.f32 %v1016_v20, %v6771_v58  ;;  %v977_v0 = vpop.f32.mrb[18].mxu0  ;;  %v1018_v27 = vpop.f32.mrb[42].mxu1 }
 0x479   :  { %v5213_v31 = vmul.f32 -1.442695, %v1021_v36  ;;  %v978_v52 = vpop.f32.mrb[19].mxu0  ;;  %v1019_v4 = vpop.f32.mrb[43].mxu1  ;;  %v5215_v1 = vmul.f32 -1.442695, %v1023_v55 }
 0x47a   :  { %v5214_v56 = vmul.f32 -1.442695, %v1022_v53  ;;  %v8352_v0 = vld [vmem:[#allocation14_spill] sm:$0xff] }
 0x47b   :  { %5959 = vpow2.f32 %v5213_v31  ;;  %v8353_v31 = vld [vmem:[#allocation23_spill] sm:$0xff] }
 0x47c   :  { %5961 = vpow2.f32 %v5214_v56 }
 0x47d   :  { %5963 = vtanh.f32 %v1024_v21 }
 0x47e   :  { %5965 = vpow2.f32 %v5215_v1 }
 0x485   :  { %v5960_v24 = vpop.eup %5959 }
 0x486   :  { %v1034_v32 = vadd.f32 1.0, %v5960_v24  ;;  %v5962_v60 = vpop.eup %5961 }
 0x487   :  { %v1035_v37 = vadd.f32 1.0, %v5962_v60  ;;  %v5964_v63 = vpop.eup %5963 }
 0x488   :  { %5967 = vrcp.f32 %v1034_v32  ;;  %v5966_v48 = vpop.eup %5965 }
 0x489   :  { %5969 = vrcp.f32 %v1035_v37  ;;  %v1036_v61 = vadd.f32 1.0, %v5966_v48 }
 0x48b   :  { %5971 = vrcp.f32 %v1036_v61 }
 0x492   :  { %v5968_v58 = vpop.eup %5967 }
 0x493   :  { %v1045_v47 = vmul.f32 %v5968_v58, %v5964_v63  ;;  %v5970_v22 = vpop.eup %5969 }
 0x494   :  { %v1044_v51 = vmul.f32 %v5970_v22, %v6835_v54 }
 0x495   :  { %v5972_v57 = vpop.eup %5971 }
 0x496   :  { %v6882_v59 = vadd.f32 %v1045_v47, %v1044_v51 }
 0x498   :  { %5973 = vtanh.f32 %v6882_v59 }
 0x4a2   :  { %v5974_v23 = vpop.eup %5973 }
 0x4a3   :  { %v1048_v33 = vmul.f32 %v5974_v23, %v5972_v57 }
 0x4a5   :  { %v1054_v36 = vpack.c.bf16 %v1048_v33, %v1048_v33 }
 0x4a7   :  { %1088 = vmatmul.mubr.bf16.vlgmr.msra.gmra.mrb[20].mxu0 %v1054_v36  ;;  %1129 = vmatmul.mubr.bf16.vlgmr.msra.gmra.mrb[44].mxu1 %v1054_v36 }
 0x4a8   :  { %1172 = vmatpush1.bf16.msra.mxu0 %v6443_v29  ;;  %1213 = vmatpush1.bf16.msra.mxu1 %v6601_v5 }
 0x4a9   :  { %1173 = vmatprep.subr.bf16.mxu0 %v6448_v30  ;;  %1214 = vmatprep.subr.bf16.mxu1 %v6606_v6 }
 0x4aa   :  { %1203 = vmatprep.mubr.bf16.mxu0 %v8351_v25  ;;  %1244 = vmatprep.mubr.bf16.mxu1 %v8351_v25 }
 0x4ac   :  { %1174 = vmatpush1.bf16.msra.mxu0 %v6456_v34  ;;  %1215 = vmatpush1.bf16.msra.mxu1 %v6614_v7 }
 0x4ad   :  { %1175 = vmatprep.subr.bf16.mxu0 %v6462_v35  ;;  %1216 = vmatprep.subr.bf16.mxu1 %v6621_v8 }
 0x4b0   :  { %1176 = vmatpush1.bf16.msra.mxu0 %v6470_v38  ;;  %1217 = vmatpush1.bf16.msra.mxu1 %v6627_v9 }
 0x4b1   :  { %1177 = vmatprep.subr.bf16.mxu0 %v6476_v39  ;;  %1218 = vmatprep.subr.bf16.mxu1 %v6633_v10 }
 0x4b4   :  { %1178 = vmatpush1.bf16.msra.mxu0 %v6482_v40  ;;  %1219 = vmatpush1.bf16.msra.mxu1 %v6641_v11 }
 0x4b5   :  { %1179 = vmatprep.subr.bf16.mxu0 %v6489_v41  ;;  %1220 = vmatprep.subr.bf16.mxu1 %v6648_v12 }
 0x4b8   :  { %1180 = vmatpush1.bf16.msra.mxu0 %v6495_v42  ;;  %1221 = vmatpush1.bf16.msra.mxu1 %v6654_v13 }
 0x4b9   :  { %1181 = vmatprep.subr.bf16.mxu0 %v6501_v43  ;;  %1222 = vmatprep.subr.bf16.mxu1 %v6660_v14 }
 0x4bc   :  { %1182 = vmatpush1.bf16.msra.mxu0 %v6507_v44  ;;  %1223 = vmatpush1.bf16.msra.mxu1 %v6668_v15 }
 0x4bd   :  { %1183 = vmatprep.subr.bf16.mxu0 %v6514_v45  ;;  %1224 = vmatprep.subr.bf16.mxu1 %v6675_v16 }
 0x4c0   :  { %1184 = vmatpush1.bf16.msra.mxu0 %v6519_v46  ;;  %1225 = vmatpush1.bf16.msra.mxu1 %v6681_v17 }
 0x4c1   :  { %1185 = vmatprep.subr.bf16.mxu0 %v6532_v49  ;;  %1226 = vmatprep.subr.bf16.mxu1 %v6687_v18 }
 0x4c4   :  { %1186 = vmatpush1.bf16.msra.mxu0 %v6537_v50  ;;  %1227 = vmatpush1.bf16.msra.mxu1 %v6695_v19 }
 0x4c5   :  { %1287 = vmatprep.subr.bf16.mxu0 %v6873_v26  ;;  %1328 = vmatprep.subr.bf16.mxu1 %v6582_v62 }
 0x57a   :  { %v1089_v54 = vpop.f32.mrb[20].mxu0  ;;  %v1130_v55 = vpop.f32.mrb[44].mxu1 }
 0x57b   :  { %v1137_v2 = vadd.f32 %v1089_v54, %v6739_v3  ;;  %v1139_v20 = vadd.f32 %v1130_v55, %v6773_v28  ;;  %v1091_v53 = vpop.f32.mrb[21].mxu0  ;;  %v1132_v21 = vpop.f32.mrb[45].mxu1 }
 0x57c   :  { %v1138_v27 = vadd.f32 %v1091_v53, %v8352_v0  ;;  %v1140_v52 = vadd.f32 %v1132_v21, %v8353_v31  ;;  %v1093_v4 = vpop.f32.mrb[22].mxu0  ;;  %v1134_v56 = vpop.f32.mrb[46].mxu1 }
 0x57d   :  { %v5216_v1 = vmul.f32 -1.442695, %v1137_v2  ;;  %v1094_v24 = vpop.f32.mrb[23].mxu0  ;;  %v1135_v32 = vpop.f32.mrb[47].mxu1  ;;  %v5218_v37 = vmul.f32 -1.442695, %v1139_v20 }
 0x57e   :  { %v5217_v60 = vmul.f32 -1.442695, %v1138_v27 }
 0x57f   :  { %5975 = vpow2.f32 %v5216_v1 }
 0x580   :  { %5977 = vpow2.f32 %v5217_v60 }
 0x581   :  { %5979 = vtanh.f32 %v1140_v52 }
 0x582   :  { %5981 = vpow2.f32 %v5218_v37 }
 0x589   :  { %v5976_v63 = vpop.eup %5975 }
 0x58a   :  { %v1150_v48 = vadd.f32 1.0, %v5976_v63  ;;  %v5978_v3 = vpop.eup %5977 }
 0x58b   :  { %v1151_v28 = vadd.f32 1.0, %v5978_v3  ;;  %v5980_v58 = vpop.eup %5979 }
 0x58c   :  { %5983 = vrcp.f32 %v1150_v48  ;;  %v5982_v47 = vpop.eup %5981 }
 0x58d   :  { %5985 = vrcp.f32 %v1151_v28  ;;  %v1152_v57 = vadd.f32 1.0, %v5982_v47  ;;  %v6979_v47 = vld [vmem:[%s8295_s6 + $0x24] ss:$16 sps:$4 sm:$0xff]  }
 0x58f   :  { %5987 = vrcp.f32 %v1152_v57  ;;  %v8358_v57 = vld [vmem:[#allocation17_spill] sm:$0xff] }
 0x596   :  { %v5984_v22 = vpop.eup %5983 }
 0x597   :  { %v1161_v61 = vmul.f32 %v5984_v22, %v5980_v58  ;;  %v5986_v51 = vpop.eup %5985  ;;  %v6972_v58 = vld [vmem:[%s8295_s6] ss:$16 sps:$4 sm:$0xff]  }
 0x598   :  { %v1160_v23 = vmul.f32 %v5986_v51, %v6882_v59  ;;  %v6988_v22 = vld [vmem:[%s8295_s6 + $0x20] ss:$16 sps:$4 sm:$0xff]  }
 0x599   :  { %v5988_v36 = vpop.eup %5987 }
 0x59a   :  { %v6924_v33 = vadd.f32 %v1161_v61, %v1160_v23  ;;  %v8359_v23 = vld [vmem:[#allocation26_spill] sm:$0xff] }
 0x59c   :  { %5989 = vtanh.f32 %v6924_v33 }
 0x5a6   :  { %v5990_v54 = vpop.eup %5989 }
 0x5a7   :  { %v1164_v55 = vmul.f32 %v5990_v54, %v5988_v36 }
 0x5a9   :  { %v1170_v2 = vpack.c.bf16 %v1164_v55, %v1164_v55  ;;  %v8360_v55 = vld [vmem:[#allocation18_spill] sm:$0xff] }
 0x5ab   :  { %1204 = vmatmul.mubr.bf16.vlgmr.msra.gmra.mrb[24].mxu0 %v1170_v2  ;;  %1245 = vmatmul.mubr.bf16.vlgmr.msra.gmra.mrb[48].mxu1 %v1170_v2 }
 0x5ac   :  { %1288 = vmatpush1.bf16.msra.mxu0 %v6443_v29  ;;  %1329 = vmatpush1.bf16.msra.mxu1 %v6601_v5 }
 0x5ad   :  { %1289 = vmatprep.subr.bf16.mxu0 %v6448_v30  ;;  %1330 = vmatprep.subr.bf16.mxu1 %v6606_v6 }
 0x5ae   :  { %1319 = vmatprep.mubr.bf16.mxu0 %v8351_v25  ;;  %1360 = vmatprep.mubr.bf16.mxu1 %v8351_v25 }
 0x5b0   :  { %1290 = vmatpush1.bf16.msra.mxu0 %v6456_v34  ;;  %1331 = vmatpush1.bf16.msra.mxu1 %v6614_v7  ;;  %v8354_v34 = vld [vmem:[#allocation15_spill] sm:$0xff] }
 0x5b1   :  { %1291 = vmatprep.subr.bf16.mxu0 %v6462_v35  ;;  %1332 = vmatprep.subr.bf16.mxu1 %v6621_v8 }
 0x5b4   :  { %1292 = vmatpush1.bf16.msra.mxu0 %v6470_v38  ;;  %1333 = vmatpush1.bf16.msra.mxu1 %v6627_v9  ;;  %v8355_v38 = vld [vmem:[#allocation24_spill] sm:$0xff] }
 0x5b5   :  { %1293 = vmatprep.subr.bf16.mxu0 %v6476_v39  ;;  %1334 = vmatprep.subr.bf16.mxu1 %v6633_v10 }
 0x5b8   :  { %1294 = vmatpush1.bf16.msra.mxu0 %v6482_v40  ;;  %1335 = vmatpush1.bf16.msra.mxu1 %v6641_v11 }
 0x5b9   :  { %1295 = vmatprep.subr.bf16.mxu0 %v6489_v41  ;;  %1336 = vmatprep.subr.bf16.mxu1 %v6648_v12 }
 0x5bc   :  { %1296 = vmatpush1.bf16.msra.mxu0 %v6495_v42  ;;  %1337 = vmatpush1.bf16.msra.mxu1 %v6654_v13  ;;  %v8356_v42 = vld [vmem:[#allocation16_spill] sm:$0xff] }
 0x5bd   :  { %1297 = vmatprep.subr.bf16.mxu0 %v6501_v43  ;;  %1338 = vmatprep.subr.bf16.mxu1 %v6660_v14 }
 0x5c0   :  { %1298 = vmatpush1.bf16.msra.mxu0 %v6507_v44  ;;  %1339 = vmatpush1.bf16.msra.mxu1 %v6668_v15  ;;  %v8357_v44 = vld [vmem:[#allocation25_spill] sm:$0xff] }
 0x5c1   :  { %1299 = vmatprep.subr.bf16.mxu0 %v6514_v45  ;;  %1340 = vmatprep.subr.bf16.mxu1 %v6675_v16 }
 0x5c4   :  { %1300 = vmatpush1.bf16.msra.mxu0 %v6519_v46  ;;  %1341 = vmatpush1.bf16.msra.mxu1 %v6681_v17 }
 0x5c5   :  { %1301 = vmatprep.subr.bf16.mxu0 %v6532_v49  ;;  %1342 = vmatprep.subr.bf16.mxu1 %v6687_v18 }
 0x5c8   :  { %1302 = vmatpush1.bf16.msra.mxu0 %v6537_v50  ;;  %1343 = vmatpush1.bf16.msra.mxu1 %v6695_v19 }
 0x5c9   :  { %1403 = vmatprep.subr.bf16.mxu0 %v6873_v26  ;;  %1444 = vmatprep.subr.bf16.mxu1 %v6582_v62 }
 0x67e   :  { %v1205_v29 = vpop.f32.mrb[24].mxu0  ;;  %v1246_v30 = vpop.f32.mrb[48].mxu1 }
 0x67f   :  { %v1253_v35 = vadd.f32 %v1205_v29, %v8354_v34  ;;  %v1255_v39 = vadd.f32 %v1246_v30, %v8355_v38  ;;  %v1207_v40 = vpop.f32.mrb[25].mxu0  ;;  %v1248_v41 = vpop.f32.mrb[49].mxu1  ;;  %v8361_v29 = vld [vmem:[#allocation27_spill] sm:$0xff] }
 0x680   :  { %v1254_v43 = vadd.f32 %v1207_v40, %v8356_v42  ;;  %v1256_v45 = vadd.f32 %v1248_v41, %v8357_v44  ;;  %v1209_v46 = vpop.f32.mrb[26].mxu0  ;;  %v1250_v49 = vpop.f32.mrb[50].mxu1 }
 0x681   :  { %v5219_v50 = vmul.f32 -1.442695, %v1253_v35  ;;  %v1210_v59 = vpop.f32.mrb[27].mxu0  ;;  %v1251_v20 = vpop.f32.mrb[51].mxu1  ;;  %v5221_v62 = vmul.f32 -1.442695, %v1255_v39 }
 0x682   :  { %v5220_v53 = vmul.f32 -1.442695, %v1254_v43 }
 0x683   :  { %5991 = vpow2.f32 %v5219_v50 }
 0x684   :  { %5993 = vpow2.f32 %v5220_v53 }
 0x685   :  { %5995 = vtanh.f32 %v1256_v45 }
 0x686   :  { %5997 = vpow2.f32 %v5221_v62 }
 0x68d   :  { %v5992_v21 = vpop.eup %5991 }
 0x68e   :  { %v1266_v0 = vadd.f32 1.0, %v5992_v21  ;;  %v5994_v27 = vpop.eup %5993 }
 0x68f   :  { %v1267_v31 = vadd.f32 1.0, %v5994_v27  ;;  %v5996_v52 = vpop.eup %5995 }
 0x690   :  { %5999 = vrcp.f32 %v1266_v0  ;;  %v5998_v4 = vpop.eup %5997 }
 0x691   :  { %6001 = vrcp.f32 %v1267_v31  ;;  %v1268_v32 = vadd.f32 1.0, %v5998_v4  ;;  %v6233_v4 = vld [vmem:[%s8295_s6 + $0x2c] ss:$16 sps:$4 sm:$0xff]  }
 0x693   :  { %6003 = vrcp.f32 %v1268_v32  ;;  %v6237_v32 = vld [vmem:[%s8295_s6 + $0x6c] ss:$16 sps:$4 sm:$0xff]  }
 0x69a   :  { %v6000_v56 = vpop.eup %5999 }
 0x69b   :  { %v1277_v1 = vmul.f32 %v6000_v56, %v5996_v52  ;;  %v6002_v24 = vpop.eup %6001  ;;  %v6232_v52 = vld [vmem:[%s8295_s6 + $0x8] ss:$16 sps:$4 sm:$0xff]  }
 0x69c   :  { %v1276_v60 = vmul.f32 %v6002_v24, %v6924_v33  ;;  %v6234_v56 = vld [vmem:[%s8295_s6 + $0x28] ss:$16 sps:$4 sm:$0xff]  }
 0x69d   :  { %v6004_v63 = vpop.eup %6003  ;;  %v6236_v24 = vld [vmem:[%s8295_s6 + $0x48] ss:$16 sps:$4 sm:$0xff]  }
 0x69e   :  { %v6966_v37 = vadd.f32 %v1277_v1, %v1276_v60  ;;  %v6235_v1 = vld [vmem:[%s8295_s6 + $0x4c] ss:$16 sps:$4 sm:$0xff]   ;;  %v6238_v60 = vld [vmem:[%s8295_s6 + $0x68] ss:$16 sps:$4 sm:$0xff]  }
 0x6a0   :  { %6005 = vtanh.f32 %v6966_v37 }
 0x6aa   :  { %v6006_v48 = vpop.eup %6005 }
 0x6ab   :  { %v1280_v3 = vmul.f32 %v6006_v48, %v6004_v63  ;;  %v6240_v63 = vld [vmem:[%s8295_s6 + $0x88] ss:$16 sps:$4 sm:$0xff]   ;;  %v6241_v48 = vld [vmem:[%s8295_s6 + $0xac] ss:$16 sps:$4 sm:$0xff]  }
 0x6ad   :  { %v1286_v28 = vpack.c.bf16 %v1280_v3, %v1280_v3  ;;  %v6242_v3 = vld [vmem:[%s8295_s6 + $0xa8] ss:$16 sps:$4 sm:$0xff]  }
 0x6af   :  { %1320 = vmatmul.mubr.bf16.vlgmr.msra.gmra.mrb[28].mxu0 %v1286_v28  ;;  %1361 = vmatmul.mubr.bf16.vlgmr.msra.gmra.mrb[52].mxu1 %v1286_v28  ;;  %v6243_v28 = vld [vmem:[%s8295_s6 + $0xcc] ss:$16 sps:$4 sm:$0xff]  }
 0x6b0   :  { %1404 = vmatpush1.bf16.msra.mxu0 %v6972_v58  ;;  %1445 = vmatpush1.bf16.msra.mxu1 %v6601_v5  ;;  %v6995_v5 = vld [vmem:[%s8295_s6 + $0x44] ss:$16 sps:$4 sm:$0xff]  }
 0x6b1   :  { %1405 = vmatprep.subr.bf16.mxu0 %v6979_v47  ;;  %1446 = vmatprep.subr.bf16.mxu1 %v6606_v6  ;;  %v7002_v6 = vld [vmem:[%s8295_s6 + $0x40] ss:$16 sps:$4 sm:$0xff]  }
 0x6b2   :  { %1435 = vmatprep.mubr.bf16.mxu0 %v8351_v25  ;;  %1476 = vmatprep.mubr.bf16.mxu1 %v8351_v25 }
 0x6b4   :  { %1406 = vmatpush1.bf16.msra.mxu0 %v6988_v22  ;;  %1447 = vmatpush1.bf16.msra.mxu1 %v6614_v7  ;;  %v7009_v7 = vld [vmem:[%s8295_s6 + $0x64] ss:$16 sps:$4 sm:$0xff]  }
 0x6b5   :  { %1407 = vmatprep.subr.bf16.mxu0 %v6995_v5  ;;  %1448 = vmatprep.subr.bf16.mxu1 %v6621_v8  ;;  %v7016_v8 = vld [vmem:[%s8295_s6 + $0x60] ss:$16 sps:$4 sm:$0xff]  }
 0x6b8   :  { %1408 = vmatpush1.bf16.msra.mxu0 %v7002_v6  ;;  %1449 = vmatpush1.bf16.msra.mxu1 %v6627_v9  ;;  %v7023_v9 = vld [vmem:[%s8295_s6 + $0x84] ss:$16 sps:$4 sm:$0xff]  }
 0x6b9   :  { %1409 = vmatprep.subr.bf16.mxu0 %v7009_v7  ;;  %1450 = vmatprep.subr.bf16.mxu1 %v6633_v10  ;;  %v7030_v10 = vld [vmem:[%s8295_s6 + $0x80] ss:$16 sps:$4 sm:$0xff]  }
 0x6bc   :  { %1410 = vmatpush1.bf16.msra.mxu0 %v7016_v8  ;;  %1451 = vmatpush1.bf16.msra.mxu1 %v6641_v11  ;;  %v7037_v11 = vld [vmem:[%s8295_s6 + $0xa4] ss:$16 sps:$4 sm:$0xff]  }
 0x6bd   :  { %1411 = vmatprep.subr.bf16.mxu0 %v7023_v9  ;;  %1452 = vmatprep.subr.bf16.mxu1 %v6648_v12  ;;  %v7044_v12 = vld [vmem:[%s8295_s6 + $0xa0] ss:$16 sps:$4 sm:$0xff]  }
 0x6c0   :  { %1412 = vmatpush1.bf16.msra.mxu0 %v7030_v10  ;;  %1453 = vmatpush1.bf16.msra.mxu1 %v6654_v13  ;;  %v7051_v13 = vld [vmem:[%s8295_s6 + $0xc4] ss:$16 sps:$4 sm:$0xff]  }
 0x6c1   :  { %1413 = vmatprep.subr.bf16.mxu0 %v7037_v11  ;;  %1454 = vmatprep.subr.bf16.mxu1 %v6660_v14  ;;  %v7058_v14 = vld [vmem:[%s8295_s6 + $0xc0] ss:$16 sps:$4 sm:$0xff]  }
 0x6c4   :  { %1414 = vmatpush1.bf16.msra.mxu0 %v7044_v12  ;;  %1455 = vmatpush1.bf16.msra.mxu1 %v6668_v15  ;;  %v7065_v15 = vld [vmem:[%s8295_s6 + $0xe4] ss:$16 sps:$4 sm:$0xff]  }
 0x6c5   :  { %1415 = vmatprep.subr.bf16.mxu0 %v7051_v13  ;;  %1456 = vmatprep.subr.bf16.mxu1 %v6675_v16  ;;  %v7072_v16 = vld [vmem:[%s8295_s6 + $0xe0] ss:$16 sps:$4 sm:$0xff]  }
 0x6c8   :  { %1416 = vmatpush1.bf16.msra.mxu0 %v7058_v14  ;;  %1457 = vmatpush1.bf16.msra.mxu1 %v6681_v17  ;;  %v6231_v17 = vld [vmem:[%s8295_s6 + $0xc] ss:$16 sps:$4 sm:$0xff]  }
 0x6c9   :  { %1417 = vmatprep.subr.bf16.mxu0 %v7065_v15  ;;  %1458 = vmatprep.subr.bf16.mxu1 %v6687_v18 }
 0x6cc   :  { %1418 = vmatpush1.bf16.msra.mxu0 %v7072_v16  ;;  %1459 = vmatpush1.bf16.msra.mxu1 %v6695_v19 }
 0x6cd   :  { %1519 = vmatprep.subr.bf16.mxu0 %v6873_v26  ;;  %1560 = vmatprep.subr.bf16.mxu1 %v6231_v17 }
 0x782   :  { %v1321_v61 = vpop.f32.mrb[28].mxu0  ;;  %v1362_v51 = vpop.f32.mrb[52].mxu1 }
 0x783   :  { %v1369_v18 = vadd.f32 %v1321_v61, %v8358_v57  ;;  %v1371_v33 = vadd.f32 %v1362_v51, %v8359_v23  ;;  %v1323_v36 = vpop.f32.mrb[29].mxu0  ;;  %v1364_v54 = vpop.f32.mrb[53].mxu1 }
 0x784   :  { %v1370_v2 = vadd.f32 %v1323_v36, %v8360_v55  ;;  %v1372_v30 = vadd.f32 %v1364_v54, %v8361_v29  ;;  %v1325_v19 = vpop.f32.mrb[30].mxu0  ;;  %v1366_v34 = vpop.f32.mrb[54].mxu1 }
 0x785   :  { %v5222_v26 = vmul.f32 -1.442695, %v1369_v18  ;;  %v1326_v35 = vpop.f32.mrb[31].mxu0  ;;  %v1367_v38 = vpop.f32.mrb[55].mxu1  ;;  %v5224_v40 = vmul.f32 -1.442695, %v1371_v33 }
 0x786   :  { %v5223_v39 = vmul.f32 -1.442695, %v1370_v2 }
 0x787   :  { %6007 = vpow2.f32 %v5222_v26 }
 0x788   :  { %6009 = vpow2.f32 %v5223_v39 }
 0x789   :  { %6011 = vtanh.f32 %v1372_v30 }
 0x78a   :  { %6013 = vpow2.f32 %v5224_v40 }
 0x791   :  { %v6008_v41 = vpop.eup %6007 }
 0x792   :  { %v1382_v42 = vadd.f32 1.0, %v6008_v41  ;;  %v6010_v43 = vpop.eup %6009 }
 0x793   :  { %v1383_v44 = vadd.f32 1.0, %v6010_v43  ;;  %v6012_v45 = vpop.eup %6011 }
 0x794   :  { %6015 = vrcp.f32 %v1382_v42  ;;  %v6014_v46 = vpop.eup %6013 }
 0x795   :  { %6017 = vrcp.f32 %v1383_v44  ;;  %v1384_v20 = vadd.f32 1.0, %v6014_v46  ;;  %v5755_v44 = vld [vmem:[%s8297_s8] sm:$0xff]   ;;  %v5756_v46 = vld [vmem:[%s8297_s8 + $0x8] sm:$0xff]  }
 0x797   :  { %6019 = vrcp.f32 %v1384_v20  ;;  %v5760_v20 = vld [vmem:[%s8297_s8 + $0x28] sm:$0xff]  }
 0x79e   :  { %v6016_v49 = vpop.eup %6015 }
 0x79f   :  { %v1393_v50 = vmul.f32 %v6016_v49, %v6012_v45  ;;  %v6018_v59 = vpop.eup %6017  ;;  %v6273_v45 = vmov 0.0   ;;  %v5757_v49 = vld [vmem:[%s8297_s8 + $0x10] sm:$0xff]  }
 0x7a0   :  { %v1392_v53 = vmul.f32 %v6018_v59, %v6966_v37  ;;  %v6239_v37 = vld [vmem:[%s8295_s6 + $0x8c] ss:$16 sps:$4 sm:$0xff]   ;;  %v5759_v59 = vld [vmem:[%s8297_s8 + $0x20] sm:$0xff]  }
 0x7a1   :  { %v6020_v21 = vpop.eup %6019 }
 0x7a2   :  { %v7085_v62 = vadd.f32 %v1393_v50, %v1392_v53  ;;  %v5758_v50 = vld [vmem:[%s8297_s8 + $0x18] sm:$0xff]   ;;  %v5761_v53 = vld [vmem:[%s8297_s8 + $0x30] sm:$0xff]  }
 0x7a4   :  { %6021 = vtanh.f32 %v7085_v62 }
 0x7ae   :  { %v6022_v0 = vpop.eup %6021 }
 0x7af   :  { %v1396_v27 = vmul.f32 %v6022_v0, %v6020_v21  ;;  %v5763_v21 = vld [vmem:[%s8300_s11] ss:$16 sps:$4 sm:$0xff]   ;;  %v5765_v0 = vld [vmem:[%s8300_s11 + $0x4] ss:$16 sps:$4 sm:$0xff]  }
 0x7b1   :  { %v1402_v31 = vpack.c.bf16 %v1396_v27, %v1396_v27  ;;  %v5768_v27 = vld [vmem:[%s8300_s11 + $0xc] ss:$16 sps:$4 sm:$0xff]  }
 0x7b3   :  { %1436 = vmatmul.mubr.bf16.vlgmr.msra.gmra.mrb[32].mxu0 %v1402_v31  ;;  %1477 = vmatmul.mubr.bf16.vlgmr.msra.gmra.mrb[56].mxu1 %v1402_v31  ;;  %v5771_v31 = vld [vmem:[%s8300_s11 + $0x24] ss:$16 sps:$4 sm:$0xff]  }
 0x7b4   :  { %1520 = vmatpush1.bf16.msra.mxu0 %v6972_v58  ;;  %1561 = vmatpush1.bf16.msra.mxu1 %v6232_v52  ;;  %v6244_v58 = vld [vmem:[%s8295_s6 + $0xc8] ss:$16 sps:$4 sm:$0xff]   ;;  %v5769_v52 = vld [vmem:[%s8300_s11 + $0x20] ss:$16 sps:$4 sm:$0xff]  }
 0x7b5   :  { %1521 = vmatprep.subr.bf16.mxu0 %v6979_v47  ;;  %1562 = vmatprep.subr.bf16.mxu1 %v6233_v4  ;;  %v6245_v47 = vld [vmem:[%s8295_s6 + $0xec] ss:$16 sps:$4 sm:$0xff]   ;;  %v5777_v4 = vld [vmem:[%s8300_s11 + $0x44] ss:$16 sps:$4 sm:$0xff]  }
 0x7b6   :  { %1551 = vmatprep.mubr.bf16.mxu0 %v8351_v25  ;;  %1592 = vmatprep.mubr.bf16.mxu1 %v8351_v25 }
 0x7b8   :  { %1522 = vmatpush1.bf16.msra.mxu0 %v6988_v22  ;;  %1563 = vmatpush1.bf16.msra.mxu1 %v6234_v56  ;;  %v6246_v22 = vld [vmem:[%s8295_s6 + $0xe8] ss:$16 sps:$4 sm:$0xff]   ;;  %v5775_v56 = vld [vmem:[%s8300_s11 + $0x40] ss:$16 sps:$4 sm:$0xff]  }
 0x7b9   :  { %1523 = vmatprep.subr.bf16.mxu0 %v6995_v5  ;;  %1564 = vmatprep.subr.bf16.mxu1 %v6235_v1  ;;  %v5783_v1 = vld [vmem:[%s8300_s11 + $0x64] ss:$16 sps:$4 sm:$0xff]  }
 0x7bc   :  { %1524 = vmatpush1.bf16.msra.mxu0 %v7002_v6  ;;  %1565 = vmatpush1.bf16.msra.mxu1 %v6236_v24  ;;  %v5781_v24 = vld [vmem:[%s8300_s11 + $0x60] ss:$16 sps:$4 sm:$0xff]  }
 0x7bd   :  { %1525 = vmatprep.subr.bf16.mxu0 %v7009_v7  ;;  %1566 = vmatprep.subr.bf16.mxu1 %v6237_v32  ;;  %v8362_v7 = vld [vmem:[#allocation19_spill] sm:$0xff]  ;;  %v5789_v32 = vld [vmem:[%s8300_s11 + $0x84] ss:$16 sps:$4 sm:$0xff]  }
 0x7c0   :  { %1526 = vmatpush1.bf16.msra.mxu0 %v7016_v8  ;;  %1567 = vmatpush1.bf16.msra.mxu1 %v6238_v60  ;;  %v5787_v60 = vld [vmem:[%s8300_s11 + $0x80] ss:$16 sps:$4 sm:$0xff]  }
 0x7c1   :  { %1527 = vmatprep.subr.bf16.mxu0 %v7023_v9  ;;  %1568 = vmatprep.subr.bf16.mxu1 %v6239_v37  ;;  %v8363_v9 = vld [vmem:[#allocation28_spill] sm:$0xff] }
 0x7c2   :  { %v5795_v37 = vld [vmem:[%s8300_s11 + $0xa4] ss:$16 sps:$4 sm:$0xff]  }
 0x7c4   :  { %1528 = vmatpush1.bf16.msra.mxu0 %v7030_v10  ;;  %1569 = vmatpush1.bf16.msra.mxu1 %v6240_v63  ;;  %v5793_v63 = vld [vmem:[%s8300_s11 + $0xa0] ss:$16 sps:$4 sm:$0xff]  }
 0x7c5   :  { %1529 = vmatprep.subr.bf16.mxu0 %v7037_v11  ;;  %1570 = vmatprep.subr.bf16.mxu1 %v6241_v48  ;;  %v5801_v48 = vld [vmem:[%s8300_s11 + $0xc4] ss:$16 sps:$4 sm:$0xff]  }
 0x7c8   :  { %1530 = vmatpush1.bf16.msra.mxu0 %v7044_v12  ;;  %1571 = vmatpush1.bf16.msra.mxu1 %v6242_v3  ;;  %v5799_v3 = vld [vmem:[%s8300_s11 + $0xc0] ss:$16 sps:$4 sm:$0xff]  }
 0x7c9   :  { %1531 = vmatprep.subr.bf16.mxu0 %v7051_v13  ;;  %1572 = vmatprep.subr.bf16.mxu1 %v6243_v28  ;;  %v8364_v13 = vld [vmem:[#allocation20_spill] sm:$0xff] }
 0x7cc   :  { %1532 = vmatpush1.bf16.msra.mxu0 %v7058_v14  ;;  %1573 = vmatpush1.bf16.msra.mxu1 %v6244_v58 }
 0x7cd   :  { %1533 = vmatprep.subr.bf16.mxu0 %v7065_v15  ;;  %1574 = vmatprep.subr.bf16.mxu1 %v6245_v47  ;;  %v8365_v15 = vld [vmem:[#allocation29_spill] sm:$0xff] }
 0x7ce   :  { %v8366_v47 = vld [vmem:[#allocation21_spill] sm:$0xff] }
 0x7d0   :  { %1534 = vmatpush1.bf16.msra.mxu0 %v7072_v16  ;;  %1575 = vmatpush1.bf16.msra.mxu1 %v6246_v22 }
 0x7d1   :  { %5634 = vmatprep.subr.bf16.mxu0 %v6273_v45  ;;  %1958 = vmatprep.subr.bf16.mxu1 %v5765_v0  ;;  %v5810_v0 = vld [vmem:[%s8300_s11 + $0xec] ss:$16 sps:$4 sm:$0xff]  }
 0x886   :  { %v1437_v5 = vpop.f32.mrb[32].mxu0  ;;  %v1478_v6 = vpop.f32.mrb[56].mxu1 }
 0x887   :  { %v1485_v8 = vadd.f32 %v1437_v5, %v8362_v7  ;;  %v1487_v10 = vadd.f32 %v1478_v6, %v8363_v9  ;;  %v1439_v11 = vpop.f32.mrb[33].mxu0  ;;  %v1480_v12 = vpop.f32.mrb[57].mxu1  ;;  %v8367_v5 = vld [vmem:[#allocation30_spill] sm:$0xff] }
 0x888   :  { %v1486_v14 = vadd.f32 %v1439_v11, %v8364_v13  ;;  %v1488_v17 = vadd.f32 %v1480_v12, %v8365_v15  ;;  %v1441_v61 = vpop.f32.mrb[34].mxu0  ;;  %v1482_v51 = vpop.f32.mrb[58].mxu1  ;;  %v8368_v9 = vld [vmem:[#allocation22_spill] sm:$0xff]  ;;  %v8369_v11 = vld [vmem:[#allocation31_spill] sm:$0xff] }
 0x889   :  { %v5225_v16 = vmul.f32 -1.442695, %v1485_v8  ;;  %v1442_v57 = vpop.f32.mrb[35].mxu0  ;;  %v1483_v18 = vpop.f32.mrb[59].mxu1  ;;  %v5227_v33 = vmul.f32 -1.442695, %v1487_v10 }
 0x88a   :  { %v5226_v23 = vmul.f32 -1.442695, %v1486_v14 }
 0x88b   :  { %6023 = vpow2.f32 %v5225_v16 }
 0x88c   :  { %6025 = vpow2.f32 %v5226_v23 }
 0x88d   :  { %6027 = vtanh.f32 %v1488_v17 }
 0x88e   :  { %6029 = vpow2.f32 %v5227_v33 }
 0x895   :  { %v6024_v36 = vpop.eup %6023 }
 0x896   :  { %v1498_v54 = vadd.f32 1.0, %v6024_v36  ;;  %v6026_v55 = vpop.eup %6025 }
 0x897   :  { %v1499_v2 = vadd.f32 1.0, %v6026_v55  ;;  %v6028_v29 = vpop.eup %6027 }
 0x898   :  { %6031 = vrcp.f32 %v1498_v54  ;;  %v6030_v30 = vpop.eup %6029 }
 0x899   :  { %6033 = vrcp.f32 %v1499_v2  ;;  %v1500_v35 = vadd.f32 1.0, %v6030_v30 }
 0x89b   :  { %6035 = vrcp.f32 %v1500_v35 }
 0x8a2   :  { %v6032_v19 = vpop.eup %6031 }
 0x8a3   :  { %v1509_v34 = vmul.f32 %v6032_v19, %v6028_v29  ;;  %v6034_v26 = vpop.eup %6033 }
 0x8a4   :  { %v1508_v38 = vmul.f32 %v6034_v26, %v7085_v62  ;;  %v5762_v62 = vld [vmem:[%s8297_s8 + $0x38] sm:$0xff]  }
 0x8a5   :  { %v6036_v40 = vpop.eup %6035 }
 0x8a6   :  { %v7155_v39 = vadd.f32 %v1509_v34, %v1508_v38 }
 0x8a8   :  { %6037 = vtanh.f32 %v7155_v39 }
 0x8b2   :  { %v6038_v41 = vpop.eup %6037 }
 0x8b3   :  { %v1512_v42 = vmul.f32 %v6038_v41, %v6036_v40  ;;  %v5766_v40 = vld [vmem:[%s8300_s11 + $0x8] ss:$16 sps:$4 sm:$0xff]  }
 0x8b5   :  { %v1518_v43 = vpack.c.bf16 %v1512_v42, %v1512_v42  ;;  %v5774_v42 = vld [vmem:[%s8300_s11 + $0x2c] ss:$16 sps:$4 sm:$0xff]  }
 0x8b7   :  { %1552 = vmatmul.mubr.bf16.vlgmr.msra.gmra.mrb[36].mxu0 %v1518_v43  ;;  %1593 = vmatmul.mubr.bf16.vlgmr.msra.gmra.mrb[60].mxu1 %v1518_v43  ;;  %v5780_v43 = vld [vmem:[%s8300_s11 + $0x4c] ss:$16 sps:$4 sm:$0xff]  }
 0x8b8   :  { %1990 = vmatprep.mubr.bf16.mxu1 %v8351_v25  ;;  %5635 = vmatpush3.bf16.msra.mxu0 %v5755_v44  ;;  %v5778_v44 = vld [vmem:[%s8300_s11 + $0x48] ss:$16 sps:$4 sm:$0xff]  }
 0x8b9   :  { %5636 = vmatprep.subr.bf16.mxu0 %v6273_v45  ;;  %5650 = vmatprep.mubr.msk.bf16.mxu0 %vm6274_vm13, %v6273_v45 }
 0x8ba   :  { %1959 = vmatpush1.bf16.msra.mxu1 %v5763_v21  ;;  %v5807_v21 = vld [vmem:[%s8300_s11 + $0xe4] ss:$16 sps:$4 sm:$0xff]  }
 0x8bb   :  { %1960 = vmatprep.subr.bf16.mxu1 %v5771_v31  ;;  %v5808_v31 = vld [vmem:[%s8300_s11 + $0xe8] ss:$16 sps:$4 sm:$0xff]  }
 0x8bc   :  { %5637 = vmatpush3.bf16.msra.mxu0 %v5756_v46  ;;  %v5784_v46 = vld [vmem:[%s8300_s11 + $0x68] ss:$16 sps:$4 sm:$0xff]  }
 0x8bd   :  { %5638 = vmatprep.subr.bf16.mxu0 %v6273_v45 }
 0x8be   :  { %1961 = vmatpush1.bf16.msra.mxu1 %v5769_v52  ;;  %v5813_v52 = vld [vmem:[%s8299_s10 + $0x4] ss:$16 sps:$4 sm:$0xff]  }
 0x8bf   :  { %1962 = vmatprep.subr.bf16.mxu1 %v5777_v4  ;;  %v5816_v4 = vld [vmem:[%s8299_s10 + $0xc] ss:$16 sps:$4 sm:$0xff]  }
 0x8c0   :  { %5639 = vmatpush3.bf16.msra.mxu0 %v5757_v49  ;;  %v5792_v49 = vld [vmem:[%s8300_s11 + $0x8c] ss:$16 sps:$4 sm:$0xff]  }
 0x8c1   :  { %5640 = vmatprep.subr.bf16.mxu0 %v6273_v45 }
 0x8c2   :  { %1963 = vmatpush1.bf16.msra.mxu1 %v5775_v56  ;;  %v5231_v56 = vld [vmem:[%s8298_s9] ss:$0 sm:$0xff] }
 0x8c3   :  { %1964 = vmatprep.subr.bf16.mxu1 %v5783_v1 }
 0x8c4   :  { %5641 = vmatpush3.bf16.msra.mxu0 %v5758_v50  ;;  %v5790_v50 = vld [vmem:[%s8300_s11 + $0x88] ss:$16 sps:$4 sm:$0xff]  }
 0x8c5   :  { %5642 = vmatprep.subr.bf16.mxu0 %v6273_v45 }
 0x8c6   :  { %1965 = vmatpush1.bf16.msra.mxu1 %v5781_v24  ;;  %v1741_v24 = vld [vmem:[%s8292_s3] sm:$0xff] }
 0x8c7   :  { %1966 = vmatprep.subr.bf16.mxu1 %v5789_v32 }
 0x8c8   :  { %5643 = vmatpush3.bf16.msra.mxu0 %v5759_v59  ;;  %v5798_v59 = vld [vmem:[%s8300_s11 + $0xac] ss:$16 sps:$4 sm:$0xff]  }
 0x8c9   :  { %5644 = vmatprep.subr.bf16.mxu0 %v6273_v45 }
 0x8ca   :  { %1967 = vmatpush1.bf16.msra.mxu1 %v5787_v60 }
 0x8cb   :  { %1968 = vmatprep.subr.bf16.mxu1 %v5795_v37 }
 0x8cc   :  { %5645 = vmatpush3.bf16.msra.mxu0 %v5760_v20  ;;  %v5796_v20 = vld [vmem:[%s8300_s11 + $0xa8] ss:$16 sps:$4 sm:$0xff]  }
 0x8cd   :  { %5646 = vmatprep.subr.bf16.mxu0 %v6273_v45 }
 0x8ce   :  { %1969 = vmatpush1.bf16.msra.mxu1 %v5793_v63 }
 0x8cf   :  { %1970 = vmatprep.subr.bf16.mxu1 %v5801_v48 }
 0x8d0   :  { %5647 = vmatpush3.bf16.msra.mxu0 %v5761_v53  ;;  %v5804_v53 = vld [vmem:[%s8300_s11 + $0xcc] ss:$16 sps:$4 sm:$0xff]  }
 0x8d1   :  { %5648 = vmatprep.subr.bf16.mxu0 %v6273_v45  ;;  %v5786_v45 = vld [vmem:[%s8300_s11 + $0x6c] ss:$16 sps:$4 sm:$0xff]  }
 0x8d2   :  { %1971 = vmatpush1.bf16.msra.mxu1 %v5799_v3  ;;  %v5811_v3 = vld [vmem:[%s8299_s10] ss:$16 sps:$4 sm:$0xff]  }
 0x8d3   :  { %1972 = vmatprep.subr.bf16.mxu1 %v5807_v21 }
 0x8d4   :  { %5649 = vmatpush3.bf16.msra.mxu0 %v5762_v62  ;;  %v5802_v62 = vld [vmem:[%s8300_s11 + $0xc8] ss:$16 sps:$4 sm:$0xff]  }
 0x8d5   :  { %1999 = vmatprep.subr.bf16.mxu0 %v5768_v27  ;;  %v5805_v27 = vld [vmem:[%s8300_s11 + $0xe0] ss:$16 sps:$4 sm:$0xff]  }
 0x8d6   :  { %1973 = vmatpush1.bf16.msra.mxu1 %v5805_v27 }
 0x8d7   :  { %2088 = vmatprep.subr.bf16.mxu1 %v5813_v52 }
 0x98a   :  { %v1553_v28 = vpop.f32.mrb[36].mxu0  ;;  %v1594_v58 = vpop.f32.mrb[60].mxu1 }
 0x98b   :  { %v1601_v22 = vadd.f32 %v1553_v28, %v8366_v47  ;;  %v1603_v6 = vadd.f32 %v1594_v58, %v8367_v5  ;;  %v1555_v7 = vpop.f32.mrb[37].mxu0  ;;  %v1596_v8 = vpop.f32.mrb[61].mxu1  ;;  %v5814_v28 = vld [vmem:[%s8299_s10 + $0x8] ss:$16 sps:$4 sm:$0xff]   ;;  %v5819_v47 = vld [vmem:[%s8299_s10 + $0x24] ss:$16 sps:$4 sm:$0xff]  }
 0x98c   :  { %v1602_v10 = vadd.f32 %v1555_v7, %v8368_v9  ;;  %v1604_v12 = vadd.f32 %v1596_v8, %v8369_v11  ;;  %v1557_v13 = vpop.f32.mrb[38].mxu0  ;;  %v1598_v14 = vpop.f32.mrb[62].mxu1  ;;  %v5817_v5 = vld [vmem:[%s8299_s10 + $0x20] ss:$16 sps:$4 sm:$0xff]   ;;  %v7318_v7 = vld [vmem:[%s8301_s12 + $0x4] ss:$16 sps:$4 sm:$0xff]  }
 0x98d   :  { %v5228_v15 = vmul.f32 -1.442695, %v1601_v22  ;;  %v1558_v17 = vpop.f32.mrb[39].mxu0  ;;  %v1599_v61 = vpop.f32.mrb[63].mxu1  ;;  %v5230_v16 = vmul.f32 -1.442695, %v1603_v6 }
 0x98e   :  { %v5229_v51 = vmul.f32 -1.442695, %v1602_v10  ;;  %v5822_v22 = vld [vmem:[%s8299_s10 + $0x2c] ss:$16 sps:$4 sm:$0xff]   ;;  %v5820_v6 = vld [vmem:[%s8299_s10 + $0x28] ss:$16 sps:$4 sm:$0xff]  }
 0x98f   :  { %6039 = vpow2.f32 %v5228_v15  ;;  %v7323_v8 = vld [vmem:[%s8301_s12 + $0xc] ss:$16 sps:$4 sm:$0xff]   ;;  %v7330_v9 = vld [vmem:[%s8301_s12] ss:$16 sps:$4 sm:$0xff]   ;;  %v7335_v10 = vld [vmem:[%s8301_s12 + $0x8] ss:$16 sps:$4 sm:$0xff]  }
 0x990   :  { %6041 = vpow2.f32 %v5229_v51  ;;  %v7342_v11 = vld [vmem:[%s8301_s12 + $0x24] ss:$16 sps:$4 sm:$0xff]   ;;  %v7358_v14 = vld [vmem:[%s8301_s12 + $0x20] ss:$16 sps:$4 sm:$0xff]   ;;  %v7363_v15 = vld [vmem:[%s8301_s12 + $0x28] ss:$16 sps:$4 sm:$0xff]  }
 0x991   :  { %6043 = vtanh.f32 %v1604_v12  ;;  %v7347_v12 = vld [vmem:[%s8301_s12 + $0x2c] ss:$16 sps:$4 sm:$0xff]   ;;  %v8370_v13 = vld [vmem:[#allocation10_spill] sm:$0xff] }
 0x992   :  { %6045 = vpow2.f32 %v5230_v16  ;;  %v7370_v17 = vld [vmem:[%s8301_s12 + $0x44] ss:$16 sps:$4 sm:$0xff]   ;;  %v7375_v61 = vld [vmem:[%s8301_s12 + $0x4c] ss:$16 sps:$4 sm:$0xff]   ;;  %v7384_v51 = vld [vmem:[%s8301_s12 + $0x40] ss:$16 sps:$4 sm:$0xff]  }
 0x993   :  { %v7389_v16 = vld [vmem:[%s8301_s12 + $0x48] ss:$16 sps:$4 sm:$0xff]  }
 0x999   :  { %v6040_v57 = vpop.eup %6039 }
 0x99a   :  { %v1614_v18 = vadd.f32 1.0, %v6040_v57  ;;  %v6042_v23 = vpop.eup %6041  ;;  %v7396_v57 = vld [vmem:[%s8301_s12 + $0x64] ss:$16 sps:$4 sm:$0xff]  }
 0x99b   :  { %v1615_v33 = vadd.f32 1.0, %v6042_v23  ;;  %v6044_v36 = vpop.eup %6043  ;;  %v8371_v23 = vld [vmem:[#allocation9_spill] sm:$0xff] }
 0x99c   :  { %6047 = vrcp.f32 %v1614_v18  ;;  %v6046_v54 = vpop.eup %6045  ;;  %v7401_v18 = vld [vmem:[%s8301_s12 + $0x6c] ss:$16 sps:$4 sm:$0xff]  }
 0x99d   :  { %6049 = vrcp.f32 %v1615_v33  ;;  %v1616_v30 = vadd.f32 1.0, %v6046_v54  ;;  %v7412_v33 = vld [vmem:[%s8301_s12 + $0x60] ss:$16 sps:$4 sm:$0xff]   ;;  %v7424_v54 = vld [vmem:[%s8301_s12 + $0x84] ss:$16 sps:$4 sm:$0xff]  }
 0x99f   :  { %6051 = vrcp.f32 %v1616_v30  ;;  %v7450_v30 = vld [vmem:[%s8301_s12 + $0xa4] ss:$16 sps:$4 sm:$0xff]  }
 0x9a6   :  { %v6048_v55 = vpop.eup %6047 }
 0x9a7   :  { %v1625_v2 = vmul.f32 %v6048_v55, %v6044_v36  ;;  %v6050_v29 = vpop.eup %6049  ;;  %v7417_v36 = vld [vmem:[%s8301_s12 + $0x68] ss:$16 sps:$4 sm:$0xff]   ;;  %v7429_v55 = vld [vmem:[%s8301_s12 + $0x8c] ss:$16 sps:$4 sm:$0xff]  }
 0x9a8   :  { %v1624_v19 = vmul.f32 %v6050_v29, %v7155_v39  ;;  %v5772_v39 = vld [vmem:[%s8300_s11 + $0x28] ss:$16 sps:$4 sm:$0xff]  }
 0x9a9   :  { %v6052_v26 = vpop.eup %6051  ;;  %v7443_v29 = vld [vmem:[%s8301_s12 + $0x88] ss:$16 sps:$4 sm:$0xff]  }
 0x9aa   :  { %v1626_v34 = vadd.f32 %v1625_v2, %v1624_v19  ;;  %v7438_v2 = vld [vmem:[%s8301_s12 + $0x80] ss:$16 sps:$4 sm:$0xff]   ;;  %v7455_v19 = vld [vmem:[%s8301_s12 + $0xac] ss:$16 sps:$4 sm:$0xff]  }
 0x9ac   :  { %6053 = vtanh.f32 %v1626_v34  ;;  %v8372_v34 = vld [vmem:[#allocation12_spill] sm:$0xff] }
 0x9b6   :  { %v6054_v35 = vpop.eup %6053 }
 0x9b7   :  { %v1628_v38 = vmul.f32 %v6054_v35, %v6052_v26  ;;  %v7466_v26 = vld [vmem:[%s8301_s12 + $0xa0] ss:$16 sps:$4 sm:$0xff]   ;;  %v7471_v35 = vld [vmem:[%s8301_s12 + $0xa8] ss:$16 sps:$4 sm:$0xff]  }
 0x9b9   :  { %v1629_v41 = vpack.c.bf16 %v1628_v38, %v1628_v38  ;;  %v7478_v38 = vld [vmem:[%s8301_s12 + $0xc4] ss:$16 sps:$4 sm:$0xff]  }
 0x9bb   :  { %5651 = vmatmul.mubr.bf16.vlgmr.msra.gmra.mrb[40].mxu0 %v1629_v41  ;;  %v7492_v41 = vld [vmem:[%s8301_s12 + $0xc0] ss:$16 sps:$4 sm:$0xff]  }
 0x9bc   :  { %2000 = vmatpush1.bf16.msra.mxu0 %v5766_v40  ;;  %2031 = vmatprep.mubr.bf16.mxu0 %v8351_v25  ;;  %v7483_v40 = vld [vmem:[%s8301_s12 + $0xcc] ss:$16 sps:$4 sm:$0xff]  }
 0x9bd   :  { %2001 = vmatprep.subr.bf16.mxu0 %v5774_v42  ;;  %v7497_v42 = vld [vmem:[%s8301_s12 + $0xc8] ss:$16 sps:$4 sm:$0xff]  }
 0x9c0   :  { %2002 = vmatpush1.bf16.msra.mxu0 %v5772_v39  ;;  %v7504_v39 = vld [vmem:[%s8301_s12 + $0xe4] ss:$16 sps:$4 sm:$0xff]  }
 0x9c1   :  { %2003 = vmatprep.subr.bf16.mxu0 %v5780_v43  ;;  %v7509_v43 = vld [vmem:[%s8301_s12 + $0xec] ss:$16 sps:$4 sm:$0xff]  }
 0x9c4   :  { %2004 = vmatpush1.bf16.msra.mxu0 %v5778_v44  ;;  %v8373_v44 = vld [vmem:[#allocation11_spill] sm:$0xff] }
 0x9c5   :  { %2005 = vmatprep.subr.bf16.mxu0 %v5786_v45  ;;  %v7520_v45 = vld [vmem:[%s8301_s12 + $0xe0] ss:$16 sps:$4 sm:$0xff]  }
 0x9c8   :  { %2006 = vmatpush1.bf16.msra.mxu0 %v5784_v46  ;;  %v7525_v46 = vld [vmem:[%s8301_s12 + $0xe8] ss:$16 sps:$4 sm:$0xff]  }
 0x9c9   :  { %2007 = vmatprep.subr.bf16.mxu0 %v5792_v49  ;;  %v1776_v49 = vld [vmem:[%s8302_s13] sm:$0xf] }
 0x9cc   :  { %2008 = vmatpush1.bf16.msra.mxu0 %v5790_v50 }
 0x9cd   :  { %2009 = vmatprep.subr.bf16.mxu0 %v5798_v59 }
 0x9d0   :  { %2010 = vmatpush1.bf16.msra.mxu0 %v5796_v20 }
 0x9d1   :  { %2011 = vmatprep.subr.bf16.mxu0 %v5804_v53 }
 0x9d4   :  { %2012 = vmatpush1.bf16.msra.mxu0 %v5802_v62 }
 0x9d5   :  { %2013 = vmatprep.subr.bf16.mxu0 %v5810_v0  ;;  %v8374_v0 = vld [vmem:[#allocation13_spill] sm:$0xff] }
 0x9d6   :  { %v8375_v27 = vsub.s32 0, %v8374_v0  ;;  %v8376_v52 = vsub.s32 2, %v8374_v0 }
 0x9d8   :  { %2014 = vmatpush1.bf16.msra.mxu0 %v5808_v31  ;;  %v1781_v31 = vrot.slane %v1776_v49, %v8375_v27 }
 0x9d9   :  { %2161 = vmatprep.subr.bf16.mxu0 %v5816_v4  ;;  %v1789_v4 = vrot.slane %v1776_v49, %v8376_v52 }
 0xa8e   :  { %v1735_v1 = vpop.f32.mrb[40].mxu0 }
 0xa8f   :  { %v1736_v32 = vadd.f32 %v5231_v56, %v1735_v1  ;;  %v5652_v60 = vpop.f32.mrb[41].mxu0 }
 0xa90   :  { %v1738_v37 = vpop.f32.mrb[42].mxu0  ;;  %v8378_v60 = vsub.s32 3, %v8374_v0 }
 0xa91   :  { %v1742_v63 = vadd.f32 %v1741_v24, %v1736_v32  ;;  %v5653_v48 = vpop.f32.mrb[43].mxu0  ;;  %v8377_v24 = vsub.s32 1, %v8374_v0 }
 0xa92   :  { %v1793_v37 = vrot.slane %v1776_v49, %v8378_v60 }
 0xa93   :  { %v1743_v58 = vpack.c.bf16 %v1742_v63, %v1742_v63  ;;  %v1785_v32 = vrot.slane %v1776_v49, %v8377_v24 }
 0xa95   :  { %1991 = vmatmul.mubr.bf16.vlgmr.msra.gmra.mrb[64].mxu1 %v1743_v58  ;;  %2032 = vmatmul.mubr.bf16.vlgmr.msra.gmra.mrb[44].mxu0 %v1743_v58 }
 0xa96   :  { %2089 = vmatpush1.bf16.msra.mxu1 %v5811_v3  ;;  %2162 = vmatpush1.bf16.msra.mxu0 %v5814_v28 }
 0xa97   :  { %2090 = vmatprep.subr.bf16.mxu1 %v5819_v47  ;;  %2163 = vmatprep.subr.bf16.mxu0 %v5822_v22 }
 0xa98   :  { %2120 = vmatprep.mubr.bf16.mxu1 %v8351_v25  ;;  %2193 = vmatprep.mubr.bf16.mxu0 %v8351_v25 }
 0xa9a   :  { %2091 = vmatpush1.bf16.msra.mxu1 %v5817_v5  ;;  %2164 = vmatpush1.bf16.msra.mxu0 %v5820_v6 }
 0xa9b   :  { %2494 = vmatprep.subr.bf16.mxu1 %v7318_v7  ;;  %2535 = vmatprep.subr.bf16.mxu0 %v7323_v8 }
 0xa9d   :  { %5280 = vmatmul.mubr.msk.bf16.vlgmr.msra.gmra.mrb[68].mxu1 %vm320_vm12, %v8370_v13  ;;  %5284 = vmatmul.mubr.msk.bf16.vlgmr.msra.gmra.mrb[48].mxu0 %vm320_vm12, %v8370_v13 }
 0xa9e   :  { %2495 = vmatpush1.bf16.msra.mxu1 %v7330_v9  ;;  %2536 = vmatpush1.bf16.msra.mxu0 %v7335_v10 }
 0xa9f   :  { %2496 = vmatprep.subr.bf16.mxu1 %v7342_v11  ;;  %2537 = vmatprep.subr.bf16.mxu0 %v7347_v12 }
 0xaa0   :  { %2130 = vmatprep.mubr.bf16.mxu1 %v8351_v25  ;;  %2203 = vmatprep.mubr.bf16.mxu0 %v8351_v25 }
 0xaa2   :  { %2497 = vmatpush1.bf16.msra.mxu1 %v7358_v14  ;;  %2538 = vmatpush1.bf16.msra.mxu0 %v7363_v15 }
 0xaa3   :  { %2498 = vmatprep.subr.bf16.mxu1 %v7370_v17  ;;  %2539 = vmatprep.subr.bf16.mxu0 %v7375_v61 }
 0xaa5   :  { %5281 = vmatmul.mubr.msk.bf16.gmra.mrb[72].mxu1 %vm320_vm12, %v8371_v23  ;;  %5285 = vmatmul.mubr.msk.bf16.gmra.mrb[52].mxu0 %vm320_vm12, %v8371_v23 }
 0xaa6   :  { %2499 = vmatpush1.bf16.msra.mxu1 %v7384_v51  ;;  %2540 = vmatpush1.bf16.msra.mxu0 %v7389_v16 }
 0xaa7   :  { %2500 = vmatprep.subr.bf16.mxu1 %v7396_v57  ;;  %2541 = vmatprep.subr.bf16.mxu0 %v7401_v18 }
 0xaa8   :  { %2140 = vmatprep.mubr.bf16.mxu1 %v8351_v25  ;;  %2213 = vmatprep.mubr.bf16.mxu0 %v8351_v25 }
 0xaaa   :  { %2501 = vmatpush1.bf16.msra.mxu1 %v7412_v33  ;;  %2542 = vmatpush1.bf16.msra.mxu0 %v7417_v36 }
 0xaab   :  { %2502 = vmatprep.subr.bf16.mxu1 %v7424_v54  ;;  %2543 = vmatprep.subr.bf16.mxu0 %v7429_v55 }
 0xaad   :  { %5282 = vmatmul.mubr.msk.bf16.gmra.mrb[76].mxu1 %vm320_vm12, %v8372_v34  ;;  %5286 = vmatmul.mubr.msk.bf16.gmra.mrb[56].mxu0 %vm320_vm12, %v8372_v34 }
 0xaae   :  { %2503 = vmatpush1.bf16.msra.mxu1 %v7438_v2  ;;  %2544 = vmatpush1.bf16.msra.mxu0 %v7443_v29 }
 0xaaf   :  { %2504 = vmatprep.subr.bf16.mxu1 %v7450_v30  ;;  %2545 = vmatprep.subr.bf16.mxu0 %v7455_v19 }
 0xab0   :  { %2150 = vmatprep.mubr.bf16.mxu1 %v8351_v25  ;;  %2223 = vmatprep.mubr.bf16.mxu0 %v8351_v25 }
 0xab2   :  { %2505 = vmatpush1.bf16.msra.mxu1 %v7466_v26  ;;  %2546 = vmatpush1.bf16.msra.mxu0 %v7471_v35 }
 0xab3   :  { %2506 = vmatprep.subr.bf16.mxu1 %v7478_v38  ;;  %2547 = vmatprep.subr.bf16.mxu0 %v7483_v40 }
 0xab5   :  { %5283 = vmatmul.mubr.msk.bf16.gmra.mrb[80].mxu1 %vm320_vm12, %v8373_v44  ;;  %5287 = vmatmul.mubr.msk.bf16.gmra.mrb[60].mxu0 %vm320_vm12, %v8373_v44 }
 0xab6   :  { %2507 = vmatpush1.bf16.msra.mxu1 %v7492_v41  ;;  %2548 = vmatpush1.bf16.msra.mxu0 %v7497_v42 }
 0xab7   :  { %2508 = vmatprep.subr.bf16.mxu1 %v7504_v39  ;;  %2549 = vmatprep.subr.bf16.mxu0 %v7509_v43 }
 0xab8   :  { %2526 = vmatprep.mubr.bf16.mxu1 %v8351_v25  ;;  %2567 = vmatprep.mubr.bf16.mxu0 %v8351_v25 }
 0xaba   :  { %2509 = vmatpush1.bf16.msra.mxu1 %v7520_v45  ;;  %2550 = vmatpush1.bf16.msra.mxu0 %v7525_v46 }
 0xabb   :  { %2803 = vmatprep.subr.bf16.mxu1 %v7318_v7  ;;  %2844 = vmatprep.subr.bf16.mxu0 %v7323_v8 }
 0xabd   :  { %2527 = vmatmul.mubr.bf16.vlgmr.msra.gmra.mrb[84].mxu1 %v8351_v25  ;;  %2568 = vmatmul.mubr.bf16.vlgmr.msra.gmra.mrb[64].mxu0 %v8351_v25 }
 0xabe   :  { %2804 = vmatpush1.bf16.msra.mxu1 %v7330_v9  ;;  %2845 = vmatpush1.bf16.msra.mxu0 %v7335_v10 }
 0xabf   :  { %2805 = vmatprep.subr.bf16.mxu1 %v7342_v11  ;;  %2846 = vmatprep.subr.bf16.mxu0 %v7347_v12 }
 0xac0   :  { %2835 = vmatprep.mubr.bf16.mxu1 %v8351_v25  ;;  %2876 = vmatprep.mubr.bf16.mxu0 %v8351_v25 }
 0xac2   :  { %2806 = vmatpush1.bf16.msra.mxu1 %v7358_v14  ;;  %2847 = vmatpush1.bf16.msra.mxu0 %v7363_v15 }
 0xac3   :  { %2807 = vmatprep.subr.bf16.mxu1 %v7370_v17  ;;  %2848 = vmatprep.subr.bf16.mxu0 %v7375_v61 }
 0xac6   :  { %2808 = vmatpush1.bf16.msra.mxu1 %v7384_v51  ;;  %2849 = vmatpush1.bf16.msra.mxu0 %v7389_v16 }
 0xac7   :  { %2809 = vmatprep.subr.bf16.mxu1 %v7396_v57  ;;  %2850 = vmatprep.subr.bf16.mxu0 %v7401_v18 }
 0xaca   :  { %2810 = vmatpush1.bf16.msra.mxu1 %v7412_v33  ;;  %2851 = vmatpush1.bf16.msra.mxu0 %v7417_v36 }
 0xacb   :  { %2811 = vmatprep.subr.bf16.mxu1 %v7424_v54  ;;  %2852 = vmatprep.subr.bf16.mxu0 %v7429_v55 }
 0xace   :  { %2812 = vmatpush1.bf16.msra.mxu1 %v7438_v2  ;;  %2853 = vmatpush1.bf16.msra.mxu0 %v7443_v29 }
 0xacf   :  { %2813 = vmatprep.subr.bf16.mxu1 %v7450_v30  ;;  %2854 = vmatprep.subr.bf16.mxu0 %v7455_v19 }
 0xad2   :  { %2814 = vmatpush1.bf16.msra.mxu1 %v7466_v26  ;;  %2855 = vmatpush1.bf16.msra.mxu0 %v7471_v35 }
 0xad3   :  { %2815 = vmatprep.subr.bf16.mxu1 %v7478_v38  ;;  %2856 = vmatprep.subr.bf16.mxu0 %v7483_v40 }
 0xad6   :  { %2816 = vmatpush1.bf16.msra.mxu1 %v7492_v41  ;;  %2857 = vmatpush1.bf16.msra.mxu0 %v7497_v42 }
 0xad7   :  { %2817 = vmatprep.subr.bf16.mxu1 %v7504_v39  ;;  %2858 = vmatprep.subr.bf16.mxu0 %v7509_v43 }
 0xada   :  { %2818 = vmatpush1.bf16.msra.mxu1 %v7520_v45  ;;  %2859 = vmatpush1.bf16.msra.mxu0 %v7525_v46 }
 0xadb   :  { %3113 = vmatprep.subr.bf16.mxu1 %v7318_v7  ;;  %3154 = vmatprep.subr.bf16.mxu0 %v7323_v8 }
 0xb68   :  { %v1992_v50 = vpop.f32.mrb[64].mxu1  ;;  %v2033_v59 = vpop.f32.mrb[44].mxu0 }
 0xb69   :  { %v1994_v20 = vpop.f32.mrb[65].mxu1  ;;  %v2035_v53 = vpop.f32.mrb[45].mxu0  ;;  %v1993_v63 = vadd.f32 %v1992_v50, %v1781_v31  ;;  %v2034_v48 = vadd.f32 %v2033_v59, %v1789_v4 }
 0xb6a   :  { %v1996_v62 = vpop.f32.mrb[66].mxu1  ;;  %v2037_v21 = vpop.f32.mrb[46].mxu0  ;;  %v7582_v3 = vadd.f32 %v1994_v20, %v1785_v32  ;;  %v7584_v28 = vadd.f32 %v2035_v53, %v1793_v37 }
 0xb6b   :  { %v1997_v56 = vpop.f32.mrb[67].mxu1  ;;  %v2038_v1 = vpop.f32.mrb[47].mxu0 }
 0xb70   :  { %v2122_v58 = vpop.f32.mrb[68].mxu1  ;;  %v2195_v47 = vpop.f32.mrb[48].mxu0 }
 0xb71   :  { %v7586_v22 = vadd.f32 %v2122_v58, %v1993_v63  ;;  %v7588_v5 = vadd.f32 %v2195_v47, %v2034_v48  ;;  %v2124_v6 = vpop.f32.mrb[69].mxu1  ;;  %v2197_v13 = vpop.f32.mrb[49].mxu0 }
 0xb72   :  { %v7591_v23 = vadd.f32 %v2124_v6, %v7582_v3  ;;  %v7594_v34 = vadd.f32 %v2197_v13, %v7584_v28  ;;  %v2126_v44 = vpop.f32.mrb[70].mxu1  ;;  %v2199_v49 = vpop.f32.mrb[50].mxu0 }
 0xb73   :  { %v7596_v50 = vadd.f32 %v2126_v44, %v1993_v63  ;;  %v7598_v59 = vadd.f32 %v2199_v49, %v2034_v48  ;;  %v2128_v20 = vpop.f32.mrb[71].mxu1  ;;  %v2201_v53 = vpop.f32.mrb[51].mxu0 }
 0xb74   :  { %v7601_v62 = vadd.f32 %v2128_v20, %v7582_v3  ;;  %v7604_v21 = vadd.f32 %v2201_v53, %v7584_v28 }
 0xb78   :  { %v2132_v0 = vpop.f32.mrb[72].mxu1  ;;  %v2205_v27 = vpop.f32.mrb[52].mxu0 }
 0xb79   :  { %v7606_v31 = vadd.f32 %v2132_v0, %v1993_v63  ;;  %v7608_v52 = vadd.f32 %v2205_v27, %v2034_v48  ;;  %v2134_v4 = vpop.f32.mrb[73].mxu1  ;;  %v2207_v56 = vpop.f32.mrb[53].mxu0 }
 0xb7a   :  { %v7611_v1 = vadd.f32 %v2134_v4, %v7582_v3  ;;  %v7614_v24 = vadd.f32 %v2207_v56, %v7584_v28  ;;  %v2136_v32 = vpop.f32.mrb[74].mxu1  ;;  %v2209_v60 = vpop.f32.mrb[54].mxu0 }
 0xb7b   :  { %v7616_v37 = vadd.f32 %v2136_v32, %v1993_v63  ;;  %v7618_v58 = vadd.f32 %v2209_v60, %v2034_v48  ;;  %v2138_v47 = vpop.f32.mrb[75].mxu1  ;;  %v2211_v6 = vpop.f32.mrb[55].mxu0 }
 0xb7c   :  { %v7621_v13 = vadd.f32 %v2138_v47, %v7582_v3  ;;  %v7624_v44 = vadd.f32 %v2211_v6, %v7584_v28 }
 0xb7d   :  { %8379 = vst [vmem:[#allocation14_spill] sm:$0xff] %v7618_v58 }
 0xb7e   :  { %8380 = vst [vmem:[#allocation23_spill] sm:$0xff] %v7621_v13  ;;  %8381 = vst [vmem:[#allocation15_spill] sm:$0xff] %v7624_v44 }
 0xb80   :  { %v2142_v49 = vpop.f32.mrb[76].mxu1  ;;  %v2215_v20 = vpop.f32.mrb[56].mxu0 }
 0xb81   :  { %v7626_v53 = vadd.f32 %v2142_v49, %v1993_v63  ;;  %v7628_v0 = vadd.f32 %v2215_v20, %v2034_v48  ;;  %v2144_v27 = vpop.f32.mrb[77].mxu1  ;;  %v2217_v4 = vpop.f32.mrb[57].mxu0 }
 0xb82   :  { %v7631_v56 = vadd.f32 %v2144_v27, %v7582_v3  ;;  %v7634_v32 = vadd.f32 %v2217_v4, %v7584_v28  ;;  %v2146_v60 = vpop.f32.mrb[78].mxu1  ;;  %v2219_v47 = vpop.f32.mrb[58].mxu0 }
 0xb83   :  { %8382 = vst [vmem:[#allocation24_spill] sm:$0xff] %v7626_v53  ;;  %8383 = vst [vmem:[#allocation16_spill] sm:$0xff] %v7628_v0  ;;  %v7636_v13 = vadd.f32 %v2146_v60, %v1993_v63  ;;  %v7638_v6 = vadd.f32 %v2219_v47, %v2034_v48  ;;  %v2148_v44 = vpop.f32.mrb[79].mxu1  ;;  %v2221_v58 = vpop.f32.mrb[59].mxu0 }
 0xb84   :  { %8384 = vst [vmem:[#allocation25_spill] sm:$0xff] %v7631_v56  ;;  %8385 = vst [vmem:[#allocation17_spill] sm:$0xff] %v7634_v32  ;;  %v7641_v49 = vadd.f32 %v2148_v44, %v7582_v3  ;;  %v7644_v20 = vadd.f32 %v2221_v58, %v7584_v28 }
 0xb85   :  { %8386 = vst [vmem:[#allocation26_spill] sm:$0xff] %v7636_v13  ;;  %8387 = vst [vmem:[#allocation18_spill] sm:$0xff] %v7638_v6 }
 0xb86   :  { %8388 = vst [vmem:[#allocation27_spill] sm:$0xff] %v7641_v49  ;;  %8389 = vst [vmem:[#allocation19_spill] sm:$0xff] %v7644_v20 }
 0xb88   :  { %v2152_v0 = vpop.f32.mrb[80].mxu1  ;;  %v2225_v27 = vpop.f32.mrb[60].mxu0 }
 0xb89   :  { %v7646_v56 = vadd.f32 %v2152_v0, %v1993_v63  ;;  %v7648_v4 = vadd.f32 %v2225_v27, %v2034_v48  ;;  %v2154_v32 = vpop.f32.mrb[81].mxu1  ;;  %v2227_v53 = vpop.f32.mrb[61].mxu0 }
 0xb8a   :  { %v7651_v60 = vadd.f32 %v2154_v32, %v7582_v3  ;;  %v7654_v47 = vadd.f32 %v2227_v53, %v7584_v28  ;;  %v2156_v6 = vpop.f32.mrb[82].mxu1  ;;  %v2229_v44 = vpop.f32.mrb[62].mxu0 }
 0xb8b   :  { %8390 = vst [vmem:[#allocation28_spill] sm:$0xff] %v7646_v56  ;;  %8391 = vst [vmem:[#allocation20_spill] sm:$0xff] %v7648_v4  ;;  %v7656_v49 = vadd.f32 %v2156_v6, %v1993_v63  ;;  %v7658_v58 = vadd.f32 %v2229_v44, %v2034_v48  ;;  %v2158_v20 = vpop.f32.mrb[83].mxu1  ;;  %v2231_v13 = vpop.f32.mrb[63].mxu0 }
 0xb8c   :  { %8392 = vst [vmem:[#allocation29_spill] sm:$0xff] %v7651_v60  ;;  %8393 = vst [vmem:[#allocation21_spill] sm:$0xff] %v7654_v47  ;;  %v7661_v0 = vadd.f32 %v2158_v20, %v7582_v3  ;;  %v7664_v27 = vadd.f32 %v2231_v13, %v7584_v28 }
 0xb8d   :  { %8394 = vst [vmem:[#allocation30_spill] sm:$0xff] %v7658_v58 }
 0xb8e   :  { %8395 = vst [vmem:[#allocation22_spill] sm:$0xff] %v7661_v0  ;;  %8396 = vst [vmem:[#allocation31_spill] sm:$0xff] %v7664_v27 }
 0xb90   :  { %v2528_v4 = vpop.f32.mrb[84].mxu1  ;;  %v2569_v32 = vpop.f32.mrb[64].mxu0 }
 0xb91   :  { %v2576_v60 = vadd.f32 %v2528_v4, %v7586_v22  ;;  %v2578_v53 = vadd.f32 %v2569_v32, %v7588_v5  ;;  %v2530_v47 = vpop.f32.mrb[85].mxu1  ;;  %v2571_v56 = vpop.f32.mrb[65].mxu0 }
 0xb92   :  { %v2577_v63 = vadd.f32 %v2530_v47, %v7591_v23  ;;  %v2579_v48 = vadd.f32 %v2571_v56, %v7594_v34  ;;  %v2532_v6 = vpop.f32.mrb[86].mxu1  ;;  %v2573_v44 = vpop.f32.mrb[66].mxu0 }
 0xb93   :  { %v5320_v58 = vmul.f32 -1.442695, %v2576_v60  ;;  %v2533_v3 = vpop.f32.mrb[87].mxu1  ;;  %v2574_v20 = vpop.f32.mrb[67].mxu0  ;;  %v5322_v28 = vmul.f32 -1.442695, %v2578_v53 }
 0xb94   :  { %v5321_v0 = vmul.f32 -1.442695, %v2577_v63 }
 0xb95   :  { %6055 = vpow2.f32 %v5320_v58 }
 0xb96   :  { %6057 = vpow2.f32 %v5321_v0 }
 0xb97   :  { %6059 = vtanh.f32 %v2579_v48 }
 0xb98   :  { %6061 = vpow2.f32 %v5322_v28 }
 0xb9f   :  { %v6056_v13 = vpop.eup %6055 }
 0xba0   :  { %v2589_v27 = vadd.f32 1.0, %v6056_v13  ;;  %v6058_v22 = vpop.eup %6057 }
 0xba1   :  { %v2590_v5 = vadd.f32 1.0, %v6058_v22  ;;  %v6060_v23 = vpop.eup %6059 }
 0xba2   :  { %6063 = vrcp.f32 %v2589_v27  ;;  %v6062_v4 = vpop.eup %6061 }
 0xba3   :  { %6065 = vrcp.f32 %v2590_v5  ;;  %v2591_v60 = vadd.f32 1.0, %v6062_v4 }
 0xba5   :  { %6067 = vrcp.f32 %v2591_v60 }
 0xbac   :  { %v6064_v34 = vpop.eup %6063 }
 0xbad   :  { %v2600_v56 = vmul.f32 %v6064_v34, %v6060_v23  ;;  %v6066_v47 = vpop.eup %6065 }
 0xbae   :  { %v2599_v32 = vmul.f32 0.0, %v6066_v47 }
 0xbaf   :  { %v6068_v58 = vpop.eup %6067 }
 0xbb0   :  { %v7670_v6 = vadd.f32 %v2600_v56, %v2599_v32 }
 0xbb2   :  { %6069 = vtanh.f32 %v7670_v6 }
 0xbbc   :  { %v6070_v0 = vpop.eup %6069 }
 0xbbd   :  { %v7673_v53 = vmul.f32 %v6070_v0, %v6068_v58 }
 0xbbf   :  { %v2610_v27 = vpack.c.bf16 %v7673_v53, %v7673_v53 }
 0xbc1   :  { %2836 = vmatmul.mubr.bf16.vlgmr.msra.gmra.mrb[88].mxu1 %v2610_v27  ;;  %2877 = vmatmul.mubr.bf16.vlgmr.msra.gmra.mrb[68].mxu0 %v2610_v27 }
 0xbc2   :  { %3114 = vmatpush1.bf16.msra.mxu1 %v7330_v9  ;;  %3155 = vmatpush1.bf16.msra.mxu0 %v7335_v10 }
 0xbc3   :  { %3115 = vmatprep.subr.bf16.mxu1 %v7342_v11  ;;  %3156 = vmatprep.subr.bf16.mxu0 %v7347_v12 }
 0xbc4   :  { %3145 = vmatprep.mubr.bf16.mxu1 %v8351_v25  ;;  %3186 = vmatprep.mubr.bf16.mxu0 %v8351_v25 }
 0xbc6   :  { %3116 = vmatpush1.bf16.msra.mxu1 %v7358_v14  ;;  %3157 = vmatpush1.bf16.msra.mxu0 %v7363_v15 }
 0xbc7   :  { %3117 = vmatprep.subr.bf16.mxu1 %v7370_v17  ;;  %3158 = vmatprep.subr.bf16.mxu0 %v7375_v61 }
 0xbca   :  { %3118 = vmatpush1.bf16.msra.mxu1 %v7384_v51  ;;  %3159 = vmatpush1.bf16.msra.mxu0 %v7389_v16 }
 0xbcb   :  { %3119 = vmatprep.subr.bf16.mxu1 %v7396_v57  ;;  %3160 = vmatprep.subr.bf16.mxu0 %v7401_v18 }
 0xbce   :  { %3120 = vmatpush1.bf16.msra.mxu1 %v7412_v33  ;;  %3161 = vmatpush1.bf16.msra.mxu0 %v7417_v36 }
 0xbcf   :  { %3121 = vmatprep.subr.bf16.mxu1 %v7424_v54  ;;  %3162 = vmatprep.subr.bf16.mxu0 %v7429_v55 }
 0xbd2   :  { %3122 = vmatpush1.bf16.msra.mxu1 %v7438_v2  ;;  %3163 = vmatpush1.bf16.msra.mxu0 %v7443_v29 }
 0xbd3   :  { %3123 = vmatprep.subr.bf16.mxu1 %v7450_v30  ;;  %3164 = vmatprep.subr.bf16.mxu0 %v7455_v19 }
 0xbd6   :  { %3124 = vmatpush1.bf16.msra.mxu1 %v7466_v26  ;;  %3165 = vmatpush1.bf16.msra.mxu0 %v7471_v35 }
 0xbd7   :  { %3125 = vmatprep.subr.bf16.mxu1 %v7478_v38  ;;  %3166 = vmatprep.subr.bf16.mxu0 %v7483_v40 }
 0xbda   :  { %3126 = vmatpush1.bf16.msra.mxu1 %v7492_v41  ;;  %3167 = vmatpush1.bf16.msra.mxu0 %v7497_v42 }
 0xbdb   :  { %3127 = vmatprep.subr.bf16.mxu1 %v7504_v39  ;;  %3168 = vmatprep.subr.bf16.mxu0 %v7509_v43 }
 0xbde   :  { %3128 = vmatpush1.bf16.msra.mxu1 %v7520_v45  ;;  %3169 = vmatpush1.bf16.msra.mxu0 %v7525_v46 }
 0xbdf   :  { %3423 = vmatprep.subr.bf16.mxu1 %v7318_v7  ;;  %3464 = vmatprep.subr.bf16.mxu0 %v7323_v8 }
 0xc94   :  { %v2837_v63 = vpop.f32.mrb[88].mxu1  ;;  %v2878_v48 = vpop.f32.mrb[68].mxu0 }
 0xc95   :  { %v2885_v44 = vadd.f32 %v2837_v63, %v7596_v50  ;;  %v2887_v3 = vadd.f32 %v2878_v48, %v7598_v59  ;;  %v2839_v20 = vpop.f32.mrb[89].mxu1  ;;  %v2880_v28 = vpop.f32.mrb[69].mxu0 }
 0xc96   :  { %v2886_v13 = vadd.f32 %v2839_v20, %v7601_v62  ;;  %v2888_v22 = vadd.f32 %v2880_v28, %v7604_v21  ;;  %v2841_v5 = vpop.f32.mrb[90].mxu1  ;;  %v2882_v23 = vpop.f32.mrb[70].mxu0 }
 0xc97   :  { %v5355_v4 = vmul.f32 -1.442695, %v2885_v44  ;;  %v2842_v34 = vpop.f32.mrb[91].mxu1  ;;  %v2883_v56 = vpop.f32.mrb[71].mxu0  ;;  %v5357_v8 = vmul.f32 -1.442695, %v2887_v3 }
 0xc98   :  { %v5356_v7 = vmul.f32 -1.442695, %v2886_v13  ;;  %v7796_v13 = vld [vmem:[%s8301_s12 + $0x24] ss:$16 sps:$4 sm:$0xff]   ;;  %v7806_v5 = vld [vmem:[%s8301_s12 + $0x20] ss:$16 sps:$4 sm:$0xff]  }
 0xc99   :  { %6071 = vpow2.f32 %v5355_v4  ;;  %v7811_v23 = vld [vmem:[%s8301_s12 + $0x28] ss:$16 sps:$4 sm:$0xff]   ;;  %v7820_v4 = vld [vmem:[%s8301_s12 + $0x44] ss:$16 sps:$4 sm:$0xff]   ;;  %v7825_v34 = vld [vmem:[%s8301_s12 + $0x4c] ss:$16 sps:$4 sm:$0xff]  }
 0xc9a   :  { %6073 = vpow2.f32 %v5356_v7  ;;  %v7830_v56 = vld [vmem:[%s8301_s12 + $0x40] ss:$16 sps:$4 sm:$0xff]   ;;  %v7835_v7 = vld [vmem:[%s8301_s12 + $0x48] ss:$16 sps:$4 sm:$0xff]  }
 0xc9b   :  { %6075 = vtanh.f32 %v2888_v22  ;;  %v7801_v22 = vld [vmem:[%s8301_s12 + $0x2c] ss:$16 sps:$4 sm:$0xff]  }
 0xc9c   :  { %6077 = vpow2.f32 %v5357_v8  ;;  %v7844_v8 = vld [vmem:[%s8301_s12 + $0x64] ss:$16 sps:$4 sm:$0xff]  }
 0xca3   :  { %v6072_v47 = vpop.eup %6071 }
 0xca4   :  { %v2898_v60 = vadd.f32 1.0, %v6072_v47  ;;  %v6074_v50 = vpop.eup %6073  ;;  %v7849_v47 = vld [vmem:[%s8301_s12 + $0x6c] ss:$16 sps:$4 sm:$0xff]  }
 0xca5   :  { %v2899_v59 = vadd.f32 1.0, %v6074_v50  ;;  %v6076_v62 = vpop.eup %6075  ;;  %v7859_v50 = vld [vmem:[%s8301_s12 + $0x68] ss:$16 sps:$4 sm:$0xff]  }
 0xca6   :  { %6079 = vrcp.f32 %v2898_v60  ;;  %v6078_v32 = vpop.eup %6077  ;;  %v7854_v60 = vld [vmem:[%s8301_s12 + $0x60] ss:$16 sps:$4 sm:$0xff]  }
 0xca7   :  { %6081 = vrcp.f32 %v2899_v59  ;;  %v2900_v27 = vadd.f32 1.0, %v6078_v32  ;;  %v7868_v59 = vld [vmem:[%s8301_s12 + $0x84] ss:$16 sps:$4 sm:$0xff]   ;;  %v7878_v32 = vld [vmem:[%s8301_s12 + $0x80] ss:$16 sps:$4 sm:$0xff]  }
 0xca9   :  { %6083 = vrcp.f32 %v2900_v27  ;;  %v7902_v27 = vld [vmem:[%s8301_s12 + $0xa8] ss:$16 sps:$4 sm:$0xff]  }
 0xcb0   :  { %v6080_v21 = vpop.eup %6079 }
 0xcb1   :  { %v2909_v58 = vmul.f32 %v6080_v21, %v6076_v62  ;;  %v6082_v0 = vpop.eup %6081  ;;  %v7873_v62 = vld [vmem:[%s8301_s12 + $0x8c] ss:$16 sps:$4 sm:$0xff]   ;;  %v7883_v21 = vld [vmem:[%s8301_s12 + $0x88] ss:$16 sps:$4 sm:$0xff]  }
 0xcb2   :  { %v2908_v63 = vmul.f32 %v6082_v0, %v7670_v6  ;;  %v7787_v6 = vld [vmem:[%s8301_s12 + $0x8] ss:$16 sps:$4 sm:$0xff]   ;;  %v7897_v0 = vld [vmem:[%s8301_s12 + $0xa4] ss:$16 sps:$4 sm:$0xff]  }
 0xcb3   :  { %v6084_v44 = vpop.eup %6083 }
 0xcb4   :  { %v7716_v48 = vadd.f32 %v2909_v58, %v2908_v63  ;;  %v7892_v58 = vld [vmem:[%s8301_s12 + $0xa0] ss:$16 sps:$4 sm:$0xff]   ;;  %v7907_v63 = vld [vmem:[%s8301_s12 + $0xac] ss:$16 sps:$4 sm:$0xff]  }
 0xcb6   :  { %6085 = vtanh.f32 %v7716_v48 }
 0xcc0   :  { %v6086_v3 = vpop.eup %6085 }
 0xcc1   :  { %v7719_v20 = vmul.f32 %v6086_v3, %v6084_v44  ;;  %v7918_v44 = vld [vmem:[%s8301_s12 + $0xcc] ss:$16 sps:$4 sm:$0xff]   ;;  %v7926_v3 = vld [vmem:[%s8301_s12 + $0xc0] ss:$16 sps:$4 sm:$0xff]  }
 0xcc3   :  { %v2920_v28 = vpack.c.bf16 %v7719_v20, %v7719_v20 }
 0xcc5   :  { %3146 = vmatmul.mubr.bf16.vlgmr.msra.gmra.mrb[92].mxu1 %v2920_v28  ;;  %3187 = vmatmul.mubr.bf16.vlgmr.msra.gmra.mrb[72].mxu0 %v2920_v28  ;;  %v7931_v28 = vld [vmem:[%s8301_s12 + $0xc8] ss:$16 sps:$4 sm:$0xff]  }
 0xcc6   :  { %3424 = vmatpush1.bf16.msra.mxu1 %v7330_v9  ;;  %3465 = vmatpush1.bf16.msra.mxu0 %v7335_v10 }
 0xcc7   :  { %3425 = vmatprep.subr.bf16.mxu1 %v7342_v11  ;;  %3466 = vmatprep.subr.bf16.mxu0 %v7347_v12 }
 0xcc8   :  { %3455 = vmatprep.mubr.bf16.mxu1 %v8351_v25  ;;  %3496 = vmatprep.mubr.bf16.mxu0 %v8351_v25 }
 0xcca   :  { %3426 = vmatpush1.bf16.msra.mxu1 %v7358_v14  ;;  %3467 = vmatpush1.bf16.msra.mxu0 %v7363_v15 }
 0xccb   :  { %3427 = vmatprep.subr.bf16.mxu1 %v7370_v17  ;;  %3468 = vmatprep.subr.bf16.mxu0 %v7375_v61 }
 0xcce   :  { %3428 = vmatpush1.bf16.msra.mxu1 %v7384_v51  ;;  %3469 = vmatpush1.bf16.msra.mxu0 %v7389_v16 }
 0xccf   :  { %3429 = vmatprep.subr.bf16.mxu1 %v7396_v57  ;;  %3470 = vmatprep.subr.bf16.mxu0 %v7401_v18 }
 0xcd2   :  { %3430 = vmatpush1.bf16.msra.mxu1 %v7412_v33  ;;  %3471 = vmatpush1.bf16.msra.mxu0 %v7417_v36 }
 0xcd3   :  { %3431 = vmatprep.subr.bf16.mxu1 %v7424_v54  ;;  %3472 = vmatprep.subr.bf16.mxu0 %v7429_v55 }
 0xcd6   :  { %3432 = vmatpush1.bf16.msra.mxu1 %v7438_v2  ;;  %3473 = vmatpush1.bf16.msra.mxu0 %v7443_v29 }
 0xcd7   :  { %3433 = vmatprep.subr.bf16.mxu1 %v7450_v30  ;;  %3474 = vmatprep.subr.bf16.mxu0 %v7455_v19 }
 0xcda   :  { %3434 = vmatpush1.bf16.msra.mxu1 %v7466_v26  ;;  %3475 = vmatpush1.bf16.msra.mxu0 %v7471_v35 }
 0xcdb   :  { %3435 = vmatprep.subr.bf16.mxu1 %v7478_v38  ;;  %3476 = vmatprep.subr.bf16.mxu0 %v7483_v40 }
 0xcde   :  { %3436 = vmatpush1.bf16.msra.mxu1 %v7492_v41  ;;  %3477 = vmatpush1.bf16.msra.mxu0 %v7497_v42 }
 0xcdf   :  { %3437 = vmatprep.subr.bf16.mxu1 %v7504_v39  ;;  %3478 = vmatprep.subr.bf16.mxu0 %v7509_v43 }
 0xce2   :  { %3438 = vmatpush1.bf16.msra.mxu1 %v7520_v45  ;;  %3479 = vmatpush1.bf16.msra.mxu0 %v7525_v46 }
 0xd98   :  { %v3147_v9 = vpop.f32.mrb[92].mxu1  ;;  %v3188_v10 = vpop.f32.mrb[72].mxu0 }
 0xd99   :  { %v3195_v11 = vadd.f32 %v3147_v9, %v7606_v31  ;;  %v3197_v12 = vadd.f32 %v3188_v10, %v7608_v52  ;;  %v3149_v14 = vpop.f32.mrb[93].mxu1  ;;  %v3190_v15 = vpop.f32.mrb[73].mxu0  ;;  %v7772_v52 = vld [vmem:[%s8301_s12 + $0x4] ss:$16 sps:$4 sm:$0xff]   ;;  %v7943_v10 = vld [vmem:[%s8301_s12 + $0xec] ss:$16 sps:$4 sm:$0xff]  }
 0xd9a   :  { %v3196_v17 = vadd.f32 %v3149_v14, %v7611_v1  ;;  %v3198_v61 = vadd.f32 %v3190_v15, %v7614_v24  ;;  %v3151_v51 = vpop.f32.mrb[94].mxu1  ;;  %v3192_v16 = vpop.f32.mrb[74].mxu0  ;;  %v7777_v1 = vld [vmem:[%s8301_s12 + $0xc] ss:$16 sps:$4 sm:$0xff]   ;;  %v7782_v24 = vld [vmem:[%s8301_s12] ss:$16 sps:$4 sm:$0xff]   ;;  %3733 = vmatprep.subr.bf16.mxu1 %v7772_v52 }
 0xd9b   :  { %v5390_v57 = vmul.f32 -1.442695, %v3195_v11  ;;  %v3152_v18 = vpop.f32.mrb[95].mxu1  ;;  %v3193_v33 = vpop.f32.mrb[75].mxu0  ;;  %v5392_v54 = vmul.f32 -1.442695, %v3197_v12  ;;  %3774 = vmatprep.subr.bf16.mxu0 %v7777_v1 }
 0xd9c   :  { %v5391_v36 = vmul.f32 -1.442695, %v3196_v17  ;;  %v7938_v9 = vld [vmem:[%s8301_s12 + $0xe4] ss:$16 sps:$4 sm:$0xff]   ;;  %v7950_v11 = vld [vmem:[%s8301_s12 + $0xe0] ss:$16 sps:$4 sm:$0xff]  }
 0xd9d   :  { %6087 = vpow2.f32 %v5390_v57  ;;  %v7955_v12 = vld [vmem:[%s8301_s12 + $0xe8] ss:$16 sps:$4 sm:$0xff]  }
 0xd9e   :  { %6089 = vpow2.f32 %v5391_v36  ;;  %v8398_v18 = vld [vmem:[#allocation23_spill] sm:$0xff] }
 0xd9f   :  { %6091 = vtanh.f32 %v3198_v61  ;;  %v8397_v61 = vld [vmem:[#allocation14_spill] sm:$0xff]  ;;  %v8399_v36 = vld [vmem:[#allocation15_spill] sm:$0xff] }
 0xda0   :  { %6093 = vpow2.f32 %v5392_v54 }
 0xda7   :  { %v6088_v55 = vpop.eup %6087 }
 0xda8   :  { %v3208_v2 = vadd.f32 1.0, %v6088_v55  ;;  %v6090_v29 = vpop.eup %6089 }
 0xda9   :  { %v3209_v30 = vadd.f32 1.0, %v6090_v29  ;;  %v6092_v19 = vpop.eup %6091 }
 0xdaa   :  { %6095 = vrcp.f32 %v3208_v2  ;;  %v6094_v26 = vpop.eup %6093 }
 0xdab   :  { %6097 = vrcp.f32 %v3209_v30  ;;  %v3210_v41 = vadd.f32 1.0, %v6094_v26 }
 0xdad   :  { %6099 = vrcp.f32 %v3210_v41 }
 0xdb4   :  { %v6096_v35 = vpop.eup %6095 }
 0xdb5   :  { %v3219_v38 = vmul.f32 %v6096_v35, %v6092_v19  ;;  %v6098_v40 = vpop.eup %6097 }
 0xdb6   :  { %v3218_v42 = vmul.f32 %v6098_v40, %v7716_v48  ;;  %v7912_v48 = vld [vmem:[%s8301_s12 + $0xc4] ss:$16 sps:$4 sm:$0xff]  }
 0xdb7   :  { %v6100_v43 = vpop.eup %6099 }
 0xdb8   :  { %v7760_v39 = vadd.f32 %v3219_v38, %v3218_v42 }
 0xdba   :  { %6101 = vtanh.f32 %v7760_v39 }
 0xdc4   :  { %v6102_v45 = vpop.eup %6101 }
 0xdc5   :  { %v7763_v46 = vmul.f32 %v6102_v45, %v6100_v43 }
 0xdc7   :  { %v3230_v31 = vpack.c.bf16 %v7763_v46, %v7763_v46 }
 0xdc9   :  { %3456 = vmatmul.mubr.bf16.vlgmr.msra.gmra.mrb[96].mxu1 %v3230_v31  ;;  %3497 = vmatmul.mubr.bf16.vlgmr.msra.gmra.mrb[76].mxu0 %v3230_v31 }
 0xdca   :  { %3765 = vmatprep.mubr.bf16.mxu1 %v8351_v25  ;;  %3806 = vmatprep.mubr.bf16.mxu0 %v8351_v25 }
 0xdcb   :  { %3734 = vmatpush1.bf16.msra.mxu1 %v7782_v24  ;;  %3775 = vmatpush1.bf16.msra.mxu0 %v7787_v6 }
 0xdcc   :  { %3735 = vmatprep.subr.bf16.mxu1 %v7796_v13  ;;  %3776 = vmatprep.subr.bf16.mxu0 %v7801_v22 }
 0xdcf   :  { %3736 = vmatpush1.bf16.msra.mxu1 %v7806_v5  ;;  %3777 = vmatpush1.bf16.msra.mxu0 %v7811_v23 }
 0xdd0   :  { %3737 = vmatprep.subr.bf16.mxu1 %v7820_v4  ;;  %3778 = vmatprep.subr.bf16.mxu0 %v7825_v34 }
 0xdd3   :  { %3738 = vmatpush1.bf16.msra.mxu1 %v7830_v56  ;;  %3779 = vmatpush1.bf16.msra.mxu0 %v7835_v7 }
 0xdd4   :  { %3739 = vmatprep.subr.bf16.mxu1 %v7844_v8  ;;  %3780 = vmatprep.subr.bf16.mxu0 %v7849_v47 }
 0xdd7   :  { %3740 = vmatpush1.bf16.msra.mxu1 %v7854_v60  ;;  %3781 = vmatpush1.bf16.msra.mxu0 %v7859_v50 }
 0xdd8   :  { %3741 = vmatprep.subr.bf16.mxu1 %v7868_v59  ;;  %3782 = vmatprep.subr.bf16.mxu0 %v7873_v62 }
 0xddb   :  { %3742 = vmatpush1.bf16.msra.mxu1 %v7878_v32  ;;  %3783 = vmatpush1.bf16.msra.mxu0 %v7883_v21 }
 0xddc   :  { %3743 = vmatprep.subr.bf16.mxu1 %v7897_v0  ;;  %3784 = vmatprep.subr.bf16.mxu0 %v7907_v63 }
 0xddf   :  { %3744 = vmatpush1.bf16.msra.mxu1 %v7892_v58  ;;  %3785 = vmatpush1.bf16.msra.mxu0 %v7902_v27 }
 0xde0   :  { %3745 = vmatprep.subr.bf16.mxu1 %v7912_v48  ;;  %3786 = vmatprep.subr.bf16.mxu0 %v7918_v44 }
 0xde3   :  { %3746 = vmatpush1.bf16.msra.mxu1 %v7926_v3  ;;  %3787 = vmatpush1.bf16.msra.mxu0 %v7931_v28 }
 0xde4   :  { %3747 = vmatprep.subr.bf16.mxu1 %v7938_v9  ;;  %3788 = vmatprep.subr.bf16.mxu0 %v7943_v10 }
 0xde7   :  { %3748 = vmatpush1.bf16.msra.mxu1 %v7950_v11  ;;  %3789 = vmatpush1.bf16.msra.mxu0 %v7955_v12 }
 0xde8   :  { %4043 = vmatprep.subr.bf16.mxu1 %v7772_v52  ;;  %4084 = vmatprep.subr.bf16.mxu0 %v7777_v1 }
 0xe9c   :  { %v3457_v14 = vpop.f32.mrb[96].mxu1  ;;  %v3498_v15 = vpop.f32.mrb[76].mxu0 }
 0xe9d   :  { %v3505_v17 = vadd.f32 %v3457_v14, %v7616_v37  ;;  %v3507_v51 = vadd.f32 %v3498_v15, %v8397_v61  ;;  %v3459_v16 = vpop.f32.mrb[97].mxu1  ;;  %v3500_v57 = vpop.f32.mrb[77].mxu0 }
 0xe9e   :  { %v3506_v33 = vadd.f32 %v3459_v16, %v8398_v18  ;;  %v3508_v54 = vadd.f32 %v3500_v57, %v8399_v36  ;;  %v3461_v55 = vpop.f32.mrb[98].mxu1  ;;  %v3502_v2 = vpop.f32.mrb[78].mxu0  ;;  %v8400_v36 = vld [vmem:[#allocation24_spill] sm:$0xff] }
 0xe9f   :  { %v5425_v29 = vmul.f32 -1.442695, %v3505_v17  ;;  %v3462_v30 = vpop.f32.mrb[99].mxu1  ;;  %v3503_v19 = vpop.f32.mrb[79].mxu0  ;;  %v5427_v35 = vmul.f32 -1.442695, %v3507_v51 }
 0xea0   :  { %v5426_v26 = vmul.f32 -1.442695, %v3506_v33  ;;  %v8401_v55 = vld [vmem:[#allocation16_spill] sm:$0xff]  ;;  %v8402_v19 = vld [vmem:[#allocation25_spill] sm:$0xff] }
 0xea1   :  { %6103 = vpow2.f32 %v5425_v29 }
 0xea2   :  { %6105 = vpow2.f32 %v5426_v26 }
 0xea3   :  { %6107 = vtanh.f32 %v3508_v54 }
 0xea4   :  { %6109 = vpow2.f32 %v5427_v35  ;;  %v8403_v35 = vld [vmem:[#allocation17_spill] sm:$0xff] }
 0xeab   :  { %v6104_v38 = vpop.eup %6103 }
 0xeac   :  { %v3518_v40 = vadd.f32 1.0, %v6104_v38  ;;  %v6106_v37 = vpop.eup %6105 }
 0xead   :  { %v3519_v41 = vadd.f32 1.0, %v6106_v37  ;;  %v6108_v42 = vpop.eup %6107 }
 0xeae   :  { %6111 = vrcp.f32 %v3518_v40  ;;  %v6110_v43 = vpop.eup %6109 }
 0xeaf   :  { %6113 = vrcp.f32 %v3519_v41  ;;  %v3520_v15 = vadd.f32 1.0, %v6110_v43 }
 0xeb1   :  { %6115 = vrcp.f32 %v3520_v15 }
 0xeb8   :  { %v6112_v45 = vpop.eup %6111 }
 0xeb9   :  { %v3529_v31 = vmul.f32 %v6112_v45, %v6108_v42  ;;  %v6114_v14 = vpop.eup %6113 }
 0xeba   :  { %v3528_v17 = vmul.f32 %v6114_v14, %v7760_v39 }
 0xebb   :  { %v6116_v51 = vpop.eup %6115 }
 0xebc   :  { %v7968_v61 = vadd.f32 %v3529_v31, %v3528_v17 }
 0xebe   :  { %6117 = vtanh.f32 %v7968_v61 }
 0xec8   :  { %v6118_v16 = vpop.eup %6117 }
 0xec9   :  { %v7971_v57 = vmul.f32 %v6118_v16, %v6116_v51 }
 0xecb   :  { %v3540_v18 = vpack.c.bf16 %v7971_v57, %v7971_v57 }
 0xecd   :  { %3766 = vmatmul.mubr.bf16.vlgmr.msra.gmra.mrb[100].mxu1 %v3540_v18  ;;  %3807 = vmatmul.mubr.bf16.vlgmr.msra.gmra.mrb[80].mxu0 %v3540_v18 }
 0xece   :  { %4044 = vmatpush1.bf16.msra.mxu1 %v7782_v24  ;;  %4085 = vmatpush1.bf16.msra.mxu0 %v7787_v6 }
 0xecf   :  { %4045 = vmatprep.subr.bf16.mxu1 %v7796_v13  ;;  %4086 = vmatprep.subr.bf16.mxu0 %v7801_v22 }
 0xed0   :  { %4075 = vmatprep.mubr.bf16.mxu1 %v8351_v25  ;;  %4116 = vmatprep.mubr.bf16.mxu0 %v8351_v25 }
 0xed2   :  { %4046 = vmatpush1.bf16.msra.mxu1 %v7806_v5  ;;  %4087 = vmatpush1.bf16.msra.mxu0 %v7811_v23 }
 0xed3   :  { %4047 = vmatprep.subr.bf16.mxu1 %v7820_v4  ;;  %4088 = vmatprep.subr.bf16.mxu0 %v7825_v34 }
 0xed6   :  { %4048 = vmatpush1.bf16.msra.mxu1 %v7830_v56  ;;  %4089 = vmatpush1.bf16.msra.mxu0 %v7835_v7 }
 0xed7   :  { %4049 = vmatprep.subr.bf16.mxu1 %v7844_v8  ;;  %4090 = vmatprep.subr.bf16.mxu0 %v7849_v47 }
 0xeda   :  { %4050 = vmatpush1.bf16.msra.mxu1 %v7854_v60  ;;  %4091 = vmatpush1.bf16.msra.mxu0 %v7859_v50 }
 0xedb   :  { %4051 = vmatprep.subr.bf16.mxu1 %v7868_v59  ;;  %4092 = vmatprep.subr.bf16.mxu0 %v7873_v62 }
 0xede   :  { %4052 = vmatpush1.bf16.msra.mxu1 %v7878_v32  ;;  %4093 = vmatpush1.bf16.msra.mxu0 %v7883_v21 }
 0xedf   :  { %4053 = vmatprep.subr.bf16.mxu1 %v7897_v0  ;;  %4094 = vmatprep.subr.bf16.mxu0 %v7907_v63 }
 0xee2   :  { %4054 = vmatpush1.bf16.msra.mxu1 %v7892_v58  ;;  %4095 = vmatpush1.bf16.msra.mxu0 %v7902_v27 }
 0xee3   :  { %4055 = vmatprep.subr.bf16.mxu1 %v7912_v48  ;;  %4096 = vmatprep.subr.bf16.mxu0 %v7918_v44 }
 0xee6   :  { %4056 = vmatpush1.bf16.msra.mxu1 %v7926_v3  ;;  %4097 = vmatpush1.bf16.msra.mxu0 %v7931_v28 }
 0xee7   :  { %4057 = vmatprep.subr.bf16.mxu1 %v7938_v9  ;;  %4098 = vmatprep.subr.bf16.mxu0 %v7943_v10 }
 0xeea   :  { %4058 = vmatpush1.bf16.msra.mxu1 %v7950_v11  ;;  %4099 = vmatpush1.bf16.msra.mxu0 %v7955_v12 }
 0xeeb   :  { %4353 = vmatprep.subr.bf16.mxu1 %v7772_v52  ;;  %4394 = vmatprep.subr.bf16.mxu0 %v7777_v1 }
 0xfa0   :  { %v3767_v39 = vpop.f32.mrb[100].mxu1  ;;  %v3808_v33 = vpop.f32.mrb[80].mxu0 }
 0xfa1   :  { %v3815_v54 = vadd.f32 %v3767_v39, %v8400_v36  ;;  %v3817_v2 = vadd.f32 %v3808_v33, %v8401_v55  ;;  %v3769_v29 = vpop.f32.mrb[101].mxu1  ;;  %v3810_v30 = vpop.f32.mrb[81].mxu0 }
 0xfa2   :  { %v3816_v26 = vadd.f32 %v3769_v29, %v8402_v19  ;;  %v3818_v38 = vadd.f32 %v3810_v30, %v8403_v35  ;;  %v3771_v40 = vpop.f32.mrb[102].mxu1  ;;  %v3812_v37 = vpop.f32.mrb[82].mxu0 }
 0xfa3   :  { %v5460_v41 = vmul.f32 -1.442695, %v3815_v54  ;;  %v3772_v42 = vpop.f32.mrb[103].mxu1  ;;  %v3813_v43 = vpop.f32.mrb[83].mxu0  ;;  %v5462_v31 = vmul.f32 -1.442695, %v3817_v2 }
 0xfa4   :  { %v5461_v45 = vmul.f32 -1.442695, %v3816_v26  ;;  %v8405_v37 = vld [vmem:[#allocation18_spill] sm:$0xff] }
 0xfa5   :  { %6119 = vpow2.f32 %v5460_v41 }
 0xfa6   :  { %6121 = vpow2.f32 %v5461_v45  ;;  %v8406_v45 = vld [vmem:[#allocation27_spill] sm:$0xff] }
 0xfa7   :  { %6123 = vtanh.f32 %v3818_v38  ;;  %v8404_v38 = vld [vmem:[#allocation26_spill] sm:$0xff] }
 0xfa8   :  { %6125 = vpow2.f32 %v5462_v31 }
 0xfaf   :  { %v6120_v14 = vpop.eup %6119 }
 0xfb0   :  { %v3828_v15 = vadd.f32 1.0, %v6120_v14  ;;  %v6122_v17 = vpop.eup %6121  ;;  %v8407_v14 = vld [vmem:[#allocation19_spill] sm:$0xff] }
 0xfb1   :  { %v3829_v51 = vadd.f32 1.0, %v6122_v17  ;;  %v6124_v16 = vpop.eup %6123 }
 0xfb2   :  { %6127 = vrcp.f32 %v3828_v15  ;;  %v6126_v18 = vpop.eup %6125 }
 0xfb3   :  { %6129 = vrcp.f32 %v3829_v51  ;;  %v3830_v54 = vadd.f32 1.0, %v6126_v18 }
 0xfb5   :  { %6131 = vrcp.f32 %v3830_v54 }
 0xfbc   :  { %v6128_v39 = vpop.eup %6127 }
 0xfbd   :  { %v3839_v33 = vmul.f32 %v6128_v39, %v6124_v16  ;;  %v6130_v36 = vpop.eup %6129 }
 0xfbe   :  { %v3838_v55 = vmul.f32 %v6130_v36, %v7968_v61 }
 0xfbf   :  { %v6132_v2 = vpop.eup %6131 }
 0xfc0   :  { %v8014_v29 = vadd.f32 %v3839_v33, %v3838_v55 }
 0xfc2   :  { %6133 = vtanh.f32 %v8014_v29 }
 0xfcc   :  { %v6134_v30 = vpop.eup %6133 }
 0xfcd   :  { %v8017_v19 = vmul.f32 %v6134_v30, %v6132_v2 }
 0xfcf   :  { %v3850_v26 = vpack.c.bf16 %v8017_v19, %v8017_v19 }
 0xfd1   :  { %4076 = vmatmul.mubr.bf16.vlgmr.msra.gmra.mrb[104].mxu1 %v3850_v26  ;;  %4117 = vmatmul.mubr.bf16.vlgmr.msra.gmra.mrb[84].mxu0 %v3850_v26 }
 0xfd2   :  { %4354 = vmatpush1.bf16.msra.mxu1 %v7782_v24  ;;  %4395 = vmatpush1.bf16.msra.mxu0 %v7787_v6 }
 0xfd3   :  { %4355 = vmatprep.subr.bf16.mxu1 %v7796_v13  ;;  %4396 = vmatprep.subr.bf16.mxu0 %v7801_v22 }
 0xfd4   :  { %4385 = vmatprep.mubr.bf16.mxu1 %v8351_v25  ;;  %4426 = vmatprep.mubr.bf16.mxu0 %v8351_v25 }
 0xfd6   :  { %4356 = vmatpush1.bf16.msra.mxu1 %v7806_v5  ;;  %4397 = vmatpush1.bf16.msra.mxu0 %v7811_v23 }
 0xfd7   :  { %4357 = vmatprep.subr.bf16.mxu1 %v7820_v4  ;;  %4398 = vmatprep.subr.bf16.mxu0 %v7825_v34 }
 0xfda   :  { %4358 = vmatpush1.bf16.msra.mxu1 %v7830_v56  ;;  %4399 = vmatpush1.bf16.msra.mxu0 %v7835_v7 }
 0xfdb   :  { %4359 = vmatprep.subr.bf16.mxu1 %v7844_v8  ;;  %4400 = vmatprep.subr.bf16.mxu0 %v7849_v47 }
 0xfde   :  { %4360 = vmatpush1.bf16.msra.mxu1 %v7854_v60  ;;  %4401 = vmatpush1.bf16.msra.mxu0 %v7859_v50 }
 0xfdf   :  { %4361 = vmatprep.subr.bf16.mxu1 %v7868_v59  ;;  %4402 = vmatprep.subr.bf16.mxu0 %v7873_v62 }
 0xfe2   :  { %4362 = vmatpush1.bf16.msra.mxu1 %v7878_v32  ;;  %4403 = vmatpush1.bf16.msra.mxu0 %v7883_v21 }
 0xfe3   :  { %4363 = vmatprep.subr.bf16.mxu1 %v7897_v0  ;;  %4404 = vmatprep.subr.bf16.mxu0 %v7907_v63 }
 0xfe6   :  { %4364 = vmatpush1.bf16.msra.mxu1 %v7892_v58  ;;  %4405 = vmatpush1.bf16.msra.mxu0 %v7902_v27 }
 0xfe7   :  { %4365 = vmatprep.subr.bf16.mxu1 %v7912_v48  ;;  %4406 = vmatprep.subr.bf16.mxu0 %v7918_v44 }
 0xfea   :  { %4366 = vmatpush1.bf16.msra.mxu1 %v7926_v3  ;;  %4407 = vmatpush1.bf16.msra.mxu0 %v7931_v28 }
 0xfeb   :  { %4367 = vmatprep.subr.bf16.mxu1 %v7938_v9  ;;  %4408 = vmatprep.subr.bf16.mxu0 %v7943_v10 }
 0xfee   :  { %4368 = vmatpush1.bf16.msra.mxu1 %v7950_v11  ;;  %4409 = vmatpush1.bf16.msra.mxu0 %v7955_v12 }
 0xfef   :  { %4663 = vmatprep.subr.bf16.mxu1 %v7772_v52  ;;  %4704 = vmatprep.subr.bf16.mxu0 %v7777_v1 }
0x10a4   :  { %v4077_v61 = vpop.f32.mrb[104].mxu1  ;;  %v4118_v35 = vpop.f32.mrb[84].mxu0 }
0x10a5   :  { %v4125_v40 = vadd.f32 %v4077_v61, %v8404_v38  ;;  %v4127_v41 = vadd.f32 %v4118_v35, %v8405_v37  ;;  %v4079_v42 = vpop.f32.mrb[105].mxu1  ;;  %v4120_v43 = vpop.f32.mrb[85].mxu0 }
0x10a6   :  { %v4126_v31 = vadd.f32 %v4079_v42, %v8406_v45  ;;  %v4128_v15 = vadd.f32 %v4120_v43, %v8407_v14  ;;  %v4081_v17 = vpop.f32.mrb[106].mxu1  ;;  %v4122_v51 = vpop.f32.mrb[86].mxu0 }
0x10a7   :  { %v5495_v16 = vmul.f32 -1.442695, %v4125_v40  ;;  %v4082_v18 = vpop.f32.mrb[107].mxu1  ;;  %v4123_v39 = vpop.f32.mrb[87].mxu0  ;;  %v5497_v1 = vmul.f32 -1.442695, %v4127_v41 }
0x10a8   :  { %v5496_v52 = vmul.f32 -1.442695, %v4126_v31  ;;  %v5920_v51 = vld [vmem:[%s8303_s14 + $0x8] sm:$0xff]   ;;  %v5921_v18 = vld [vmem:[%s8303_s14 + $0x10] sm:$0xff]   ;;  %v5922_v39 = vld [vmem:[%s8303_s14 + $0x18] sm:$0xff]  }
0x10a9   :  { %6135 = vpow2.f32 %v5495_v16  ;;  %v4783_v16 = vpack.c.bf16 %v7719_v20, %v7673_v53  ;;  %v5923_v53 = vld [vmem:[%s8303_s14 + $0x20] sm:$0xff]   ;;  %v5924_v20 = vld [vmem:[%s8303_s14 + $0x28] sm:$0xff]  }
0x10aa   :  { %6137 = vpow2.f32 %v5496_v52  ;;  %v5925_v52 = vld [vmem:[%s8303_s14 + $0x30] sm:$0xff]  }
0x10ab   :  { %6139 = vtanh.f32 %v4128_v15 }
0x10ac   :  { %6141 = vpow2.f32 %v5497_v1  ;;  %v5926_v1 = vld [vmem:[%s8303_s14 + $0x38] sm:$0xff]  }
0x10b3   :  { %v6136_v33 = vpop.eup %6135 }
0x10b4   :  { %v4138_v36 = vadd.f32 1.0, %v6136_v33  ;;  %v6138_v54 = vpop.eup %6137  ;;  %v4784_v33 = vpack.c.bf16 %v7971_v57, %v7763_v46 }
0x10b5   :  { %v4139_v55 = vadd.f32 1.0, %v6138_v54  ;;  %v6140_v2 = vpop.eup %6139 }
0x10b6   :  { %6143 = vrcp.f32 %v4138_v36  ;;  %v6142_v30 = vpop.eup %6141 }
0x10b7   :  { %6145 = vrcp.f32 %v4139_v55  ;;  %v4140_v38 = vadd.f32 1.0, %v6142_v30  ;;  %v8412_v30 = vld [vmem:[#allocation30_spill] sm:$0xff] }
0x10b9   :  { %6147 = vrcp.f32 %v4140_v38  ;;  %v8413_v38 = vld [vmem:[#allocation22_spill] sm:$0xff] }
0x10c0   :  { %v6144_v26 = vpop.eup %6143 }
0x10c1   :  { %v4149_v61 = vmul.f32 %v6144_v26, %v6140_v2  ;;  %v6146_v35 = vpop.eup %6145 }
0x10c2   :  { %v4148_v40 = vmul.f32 %v6146_v35, %v8014_v29 }
0x10c3   :  { %v6148_v41 = vpop.eup %6147 }
0x10c4   :  { %v8060_v37 = vadd.f32 %v4149_v61, %v4148_v40 }
0x10c6   :  { %6149 = vtanh.f32 %v8060_v37 }
0x10d0   :  { %v6150_v42 = vpop.eup %6149 }
0x10d1   :  { %v8063_v43 = vmul.f32 %v6150_v42, %v6148_v41 }
0x10d3   :  { %v4160_v45 = vpack.c.bf16 %v8063_v43, %v8063_v43  ;;  %v4785_v36 = vpack.c.bf16 %v8063_v43, %v8017_v19 }
0x10d5   :  { %4386 = vmatmul.mubr.bf16.vlgmr.msra.gmra.mrb[108].mxu1 %v4160_v45  ;;  %4427 = vmatmul.mubr.bf16.vlgmr.msra.gmra.mrb[88].mxu0 %v4160_v45 }
0x10d6   :  { %4664 = vmatpush1.bf16.msra.mxu1 %v7782_v24  ;;  %4705 = vmatpush1.bf16.msra.mxu0 %v7787_v6 }
0x10d7   :  { %4665 = vmatprep.subr.bf16.mxu1 %v7796_v13  ;;  %4706 = vmatprep.subr.bf16.mxu0 %v7801_v22  ;;  %v8408_v13 = vld [vmem:[#allocation28_spill] sm:$0xff] }
0x10d8   :  { %4695 = vmatprep.mubr.bf16.mxu1 %v8351_v25  ;;  %4736 = vmatprep.mubr.bf16.mxu0 %v8351_v25  ;;  %v5919_v25 = vld [vmem:[%s8303_s14] sm:$0xff]  }
0x10da   :  { %4666 = vmatpush1.bf16.msra.mxu1 %v7806_v5  ;;  %4707 = vmatpush1.bf16.msra.mxu0 %v7811_v23  ;;  %v8409_v5 = vld [vmem:[#allocation20_spill] sm:$0xff] }
0x10db   :  { %4667 = vmatprep.subr.bf16.mxu1 %v7820_v4  ;;  %4708 = vmatprep.subr.bf16.mxu0 %v7825_v34 }
0x10de   :  { %4668 = vmatpush1.bf16.msra.mxu1 %v7830_v56  ;;  %4709 = vmatpush1.bf16.msra.mxu0 %v7835_v7  ;;  %v8410_v56 = vld [vmem:[#allocation29_spill] sm:$0xff] }
0x10df   :  { %4669 = vmatprep.subr.bf16.mxu1 %v7844_v8  ;;  %4710 = vmatprep.subr.bf16.mxu0 %v7849_v47  ;;  %v8411_v8 = vld [vmem:[#allocation21_spill] sm:$0xff] }
0x10e2   :  { %4670 = vmatpush1.bf16.msra.mxu1 %v7854_v60  ;;  %4711 = vmatpush1.bf16.msra.mxu0 %v7859_v50 }
0x10e3   :  { %4671 = vmatprep.subr.bf16.mxu1 %v7868_v59  ;;  %4712 = vmatprep.subr.bf16.mxu0 %v7873_v62 }
0x10e6   :  { %4672 = vmatpush1.bf16.msra.mxu1 %v7878_v32  ;;  %4713 = vmatpush1.bf16.msra.mxu0 %v7883_v21 }
0x10e7   :  { %4673 = vmatprep.subr.bf16.mxu1 %v7897_v0  ;;  %4714 = vmatprep.subr.bf16.mxu0 %v7907_v63 }
0x10ea   :  { %4674 = vmatpush1.bf16.msra.mxu1 %v7892_v58  ;;  %4715 = vmatpush1.bf16.msra.mxu0 %v7902_v27 }
0x10eb   :  { %4675 = vmatprep.subr.bf16.mxu1 %v7912_v48  ;;  %4716 = vmatprep.subr.bf16.mxu0 %v7918_v44 }
0x10ee   :  { %4676 = vmatpush1.bf16.msra.mxu1 %v7926_v3  ;;  %4717 = vmatpush1.bf16.msra.mxu0 %v7931_v28 }
0x10ef   :  { %4677 = vmatprep.subr.bf16.mxu1 %v7938_v9  ;;  %4718 = vmatprep.subr.bf16.mxu0 %v7943_v10 }
0x10f2   :  { %4678 = vmatpush1.bf16.msra.mxu1 %v7950_v11  ;;  %4719 = vmatpush1.bf16.msra.mxu0 %v7955_v12 }
0x10f3   :  { %5654 = vmatprep.subr.bf16.mxu1 %v5919_v25 }
0x11a8   :  { %v4387_v24 = vpop.f32.mrb[108].mxu1  ;;  %v4428_v6 = vpop.f32.mrb[88].mxu0 }
0x11a9   :  { %v4435_v22 = vadd.f32 %v4387_v24, %v8408_v13  ;;  %v4437_v23 = vadd.f32 %v4428_v6, %v8409_v5  ;;  %v4389_v4 = vpop.f32.mrb[109].mxu1  ;;  %v4430_v34 = vpop.f32.mrb[89].mxu0 }
0x11aa   :  { %v4436_v7 = vadd.f32 %v4389_v4, %v8410_v56  ;;  %v4438_v47 = vadd.f32 %v4430_v34, %v8411_v8  ;;  %v4391_v60 = vpop.f32.mrb[110].mxu1  ;;  %v4432_v50 = vpop.f32.mrb[90].mxu0 }
0x11ab   :  { %v5530_v59 = vmul.f32 -1.442695, %v4435_v22  ;;  %v4392_v62 = vpop.f32.mrb[111].mxu1  ;;  %v4433_v32 = vpop.f32.mrb[91].mxu0  ;;  %v5532_v58 = vmul.f32 -1.442695, %v4437_v23 }
0x11ac   :  { %v5531_v21 = vmul.f32 -1.442695, %v4436_v7  ;;  %v5568_v7 = vld [vmem:[%s8304_s15] ss:$0 sm:$0xff] }
0x11ad   :  { %6151 = vpow2.f32 %v5530_v59 }
0x11ae   :  { %6153 = vpow2.f32 %v5531_v21 }
0x11af   :  { %6155 = vtanh.f32 %v4438_v47 }
0x11b0   :  { %6157 = vpow2.f32 %v5532_v58 }
0x11b7   :  { %v6152_v0 = vpop.eup %6151 }
0x11b8   :  { %v4448_v27 = vadd.f32 1.0, %v6152_v0  ;;  %v6154_v63 = vpop.eup %6153 }
0x11b9   :  { %v4449_v48 = vadd.f32 1.0, %v6154_v63  ;;  %v6156_v44 = vpop.eup %6155 }
0x11ba   :  { %6159 = vrcp.f32 %v4448_v27  ;;  %v6158_v3 = vpop.eup %6157 }
0x11bb   :  { %6161 = vrcp.f32 %v4449_v48  ;;  %v4450_v11 = vadd.f32 1.0, %v6158_v3  ;;  %v5007_v3 = vld [vmem:[%s8290_s1 + $0x20] sm:$0xff] }
0x11bd   :  { %6163 = vrcp.f32 %v4450_v11 }
0x11c4   :  { %v6160_v28 = vpop.eup %6159 }
0x11c5   :  { %v4459_v9 = vmul.f32 %v6160_v28, %v6156_v44  ;;  %v6162_v10 = vpop.eup %6161 }
0x11c6   :  { %v4458_v12 = vmul.f32 %v6162_v10, %v8060_v37  ;;  %v8414_v37 = vld [vmem:[#allocation31_spill] sm:$0xff] }
0x11c7   :  { %v6164_v31 = vpop.eup %6163 }
0x11c8   :  { %v8107_v29 = vadd.f32 %v4459_v9, %v4458_v12 }
0x11ca   :  { %6165 = vtanh.f32 %v8107_v29 }
0x11d4   :  { %v6166_v14 = vpop.eup %6165 }
0x11d5   :  { %v8110_v15 = vmul.f32 %v6166_v14, %v6164_v31 }
0x11d7   :  { %v4470_v17 = vpack.c.bf16 %v8110_v15, %v8110_v15 }
0x11d9   :  { %4696 = vmatmul.mubr.bf16.vlgmr.msra.gmra.mrb[112].mxu1 %v4470_v17  ;;  %4737 = vmatmul.mubr.bf16.vlgmr.msra.gmra.mrb[92].mxu0 %v4470_v17  ;;  %v5008_v17 = vld [vmem:[%s8290_s1 + $0x28] sm:$0xff] }
0x11da   :  { %5655 = vmatpush3.bf16.msra.mxu1 %v5919_v25  ;;  %5670 = vmatprep.mubr.bf16.mxu1 %v4783_v16  ;;  %v5010_v16 = vld [vmem:[%s8290_s1 + $0x38] sm:$0xff] }
0x11db   :  { %5656 = vmatprep.subr.bf16.mxu1 %v5920_v51 }
0x11de   :  { %5657 = vmatpush3.bf16.msra.mxu1 %v5920_v51  ;;  %v5009_v51 = vld [vmem:[%s8290_s1 + $0x30] sm:$0xff] }
0x11df   :  { %5658 = vmatprep.subr.bf16.mxu1 %v5921_v18 }
0x11e2   :  { %5659 = vmatpush3.bf16.msra.mxu1 %v5921_v18  ;;  %v5016_v18 = vpop.permute.xlu0 %5015 }
0x11e3   :  { %5660 = vmatprep.subr.bf16.mxu1 %v5922_v39 }
0x11e6   :  { %5661 = vmatpush3.bf16.msra.mxu1 %v5922_v39 }
0x11e7   :  { %5662 = vmatprep.subr.bf16.mxu1 %v5923_v53 }
0x11ea   :  { %5663 = vmatpush3.bf16.msra.mxu1 %v5923_v53  ;;  %v5013_v53 = vpop.permute.xlu1 %5012 }
0x11eb   :  { %5664 = vmatprep.subr.bf16.mxu1 %v5924_v20 }
0x11ee   :  { %5665 = vmatpush3.bf16.msra.mxu1 %v5924_v20 }
0x11ef   :  { %5666 = vmatprep.subr.bf16.mxu1 %v5925_v52 }
0x11f2   :  { %5667 = vmatpush3.bf16.msra.mxu1 %v5925_v52  ;;  %v5019_v52 = vpop.permute.xlu1 %5018 }
0x11f3   :  { %5668 = vmatprep.subr.bf16.mxu1 %v5926_v1 }
0x11f6   :  { %5669 = vmatpush3.bf16.msra.mxu1 %v5926_v1 }
0x11f9   :  { %5671 = vmatmul.mubr.bf16.vlgmr.msra.gmra.mrb[116].mxu1 %v4784_v33 }
0x11fa   :  { %5674 = vmatprep.mubr.bf16.mxu1 %v4785_v36 }
0x12ac   :  { %v4697_v54 = vpop.f32.mrb[112].mxu1  ;;  %v4738_v55 = vpop.f32.mrb[92].mxu0 }
0x12ad   :  { %v4745_v2 = vadd.f32 %v4697_v54, %v7656_v49  ;;  %v4747_v26 = vadd.f32 %v4738_v55, %v8412_v30  ;;  %v4699_v61 = vpop.f32.mrb[113].mxu1  ;;  %v4740_v35 = vpop.f32.mrb[93].mxu0 }
0x12ae   :  { %v4746_v40 = vadd.f32 %v4699_v61, %v8413_v38  ;;  %v4748_v41 = vadd.f32 %v4740_v35, %v8414_v37  ;;  %v4701_v42 = vpop.f32.mrb[114].mxu1  ;;  %v4742_v45 = vpop.f32.mrb[94].mxu0 }
0x12af   :  { %v5565_v46 = vmul.f32 -1.442695, %v4745_v2  ;;  %v4702_v57 = vpop.f32.mrb[115].mxu1  ;;  %v4743_v25 = vpop.f32.mrb[95].mxu0  ;;  %v5567_v43 = vmul.f32 -1.442695, %v4747_v26 }
0x12b0   :  { %v5566_v19 = vmul.f32 -1.442695, %v4746_v40 }
0x12b1   :  { %6167 = vpow2.f32 %v5565_v46 }
0x12b2   :  { %6169 = vpow2.f32 %v5566_v19 }
0x12b3   :  { %6171 = vtanh.f32 %v4748_v41 }
0x12b4   :  { %6173 = vpow2.f32 %v5567_v43 }
0x12bb   :  { %v6168_v24 = vpop.eup %6167 }
0x12bc   :  { %v4758_v6 = vadd.f32 1.0, %v6168_v24  ;;  %v6170_v49 = vpop.eup %6169 }
0x12bd   :  { %v4759_v13 = vadd.f32 1.0, %v6170_v49  ;;  %v6172_v22 = vpop.eup %6171 }
0x12be   :  { %6175 = vrcp.f32 %v4758_v6  ;;  %v6174_v5 = vpop.eup %6173 }
0x12bf   :  { %6177 = vrcp.f32 %v4759_v13  ;;  %v4760_v56 = vadd.f32 1.0, %v6174_v5 }
0x12c1   :  { %6179 = vrcp.f32 %v4760_v56 }
0x12c8   :  { %v6176_v23 = vpop.eup %6175 }
0x12c9   :  { %v4769_v4 = vmul.f32 %v6176_v23, %v6172_v22  ;;  %v6178_v34 = vpop.eup %6177 }
0x12ca   :  { %v4768_v8 = vmul.f32 %v6178_v34, %v8107_v29 }
0x12cb   :  { %v6180_v27 = vpop.eup %6179 }
0x12cc   :  { %v5672_v47 = vpop.f32.mrb[116].mxu1  ;;  %v4770_v60 = vadd.f32 %v4769_v4, %v4768_v8  ;;  %v8415_v8 = vld [vmem:[#allocation8_spill] sm:$0xff] }
0x12cd   :  { %v8149_v50 = vadd.f32 %v5672_v47, %v5568_v7  ;;  %v4892_v59 = vpop.f32.mrb[117].mxu1  ;;  %vm5035_vm14 = vcmp.eq.s32.totalorder %v8415_v8, %v5013_v53  ;;  %vm5036_vm15 = vcmp.eq.s32.totalorder %v8415_v8, %v5016_v18  ;;  %vm5037_vm0 = vcmp.eq.s32.totalorder %v8415_v8, %v5019_v52  ;;  %v5075_v53 = vld [vmem:[%s8291_s2] sm:$0xff] }
0x12ce   :  { %v5673_v62 = vpop.f32.mrb[118].mxu1  ;;  %6181 = vtanh.f32 %v4770_v60  ;;  %v8154_v58 = vadd.f32 %v5568_v7, %v4892_v59 }
0x12cf   :  { %4927 = vmax.xlane.f32.xlu0 %v8149_v50  ;;  %v4895_v32 = vpop.f32.mrb[119].mxu1  ;;  %v8158_v0 = vadd.f32 %v5673_v62, %v5568_v7  ;;  %v5045_v62 = vsel %vm5037_vm0, %v8149_v50, 0.0 }
0x12d0   :  { %v8152_v21 = vadd.f32 %v5568_v7, %v4895_v32  ;;  %v5043_v47 = vsel %vm5035_vm14, %v8154_v58, 0.0 }
0x12d2   :  { %4925 = vmax.xlane.f32.xlu1 %v8152_v21  ;;  %v5044_v59 = vsel %vm5036_vm15, %v8152_v21, 0.0 }
0x12d3   :  { %4923 = vmax.xlane.f32.xlu0 %v8154_v58 }
0x12d7   :  { %4929 = vmax.xlane.f32.xlu0 %v8158_v0 }
0x12d8   :  { %v6182_v63 = vpop.eup %6181 }
0x12d9   :  { %v4772_v48 = vmul.f32 %v6182_v63, %v6180_v27 }
0x12db   :  { %v4786_v44 = vpack.c.bf16 %v4772_v48, %v8110_v15  ;;  %v5006_v15 = vld [vmem:[%s8290_s1 + $0x18] sm:$0xff] }
0x12dd   :  { %5675 = vmatmul.mubr.bf16.gmra.mrb[120].mxu1 %v4786_v44 }
0x12ed   :  { %5024 = vperm.xlu0 %5685, %v5007_v3  }
0x135c   :  { %v8189_v39 = vpop.xlane.xlu0 %4927 }
0x135d   :  { %v4941_v36 = vsub.f32 %v8149_v50, %v8189_v39 }
0x135f   :  { %v8195_v33 = vpop.xlane.xlu1 %4925  ;;  %v4951_v30 = vmul.f32 1.442695, %v4941_v36 }
0x1360   :  { %v8191_v20 = vpop.xlane.xlu0 %4923  ;;  %v4940_v2 = vsub.f32 %v8152_v21, %v8195_v33 }
0x1361   :  { %v4939_v1 = vsub.f32 %v8154_v58, %v8191_v20 }
0x1362   :  { %v4949_v61 = vmul.f32 1.442695, %v4940_v2  ;;  %v5076_v2 = vld [vmem:[%s8291_s2 + $0x8] sm:$0xff] }
0x1363   :  { %v4947_v54 = vmul.f32 1.442695, %v4939_v1 }
0x1364   :  { %v8199_v55 = vpop.xlane.xlu0 %4929 }
0x1365   :  { %6183 = vpow2.f32 %v4947_v54  ;;  %v4942_v26 = vsub.f32 %v8158_v0, %v8199_v55 }
0x1366   :  { %6185 = vpow2.f32 %v4951_v30 }
0x1367   :  { %v4953_v35 = vmul.f32 1.442695, %v4942_v26  ;;  %6187 = vpow2.f32 %v4949_v61 }
0x1369   :  { %6189 = vpow2.f32 %v4953_v35 }
0x136c   :  { %v5025_v42 = vpop.permute.xlu0 %5024 }
0x136d   :  { %vm5039_vm2 = vcmp.eq.s32.totalorder %v8415_v8, %v5025_v42 }
0x136f   :  { %v6184_v38 = vpop.eup %6183 }
0x1370   :  { %v6186_v40 = vpop.eup %6185 }
0x1371   :  { %v6188_v37 = vpop.eup %6187 }
0x1373   :  { %v6190_v41 = vpop.eup %6189 }
0x13b0   :  { %v5676_v28 = vpop.f32.mrb[120].mxu1 }
0x13b1   :  { %v8165_v9 = vadd.f32 %v5676_v28, %v5568_v7  ;;  %v4908_v10 = vpop.f32.mrb[121].mxu1 }
0x13b2   :  { %v5677_v11 = vpop.f32.mrb[122].mxu1  ;;  %v8170_v31 = vadd.f32 %v5568_v7, %v4908_v10 }
0x13b3   :  { %v8167_v12 = vadd.f32 %v5677_v11, %v5568_v7  ;;  %v4911_v29 = vpop.f32.mrb[123].mxu1  ;;  %4935 = vmax.xlane.f32.xlu1 %v8165_v9 }
0x13b4   :  { %v8173_v14 = vadd.f32 %v5568_v7, %v4911_v29  ;;  %v5047_v63 = vsel %vm5039_vm2, %v8170_v31, 0.0 }
0x13b5   :  { %4937 = vmax.xlane.f32.xlu0 %v8167_v12 }
0x13b7   :  { %4931 = vmax.xlane.f32.xlu1 %v8170_v31 }
0x13b9   :  { %4933 = vmax.xlane.f32.xlu0 %v8173_v14 }
0x13c8   :  { %5021 = vperm.xlu1 %5686, %v5006_v15  }
0x13cc   :  { %5027 = vperm.xlu1 %5686, %v5008_v17  }
0x13cf   :  { %5030 = vperm.xlu0 %5685, %v5009_v51  }
0x13d0   :  { %5033 = vperm.xlu1 %5686, %v5010_v16  }
0x13ee   :  { %4963 = vadd.xlane.f32.xlu0 %v6184_v38 }
0x13f2   :  { %4967 = vadd.xlane.f32.xlu0 %v6186_v40  ;;  %v5077_v40 = vld [vmem:[%s8291_s2 + $0x10] sm:$0xff] }
0x13f4   :  { %4965 = vadd.xlane.f32.xlu1 %v6188_v37 }
0x13f6   :  { %4969 = vadd.xlane.f32.xlu0 %v6190_v41 }
0x1440   :  { %v8205_v45 = vpop.xlane.xlu1 %4935 }
0x1441   :  { %v4945_v25 = vsub.f32 %v8165_v9, %v8205_v45 }
0x1442   :  { %v8207_v46 = vpop.xlane.xlu0 %4937 }
0x1443   :  { %v4946_v24 = vsub.f32 %v8167_v12, %v8207_v46  ;;  %v4959_v13 = vmul.f32 1.442695, %v4945_v25 }
0x1444   :  { %v8209_v57 = vpop.xlane.xlu1 %4931 }
0x1445   :  { %v4943_v19 = vsub.f32 %v8170_v31, %v8209_v57  ;;  %v4961_v5 = vmul.f32 1.442695, %v4946_v24  ;;  %v5078_v24 = vld [vmem:[%s8291_s2 + $0x18] sm:$0xff] }
0x1446   :  { %v8215_v43 = vpop.xlane.xlu0 %4933 }
0x1447   :  { %v4955_v6 = vmul.f32 1.442695, %v4943_v19  ;;  %v4944_v49 = vsub.f32 %v8173_v14, %v8215_v43 }
0x1448   :  { %v5022_v56 = vpop.permute.xlu1 %5021 }
0x1449   :  { %6191 = vpow2.f32 %v4955_v6  ;;  %v4957_v22 = vmul.f32 1.442695, %v4944_v49  ;;  %vm5038_vm1 = vcmp.eq.s32.totalorder %v8415_v8, %v5022_v56 }
0x144a   :  { %v5046_v27 = vsel %vm5038_vm1, %v8158_v0, 0.0 }
0x144b   :  { %6193 = vpow2.f32 %v4957_v22 }
0x144c   :  { %6195 = vpow2.f32 %v4959_v13  ;;  %v5028_v60 = vpop.permute.xlu1 %5027 }
0x144d   :  { %6197 = vpow2.f32 %v4961_v5  ;;  %vm5040_vm3 = vcmp.eq.s32.totalorder %v8415_v8, %v5028_v60 }
0x144e   :  { %v5031_v32 = vpop.permute.xlu0 %5030  ;;  %v5048_v21 = vsel %vm5040_vm3, %v8173_v14, 0.0 }
0x144f   :  { %vm5041_vm4 = vcmp.eq.s32.totalorder %v8415_v8, %v5031_v32  ;;  %v5080_v32 = vld [vmem:[%s8291_s2 + $0x28] sm:$0xff] }
0x1450   :  { %v5034_v58 = vpop.permute.xlu1 %5033  ;;  %v5049_v50 = vsel %vm5041_vm4, %v8165_v9, 0.0 }
0x1451   :  { %vm5042_vm5 = vcmp.eq.s32.totalorder %v8415_v8, %v5034_v58 }
0x1452   :  { %v5050_v0 = vsel %vm5042_vm5, %v8167_v12, 0.0 }
0x1453   :  { %v6192_v23 = vpop.eup %6191 }
0x1454   :  { %4971 = vadd.xlane.f32.xlu1 %v6192_v23 }
0x1455   :  { %v6194_v4 = vpop.eup %6193 }
0x1456   :  { %4973 = vadd.xlane.f32.xlu0 %v6194_v4  ;;  %v6196_v34 = vpop.eup %6195 }
0x1457   :  { %v6198_v7 = vpop.eup %6197 }
0x1458   :  { %4975 = vadd.xlane.f32.xlu1 %v6196_v34 }
0x145a   :  { %4977 = vadd.xlane.f32.xlu0 %v6198_v7 }
0x145c   :  { %5051 = vadd.xlane.f32.xlu1 %v5043_v47 }
0x145e   :  { %5053 = vadd.xlane.f32.xlu0 %v5044_v59 }
0x1460   :  { %5055 = vadd.xlane.f32.xlu1 %v5045_v62 }
0x1462   :  { %5057 = vadd.xlane.f32.xlu0 %v5046_v27 }
0x1464   :  { %5059 = vadd.xlane.f32.xlu1 %v5047_v63 }
0x1466   :  { %5061 = vadd.xlane.f32.xlu0 %v5048_v21 }
0x1468   :  { %5063 = vadd.xlane.f32.xlu1 %v5049_v50 }
0x146a   :  { %5065 = vadd.xlane.f32.xlu0 %v5050_v0 }
0x147b   :  { %v4964_v48 = vpop.xlane.xlu0 %4963 }
0x147c   :  { %6199 = vlog2.f32 %v4964_v48 }
0x147f   :  { %v4968_v44 = vpop.xlane.xlu0 %4967 }
0x1481   :  { %v4966_v3 = vpop.xlane.xlu1 %4965 }
0x1482   :  { %6201 = vlog2.f32 %v4966_v3 }
0x1483   :  { %v4970_v28 = vpop.xlane.xlu0 %4969  ;;  %6203 = vlog2.f32 %v4968_v44 }
0x1484   :  { %6205 = vlog2.f32 %v4970_v28 }
0x1486   :  { %v6200_v10 = vpop.eup %6199 }
0x1487   :  { %v4980_v14 = vmul.f32 0.6931472, %v6200_v10 }
0x1489   :  { %v4995_v18 = vadd.f32 %v4980_v14, %v8191_v20 }
0x148c   :  { %v6202_v29 = vpop.eup %6201 }
0x148d   :  { %v6204_v9 = vpop.eup %6203  ;;  %v4982_v17 = vmul.f32 0.6931472, %v6202_v29 }
0x148e   :  { %v6206_v12 = vpop.eup %6205  ;;  %v4984_v16 = vmul.f32 0.6931472, %v6204_v9 }
0x148f   :  { %v4986_v1 = vmul.f32 0.6931472, %v6206_v12  ;;  %v4996_v54 = vadd.f32 %v4982_v17, %v8195_v33 }
0x1490   :  { %v4997_v38 = vadd.f32 %v4984_v16, %v8189_v39 }
0x1491   :  { %v4998_v25 = vadd.f32 %v4986_v1, %v8199_v55  ;;  %v5079_v55 = vld [vmem:[%s8291_s2 + $0x20] sm:$0xff] }
0x14e1   :  { %v4972_v11 = vpop.xlane.xlu1 %4971 }
0x14e2   :  { %6207 = vlog2.f32 %v4972_v11 }
0x14e3   :  { %v4974_v31 = vpop.xlane.xlu0 %4973 }
0x14e4   :  { %6209 = vlog2.f32 %v4974_v31 }
0x14e5   :  { %v4976_v15 = vpop.xlane.xlu1 %4975 }
0x14e6   :  { %6211 = vlog2.f32 %v4976_v15 }
0x14e7   :  { %v4978_v51 = vpop.xlane.xlu0 %4977 }
0x14e8   :  { %6213 = vlog2.f32 %v4978_v51 }
0x14e9   :  { %v5052_v52 = vpop.xlane.xlu1 %5051 }
0x14ea   :  { %v5067_v36 = vsub.f32 %v4995_v18, %v5052_v52 }
0x14eb   :  { %v5054_v30 = vpop.xlane.xlu0 %5053 }
0x14ec   :  { %v6208_v26 = vpop.eup %6207  ;;  %v5083_v61 = vmul.f32 %v5075_v53, %v5067_v36  ;;  %v5068_v35 = vsub.f32 %v4996_v54, %v5054_v30 }
0x14ed   :  { %v4988_v20 = vmul.f32 0.6931472, %v6208_v26  ;;  %v5056_v37 = vpop.xlane.xlu1 %5055 }
0x14ee   :  { %v6210_v41 = vpop.eup %6209  ;;  %v5084_v42 = vmul.f32 %v5076_v2, %v5068_v35  ;;  %v5069_v33 = vsub.f32 %v4997_v38, %v5056_v37  ;;  %v5092_v13 = vsel %vm5091_vm6, %v5083_v61, 0.0 }
0x14ef   :  { %v4990_v19 = vmul.f32 0.6931472, %v6210_v41  ;;  %v5058_v6 = vpop.xlane.xlu0 %5057  ;;  %v4999_v39 = vadd.f32 %v4988_v20, %v8209_v57 }
0x14f0   :  { %v6212_v49 = vpop.eup %6211  ;;  %v5093_v22 = vsel %vm5091_vm6, %v5084_v42, 0.0  ;;  %v5085_v5 = vmul.f32 %v5077_v40, %v5069_v33  ;;  %v5070_v23 = vsub.f32 %v4998_v25, %v5058_v6 }
0x14f1   :  { %v4992_v4 = vmul.f32 0.6931472, %v6212_v49  ;;  %v5094_v34 = vadd.f32 %v5093_v22, %v5092_v13  ;;  %v5060_v56 = vpop.xlane.xlu1 %5059  ;;  %v5000_v7 = vadd.f32 %v4990_v19, %v8215_v43  ;;  %v5081_v43 = vld [vmem:[%s8291_s2 + $0x30] sm:$0xff] }
0x14f2   :  { %v6214_v8 = vpop.eup %6213  ;;  %v5095_v47 = vsel %vm5091_vm6, %v5085_v5, 0.0  ;;  %v5086_v57 = vmul.f32 %v5078_v24, %v5070_v23  ;;  %v5071_v60 = vsub.f32 %v4999_v39, %v5060_v56 }
0x14f3   :  { %v4994_v59 = vmul.f32 0.6931472, %v6214_v8  ;;  %v5096_v62 = vadd.f32 %v5095_v47, %v5094_v34  ;;  %v5062_v27 = vpop.xlane.xlu0 %5061  ;;  %v5001_v58 = vadd.f32 %v4992_v4, %v8205_v45  ;;  %v5082_v45 = vld [vmem:[%s8291_s2 + $0x38] sm:$0xff]  ;;  %s6275_s2 = smov [#allocation5]  }
0x14f4   :  { %v5097_v63 = vsel %vm5091_vm6, %v5086_v57, 0.0  ;;  %v5087_v21 = vmul.f32 %v5079_v55, %v5071_v60  ;;  %v5072_v50 = vsub.f32 %v5000_v7, %v5062_v27  ;;  %s5127_s18 = sshll.u32 %s6275_s2, 4  ;;  %s5128_s18 = int_to_ptr.vmem [resolvable:$true] %s5127_s18 }
0x14f5   :  { %v5098_v0 = vadd.f32 %v5097_v63, %v5096_v62  ;;  %v5064_v48 = vpop.xlane.xlu1 %5063  ;;  %v5002_v44 = vadd.f32 %v4994_v59, %v8207_v46  ;;  %s6247_s19 = scalar_lea.vmem %s5128_s18, 16  ;;  %s6251_s15 = scalar_lea.vmem %s5128_s18, 32 }
0x14f6   :  { %v5099_v3 = vsel %vm5091_vm6, %v5087_v21, 0.0  ;;  %v5088_v28 = vmul.f32 %v5080_v32, %v5072_v50  ;;  %v5073_v10 = vsub.f32 %v5001_v58, %v5064_v48  ;;  %p6248_p0 = scmp.ne.s32.totalorder %s5128_s18, %s6247_s19  ;;  %p6252_p1 = scmp.lt.s32.totalorder %s5128_s18, %s5128_s18 }
0x14f7   :  { %v5100_v11 = vadd.f32 %v5099_v3, %v5098_v0  ;;  %v5066_v29 = vpop.xlane.xlu0 %5065  ;;  %p6253_p2 = scmp.lt.s32.totalorder %s6251_s15, %s6247_s19 }
0x14f8   :  { %v5101_v31 = vsel %vm5091_vm6, %v5088_v28, 0.0  ;;  %v5089_v14 = vmul.f32 %v5081_v43, %v5073_v10  ;;  %v5074_v9 = vsub.f32 %v5002_v44, %v5066_v29 }
0x14f9   :  { %v5102_v15 = vadd.f32 %v5101_v31, %v5100_v11  ;;  %p6254_p3 = por %p6253_p2, %p6252_p1 }
0x14fa   :  { %v5090_v17 = vmul.f32 %v5082_v45, %v5074_v9  ;;  %v5103_v12 = vsel %vm5091_vm6, %v5089_v14, 0.0 }
0x14fb   :  { %v5104_v51 = vadd.f32 %v5103_v12, %v5102_v15  ;;  %p6255_p4 = pnand %p6254_p3, %p6248_p0 }
0x14fc   :  { %v5105_v46 = vsel %vm5091_vm6, %v5090_v17, 0.0 }
0x14fd   :  { %v5106_v16 = vadd.f32 %v5105_v46, %v5104_v51 }
0x14ff   :  { %5107 = vadd.xlane.f32.xlu1 %v5106_v16 }
0x158c   :  { %v5108_v18 = vpop.xlane.xlu1 %5107 }
0x158d   :  { %v5109_v53 = vrot.slane %v5108_v18, 4 }
0x158f   :  { %v5110_v52 = vadd.f32 %v5109_v53, %v5108_v18 }
0x1591   :  { %v5111_v1 = vrot.slane %v5110_v52, 2 }
0x1593   :  { %v5112_v36 = vadd.f32 %v5111_v1, %v5110_v52 }
0x1595   :  { %v5113_v54 = vrot.slane %v5112_v36, 1 }
0x1597   :  { %v5114_v2 = vadd.f32 %v5113_v54, %v5112_v36 }
0x1599   :  { %5678 = vpush %v5114_v2 }
0x15ca   :  { %s5679_s14 = spop %5678 }
0x15cb   :  { %v5116_v30 = vstv %s5679_s14 }
0x15cc   :  { %v5118_v26 = vmul.f32 0.03125, %v5116_v30 }
0x15ce   :  { %5120 = vst.msk [vmem:[#allocation5] sm:$0x1] %vm5119_vm7, %v5118_v26 }
0x15cf   :  { %6258 = shalt.err (!%p6255_p4)
}
0x15d0   :  { %s6259_s4 = scalar_lea.hbm %s8305_s16, 16 }
0x15d1   :  { %p6260_p5 = scmp.ne.s32.totalorder %s8305_s16, %s6259_s4  ;;  %p6263_p6 = scmp.lt.u32.totalorder %s6259_s4, %s8305_s16 }
0x15d3   :  { %p6265_p7 = pnand %p6263_p6, %p6260_p5 }
0x15d5   :  { %6268 = shalt.err (!%p6265_p7)
}
0x15d6   :  { %5130 = dma.vmem_to_hbm [thread:$0]  %s5128_s18, 16, %s8305_s16, [#allocation6]  }
0x15d7   :  { %6269 = dma.done.wait [#allocation6], 16  }
0x15d8   :  { %6270 = vsyncadd [#allocation6], 4294967280 }
0x15d9   :  { %5134 = vsyncpa [#allocation6], 1 }

</bundles_post_ra>
